<compile_context>
chip_gen: v6e
topology: v6e:2x2x1
jax: 0.10.0
libtpu: 0.0.40
codegen_flags: <defaults>
</compile_context>

<pallas_src>
import jax
import jax.numpy as jnp
from jax.experimental import pallas as pl
from jax.experimental.pallas import tpu as pltpu

KSIZE = 3    # 3x3 conv, padding=1
NC_PAD = 8   # num_classes padded to a sublane-aligned 8 inside the kernel


def _wrapped_model_kernel(patch_ref, wconv_ref, bconv_ref, wfc_ref, bfc_ref,
                          out_ref):
    """Conv(im2col matmul) + bias + ReLU + avg-pool + FC, lane-dense layout.

    patch_ref : [K, HW*bb]     bf16  im2col patches; column = (h*W + w)*bb + b
    wconv_ref : [Cout, K]      bf16  conv weights, K = 9*Cin
    bconv_ref : [Cout, 1]      f32   conv bias (broadcast along lanes)
    wfc_ref   : [NC_PAD, Cout] f32   fc weights, pre-scaled by 1/(H*W)
    bfc_ref   : [NC_PAD, 1]    f32   fc bias (padded rows are zero)
    out_ref   : [NC_PAD, bb]   f32   logits block (classes x batch)
    """
    bb = out_ref.shape[1]
    hw = patch_ref.shape[1] // bb

    # Conv as one lane-dense MXU matmul: [Cout, K] @ [K, HW*bb] -> f32 acc.
    acc = jnp.dot(wconv_ref[...], patch_ref[...],
                  preferred_element_type=jnp.float32)        # [Cout, HW*bb]
    acc = jnp.maximum(acc + bconv_ref[...], 0.0)              # bias + ReLU

    # Global average pool over the HW pixel groups.  Columns are ordered
    # (pixel-major, batch-minor), so each pixel group is a contiguous,
    # bb-wide (multiple-of-128) lane slice: pairwise tree fold -> pure VPU
    # adds, no relayout, no cross-lane XLU reduce.  1/(HW) is folded into wfc.
    n = hw
    carry = None
    while n > 1:
        if n % 2 == 1:                       # odd leftover group
            last = acc[:, (n - 1) * bb:n * bb]
            carry = last if carry is None else carry + last
            n -= 1
        half = n // 2
        acc = acc[:, :half * bb] + acc[:, half * bb:n * bb]
        n = half
    feat = acc if carry is None else acc + carry              # [Cout, bb]

    # Final linear layer -> logits [NC_PAD, bb].
    logits = jnp.dot(wfc_ref[...], feat,
                     preferred_element_type=jnp.float32) + bfc_ref[...]
    out_ref[...] = logits.astype(out_ref.dtype)


def wrapped_model_forward(x_nchw, params, *, batch_block=256):
    """Equivalent of WrappedModel(base)(x): returns logits only, shape [B, NC]."""
    w_conv, b_conv, w_fc, b_fc = (params["w_conv"], params["b_conv"],
                                  params["w_fc"], params["b_fc"])
    B, Cin, H, W = x_nchw.shape
    HW = H * W
    Cout = w_conv.shape[-1]
    num_classes = w_fc.shape[1]
    K = KSIZE * KSIZE * Cin

    # ---- batch blocking -------------------------------------------------
    # bb is always a multiple of 128 (bounded VMEM for any H, W), capped at
    # 512 so a single block stays within v7x's scoped-VMEM budget, and sized
    # ~ceil(B/2) for mid-size batches so the grid has >= 2 parallel steps
    # (both v7x TensorCores get work).
    bb_cap = max(128, (min(int(batch_block), 512) // 128) * 128)
    if B <= 128:
        bb = 128
    else:
        half_b = -(-B // 2)                       # ceil(B / 2)
        bb = min(bb_cap, (-(-half_b // 128)) * 128)
    n_blk = -(-B // bb)                           # ceil(B / bb)
    b_pad = n_blk * bb

    # ---- wrapper-side im2col: cast to bf16 first, single materialization --
    x = x_nchw.astype(jnp.bfloat16)                                  # [B,C,H,W]
    x = jnp.pad(x, ((0, b_pad - B), (0, 0), (1, 1), (1, 1)))         # pad B,H,W
    x = x.reshape(n_blk, bb, Cin, H + 2, W + 2)
    x = jnp.transpose(x, (2, 0, 3, 4, 1))        # [Cin, n_blk, Hp, Wp, bb]
    taps = [x[:, :, kh:kh + H, kw:kw + W, :]
            for kh in range(KSIZE) for kw in range(KSIZE)]
    patches = jnp.stack(taps, axis=0)            # [9, Cin, n_blk, H, W, bb]
    patches = patches.reshape(K, n_blk * HW * bb)   # row = (kh*3+kw)*Cin + c

    # Conv weights -> [Cout, K], bf16 (matches im2col row ordering).
    w_conv_r = jnp.transpose(w_conv.reshape(K, Cout)).astype(jnp.bfloat16)
    b_conv_c = b_conv.reshape(-1)[:, None].astype(jnp.float32)        # [Cout,1]

    # FC weights transposed to [NC_PAD, Cout] with the 1/(H*W) pooling scale
    # folded in; classes padded to 8 sublanes with zero rows.
    w_fc_s = (jnp.transpose(w_fc) * (1.0 / float(HW))).astype(jnp.float32)
    w_fc_p = jnp.zeros((NC_PAD, Cout), jnp.float32).at[:num_classes].set(w_fc_s)
    b_fc_p = jnp.zeros((NC_PAD, 1), jnp.float32).at[:num_classes, 0].set(
        b_fc.reshape(-1).astype(jnp.float32))

    out = pl.pallas_call(
        _wrapped_model_kernel,
        out_shape=jax.ShapeDtypeStruct((NC_PAD, b_pad), jnp.float32),
        grid_spec=pltpu.PrefetchScalarGridSpec(
            num_scalar_prefetch=0,
            grid=(n_blk,),
            in_specs=[
                pl.BlockSpec((K, HW * bb), lambda i: (0, i)),      # patches
                pl.BlockSpec((Cout, K), lambda i: (0, 0)),         # conv W
                pl.BlockSpec((Cout, 1), lambda i: (0, 0)),         # conv b
                pl.BlockSpec((NC_PAD, Cout), lambda i: (0, 0)),    # fc W
                pl.BlockSpec((NC_PAD, 1), lambda i: (0, 0)),       # fc b
            ],
            out_specs=pl.BlockSpec((NC_PAD, bb), lambda i: (0, i)),
        ),
        compiler_params=pltpu.CompilerParams(
            dimension_semantics=("parallel",)),
    )(patches, w_conv_r, b_conv_c, w_fc_p, b_fc_p)

    # Strip class padding / batch padding, back to [B, num_classes].
    return jnp.transpose(out[:num_classes, :B])


def init_params(key, cin=4, cout=8, num_classes=3):
    k1, k2, k3, k4 = jax.random.split(key, 4)
    return {
        "w_conv": 0.1 * jax.random.normal(k1, (KSIZE, KSIZE, cin, cout),
                                          jnp.float32),
        "b_conv": 0.1 * jax.random.normal(k2, (1, cout), jnp.float32),
        "w_fc": 0.1 * jax.random.normal(k3, (cout, num_classes), jnp.float32),
        "b_fc": 0.1 * jax.random.normal(k4, (1, num_classes), jnp.float32),
    }


def _reference_forward(x_nchw, params):
    """Pure-JAX reference (same bf16 conv-operand precision as the kernel)."""
    x = jnp.transpose(x_nchw, (0, 2, 3, 1)).astype(jnp.float32)
    xp = jnp.pad(x, ((0, 0), (1, 1), (1, 1), (0, 0)))
    B, Hp, Wp, Cin = xp.shape
    H, W = Hp - 2, Wp - 2
    Cout = params["w_conv"].shape[-1]
    acc = jnp.zeros((B, H, W, Cout), jnp.float32)
    for kh in range(KSIZE):
        for kw in range(KSIZE):
            acc = acc + jnp.einsum(
                "bhwc,cd->bhwd",
                xp[:, kh:kh + H, kw:kw + W, :].astype(jnp.bfloat16),
                params["w_conv"][kh, kw].astype(jnp.bfloat16),
                preferred_element_type=jnp.float32)
    acc = jnp.maximum(acc + params["b_conv"][0], 0.0)
    feat = jnp.mean(acc, axis=(1, 2))
    return feat @ params["w_fc"] + params["b_fc"][0]


if __name__ == "__main__":
    key = jax.random.PRNGKey(0)
    kx, kp = jax.random.split(key)

    # Small NCHW input consistent with the (image-classifier) forward pass.
    B, C, H, W = 2, 4, 16, 16
    x = jax.random.normal(kx, (B, C, H, W), dtype=jnp.float32)
    params = init_params(kp, cin=C, cout=8, num_classes=3)

    logits = jax.block_until_ready(wrapped_model_forward(x, params))
    ref = jax.block_until_ready(_reference_forward(x, params))
    assert logits.shape == (B, 3)
    assert bool(jnp.all(jnp.isfinite(logits)))
    assert jnp.allclose(logits, ref, rtol=2e-3, atol=2e-3)

    # Exercise the multi-block (grid >= 2) + batch-padding path.
    B2 = 300
    x2 = jax.random.normal(jax.random.PRNGKey(1), (B2, C, H, W),
                           dtype=jnp.float32)
    logits2 = jax.block_until_ready(wrapped_model_forward(x2, params))
    ref2 = jax.block_until_ready(_reference_forward(x2, params))
    assert logits2.shape == (B2, 3)
    assert bool(jnp.all(jnp.isfinite(logits2)))
    assert jnp.allclose(logits2, ref2, rtol=2e-3, atol=2e-3)

    print("KERNEL_OK")
</pallas_src>

<mosaic_0001>
module attributes {stable_mosaic.version = 11 : i64} {
  func.func @_wrapped_model_kernel(%arg0: i32, %arg1: memref<36x32768xbf16, #tpu.memory_space<vmem>>, %arg2: memref<8x36xbf16, #tpu.memory_space<vmem>>, %arg3: memref<8x1xf32, #tpu.memory_space<vmem>>, %arg4: memref<8x8xf32, #tpu.memory_space<vmem>>, %arg5: memref<8x1xf32, #tpu.memory_space<vmem>>, %arg6: memref<8x128xf32, #tpu.memory_space<vmem>>) attributes {dimension_semantics = [#tpu.dimension_semantics<parallel>], iteration_bounds = array<i64: 1>, scalar_prefetch = 0 : i64, scratch_operands = 0 : i64, tpu.core_type = #tpu.core_type<tc>, window_params = [{transform_indices = @transform_0, window_bounds = array<i64: 36, 32768>}, {pipeline_mode = #tpu.pipeline_mode<synchronous>, transform_indices = @transform_1, window_bounds = array<i64: 8, 36>}, {pipeline_mode = #tpu.pipeline_mode<synchronous>, transform_indices = @transform_2, window_bounds = array<i64: 8, 1>}, {pipeline_mode = #tpu.pipeline_mode<synchronous>, transform_indices = @transform_3, window_bounds = array<i64: 8, 8>}, {pipeline_mode = #tpu.pipeline_mode<synchronous>, transform_indices = @transform_4, window_bounds = array<i64: 8, 1>}, {transform_indices = @transform_5, window_bounds = array<i64: 8, 128>}]} {
    %c0 = arith.constant 0 : index
    %c0_0 = arith.constant 0 : index
    %0 = vector.load %arg2[%c0, %c0_0] : memref<8x36xbf16, #tpu.memory_space<vmem>>, vector<8x36xbf16>
    %c0_1 = arith.constant 0 : index
    %c0_2 = arith.constant 0 : index
    %1 = vector.load %arg1[%c0_1, %c0_2] : memref<36x32768xbf16, #tpu.memory_space<vmem>>, vector<36x32768xbf16>
    %cst = arith.constant dense<0.000000e+00> : vector<8x32768xf32>
    %2 = tpu.matmul %0, %1, %cst {dimension_numbers = #tpu.dot_dimension_numbers<[1], [0], [0], [1], [0, 0, 1, 1], [], []>} : vector<8x36xbf16>, vector<36x32768xbf16>, vector<8x32768xf32> -> vector<8x32768xf32>
    %c0_3 = arith.constant 0 : index
    %c0_4 = arith.constant 0 : index
    %3 = vector.load %arg3[%c0_3, %c0_4] : memref<8x1xf32, #tpu.memory_space<vmem>>, vector<8x1xf32>
    %4 = vector.broadcast %3 : vector<8x1xf32> to vector<8x32768xf32>
    %5 = arith.addf %2, %4 : vector<8x32768xf32>
    %cst_5 = arith.constant 0.000000e+00 : f32
    %6 = vector.broadcast %cst_5 : f32 to vector<8x32768xf32>
    %7 = arith.maximumf %5, %6 : vector<8x32768xf32>
    %8 = vector.extract_strided_slice %7 {offsets = [0, 0], sizes = [8, 16384], strides = [1, 1]} : vector<8x32768xf32> to vector<8x16384xf32>
    %9 = vector.extract_strided_slice %7 {offsets = [0, 16384], sizes = [8, 16384], strides = [1, 1]} : vector<8x32768xf32> to vector<8x16384xf32>
    %10 = arith.addf %8, %9 : vector<8x16384xf32>
    %11 = vector.extract_strided_slice %10 {offsets = [0, 0], sizes = [8, 8192], strides = [1, 1]} : vector<8x16384xf32> to vector<8x8192xf32>
    %12 = vector.extract_strided_slice %10 {offsets = [0, 8192], sizes = [8, 8192], strides = [1, 1]} : vector<8x16384xf32> to vector<8x8192xf32>
    %13 = arith.addf %11, %12 : vector<8x8192xf32>
    %14 = vector.extract_strided_slice %13 {offsets = [0, 0], sizes = [8, 4096], strides = [1, 1]} : vector<8x8192xf32> to vector<8x4096xf32>
    %15 = vector.extract_strided_slice %13 {offsets = [0, 4096], sizes = [8, 4096], strides = [1, 1]} : vector<8x8192xf32> to vector<8x4096xf32>
    %16 = arith.addf %14, %15 : vector<8x4096xf32>
    %17 = vector.extract_strided_slice %16 {offsets = [0, 0], sizes = [8, 2048], strides = [1, 1]} : vector<8x4096xf32> to vector<8x2048xf32>
    %18 = vector.extract_strided_slice %16 {offsets = [0, 2048], sizes = [8, 2048], strides = [1, 1]} : vector<8x4096xf32> to vector<8x2048xf32>
    %19 = arith.addf %17, %18 : vector<8x2048xf32>
    %20 = vector.extract_strided_slice %19 {offsets = [0, 0], sizes = [8, 1024], strides = [1, 1]} : vector<8x2048xf32> to vector<8x1024xf32>
    %21 = vector.extract_strided_slice %19 {offsets = [0, 1024], sizes = [8, 1024], strides = [1, 1]} : vector<8x2048xf32> to vector<8x1024xf32>
    %22 = arith.addf %20, %21 : vector<8x1024xf32>
    %23 = vector.extract_strided_slice %22 {offsets = [0, 0], sizes = [8, 512], strides = [1, 1]} : vector<8x1024xf32> to vector<8x512xf32>
    %24 = vector.extract_strided_slice %22 {offsets = [0, 512], sizes = [8, 512], strides = [1, 1]} : vector<8x1024xf32> to vector<8x512xf32>
    %25 = arith.addf %23, %24 : vector<8x512xf32>
    %26 = vector.extract_strided_slice %25 {offsets = [0, 0], sizes = [8, 256], strides = [1, 1]} : vector<8x512xf32> to vector<8x256xf32>
    %27 = vector.extract_strided_slice %25 {offsets = [0, 256], sizes = [8, 256], strides = [1, 1]} : vector<8x512xf32> to vector<8x256xf32>
    %28 = arith.addf %26, %27 : vector<8x256xf32>
    %29 = vector.extract_strided_slice %28 {offsets = [0, 0], sizes = [8, 128], strides = [1, 1]} : vector<8x256xf32> to vector<8x128xf32>
    %30 = vector.extract_strided_slice %28 {offsets = [0, 128], sizes = [8, 128], strides = [1, 1]} : vector<8x256xf32> to vector<8x128xf32>
    %31 = arith.addf %29, %30 : vector<8x128xf32>
    %c0_6 = arith.constant 0 : index
    %c0_7 = arith.constant 0 : index
    %32 = vector.load %arg4[%c0_6, %c0_7] : memref<8x8xf32, #tpu.memory_space<vmem>>, vector<8x8xf32>
    %cst_8 = arith.constant dense<0.000000e+00> : vector<8x128xf32>
    %33 = tpu.matmul %32, %31, %cst_8 {dimension_numbers = #tpu.dot_dimension_numbers<[1], [0], [0], [1], [0, 0, 1, 1], [], []>} : vector<8x8xf32>, vector<8x128xf32>, vector<8x128xf32> -> vector<8x128xf32>
    %c0_9 = arith.constant 0 : index
    %c0_10 = arith.constant 0 : index
    %34 = vector.load %arg5[%c0_9, %c0_10] : memref<8x1xf32, #tpu.memory_space<vmem>>, vector<8x1xf32>
    %35 = vector.broadcast %34 : vector<8x1xf32> to vector<8x128xf32>
    %36 = arith.addf %33, %35 : vector<8x128xf32>
    %c0_11 = arith.constant 0 : index
    %c0_12 = arith.constant 0 : index
    %37 = vector.load %arg6[%c0_11, %c0_12] : memref<8x128xf32, #tpu.memory_space<vmem>>, vector<8x128xf32>
    tpu.vector_store %arg6[%c0_11, %c0_12], %36 {strides = array<i32>} : memref<8x128xf32, #tpu.memory_space<vmem>>, vector<8x128xf32>,
    return
  }
  func.func @transform_0(%arg0: i32) -> (i32, i32) {
    %c0_i32 = arith.constant 0 : i32
    %c0_i32_0 = arith.constant 0 : i32
    return %c0_i32, %arg0 : i32, i32
  }
  func.func @transform_1(%arg0: i32) -> (i32, i32) {
    %c0_i32 = arith.constant 0 : i32
    %c0_i32_0 = arith.constant 0 : i32
    %c0_i32_1 = arith.constant 0 : i32
    return %c0_i32, %c0_i32_0 : i32, i32
  }
  func.func @transform_2(%arg0: i32) -> (i32, i32) {
    %c0_i32 = arith.constant 0 : i32
    %c0_i32_0 = arith.constant 0 : i32
    %c0_i32_1 = arith.constant 0 : i32
    return %c0_i32, %c0_i32_0 : i32, i32
  }
  func.func @transform_3(%arg0: i32) -> (i32, i32) {
    %c0_i32 = arith.constant 0 : i32
    %c0_i32_0 = arith.constant 0 : i32
    %c0_i32_1 = arith.constant 0 : i32
    return %c0_i32, %c0_i32_0 : i32, i32
  }
  func.func @transform_4(%arg0: i32) -> (i32, i32) {
    %c0_i32 = arith.constant 0 : i32
    %c0_i32_0 = arith.constant 0 : i32
    %c0_i32_1 = arith.constant 0 : i32
    return %c0_i32, %c0_i32_0 : i32, i32
  }
  func.func @transform_5(%arg0: i32) -> (i32, i32) {
    %c0_i32 = arith.constant 0 : i32
    %c0_i32_0 = arith.constant 0 : i32
    return %c0_i32, %arg0 : i32, i32
  }
}

</mosaic_0001>

<bundles_post_ra>
// kernel: tpu_custom_call.1
= control target key start
LH: loop header
LB: loop body
LE: loop exit
PB: predicated region body
PF: predicated region fallthrough
CT: control target
= control target key end

     0   :  { %10 = vsyncpa [#allocation3], 0  ;;  %s13645_s0 = inlined_call_operand.hbm [shape: bf16[36,32768], index: 0, kind: input, shape index: {}]   ;;  %s13646_s1 = inlined_call_operand.hbm [shape: bf16[8,36], index: 1, kind: input, shape index: {}]   ;;  %s13647_s2 = inlined_call_operand.vmem [shape: f32[8,1], index: 2, kind: input, shape index: {}]   ;;  %s13648_s3 = inlined_call_operand.hbm [shape: f32[8,8], index: 3, kind: input, shape index: {}]   ;;  %s13649_s4 = inlined_call_operand.vmem [shape: f32[8,1], index: 4, kind: input, shape index: {}]   ;;  %s13650_s5 = inlined_call_operand.hbm [shape: f32[8,128], index: 5, kind: output, shape index: {}]  }
   0x1   :  { %11 = vsyncpa [#allocation6], 0 }
   0x2   :  { %12 = vsyncpa [#allocation4], 0  ;;  %s11926_s18 = smov [#allocation5]   ;;  %s11927_s20 = smov [#allocation2]  }
   0x3   :  { %s31_s19 = sshll.u32 %s11926_s18, 4  ;;  %s18_s21 = sshll.u32 %s11927_s20, 4  ;;  %s32_s19 = int_to_ptr.vmem [resolvable:$true] %s31_s19  ;;  %s19_s21 = int_to_ptr.vmem [resolvable:$true] %s18_s21 }
   0x4   :  { %s11848_s22 = scalar_lea.vmem %s32_s19, 64  ;;  %p11853_p1 = scmp.lt.s32.totalorder %s32_s19, %s32_s19 }
   0x5   :  { %p11849_p0 = scmp.ne.s32.totalorder %s32_s19, %s11848_s22  ;;  %p11854_p2 = scmp.lt.s32.totalorder %s11848_s22, %s11848_s22 }
   0x7   :  { %p11855_p3 = por %p11854_p2, %p11853_p1 }
   0x9   :  { %p11856_p4 = pnand %p11855_p3, %p11849_p0 }
   0xb   :  { %11859 = shalt.err (!%p11856_p4)
}
   0xc   :  { %34 = dma.hbm_to_vmem [thread:$0]  %s13646_s1, 64, %s32_s19, [#allocation6]  }
   0xd   :  { %s11868_s25 = scalar_lea.vmem %s19_s21, 81920  ;;  %p11873_p6 = scmp.lt.s32.totalorder %s19_s21, %s19_s21 }
   0xe   :  { %p11869_p5 = scmp.ne.s32.totalorder %s19_s21, %s11868_s25  ;;  %p11874_p7 = scmp.lt.s32.totalorder %s11868_s25, %s11868_s25 }
  0x10   :  { %p11875_p8 = por %p11874_p7, %p11873_p6 }
  0x12   :  { %p11876_p9 = pnand %p11875_p8, %p11869_p5 }
  0x14   :  { %11879 = shalt.err (!%p11876_p9)
}
  0x15   :  { %s11928_s26 = smov 16384   ;;  %s11929_s27 = smov 1024  }
  0x16   :  { %24 = dma.hbm_to_vmem [thread:$0]  %s13645_s0, 81920, %s19_s21, [#allocation3], %s11928_s26, %s11928_s26, %s11929_s27  }
  0x17   :  { %s11930_s30 = smov [#allocation7]  }
  0x18   :  { %s43_s6 = sshll.u32 %s11930_s30, 4  ;;  %s44_s6 = int_to_ptr.vmem [resolvable:$true] %s43_s6 }
  0x19   :  { %s11888_s7 = scalar_lea.vmem %s44_s6, 128  ;;  %p11893_p11 = scmp.lt.s32.totalorder %s44_s6, %s44_s6 }
  0x1a   :  { %p11889_p10 = scmp.ne.s32.totalorder %s44_s6, %s11888_s7  ;;  %p11894_p12 = scmp.lt.s32.totalorder %s11888_s7, %s11888_s7 }
  0x1c   :  { %p11895_p13 = por %p11894_p12, %p11893_p11 }
  0x1e   :  { %p11896_p0 = pnand %p11895_p13, %p11889_p10 }
  0x20   :  { %11899 = shalt.err (!%p11896_p0)
}
  0x21   :  { %46 = dma.hbm_to_vmem [thread:$0]  %s13648_s3, 128, %s44_s6, [#allocation6]  }
  0x22   :  { %11920 = dma.done.wait [#allocation3], 81920  }
  0x23   :  { %11921 = vsyncadd [#allocation3], 4294885376 }
  0x24   :  { %11922 = dma.done.wait [#allocation6], 192  }
  0x25   :  { %11923 = vsyncadd [#allocation6], 4294967104  ;;  %v13651_v0 = vmov 0   ;;  %v572_v1 = vld [vmem:[#allocation2 + $0x1000] sm:$0x33]  ;;  %vm3910_vm0 = vcmask 1041408  }
  0x26   :  { %4711 = vmatprep.mubr.bf16.mxu0 %v13651_v0  ;;  %4752 = vmatprep.mubr.bf16.mxu1 %v13651_v0  ;;  %v573_v2 = vld [vmem:[#allocation2 + $0x1008] sm:$0x33]  ;;  %v316_v3 = vld [vmem:[#allocation2 + $0x800] sm:$0xff]  ;;  %v11049_v4 = vcombine.high %v572_v1, %v572_v1  ;;  %v11048_v6 = vcombine.low %v572_v1, %v572_v1  ;;  %v574_v23 = vld [vmem:[#allocation2 + $0x1010] sm:$0x33]  ;;  %vm3906_vm1 = vcmask 293888  }
  0x27   :  { %11577 = vset.pattern.permute.xlu0 %v13651_v0  ;;  %v11051_v5 = vcombine.high %v573_v2, %v573_v2  ;;  %v11050_v7 = vcombine.low %v573_v2, %v573_v2  ;;  %v444_v8 = vld [vmem:[#allocation2 + $0xc00] sm:$0xff]  ;;  %v317_v9 = vld [vmem:[#allocation2 + $0x808] sm:$0xff]  ;;  %v575_v24 = vld [vmem:[#allocation2 + $0x1018] sm:$0x33]  ;;  %v11053_v27 = vcombine.high %v574_v23, %v574_v23  ;;  %v11052_v29 = vcombine.low %v574_v23, %v574_v23 }
  0x28   :  { %v445_v10 = vld [vmem:[#allocation2 + $0xc08] sm:$0xff]  ;;  %v10793_v11 = vcombine.high %v316_v3, %v444_v8  ;;  %v60_v13 = vld [vmem:[#allocation2] sm:$0xff]  ;;  %11304 = vmatprep.subr.msk.bf16.mxu0 %vm3910_vm0, %v11049_v4  ;;  %v3912_v16 = vsel %vm3910_vm0, %v11048_v6, 0  ;;  %v10792_v19 = vcombine.low %v316_v3, %v444_v8  ;;  %v11055_v28 = vcombine.high %v575_v24, %v575_v24  ;;  %v318_v31 = vld [vmem:[#allocation2 + $0x810] sm:$0xff] }
  0x29   :  { %v10795_v12 = vcombine.high %v317_v9, %v445_v10  ;;  %v188_v14 = vld [vmem:[#allocation2 + $0x400] sm:$0xff]  ;;  %v61_v15 = vld [vmem:[#allocation2 + $0x8] sm:$0xff]  ;;  %11306 = vmatprep.subr.msk.bf16.mxu1 %vm3910_vm0, %v11051_v5  ;;  %v3918_v17 = vsel %vm3910_vm0, %v11050_v7, 0  ;;  %4690 = vmatpush1.bf16.msra.mxu0 %v3912_v16  ;;  %v10794_v20 = vcombine.low %v317_v9, %v445_v10  ;;  %v11054_v30 = vcombine.low %v575_v24, %v575_v24  ;;  %v446_v32 = vld [vmem:[#allocation2 + $0xc10] sm:$0xff] }
  0x2a   :  { %v189_v18 = vld [vmem:[#allocation2 + $0x408] sm:$0xff]  ;;  %4731 = vmatpush1.bf16.msra.mxu1 %v3918_v17  ;;  %4691 = vmatprep.subr.bf16.mxu0 %v10793_v11  ;;  %v10537_v21 = vcombine.high %v60_v13, %v188_v14  ;;  %v10536_v25 = vcombine.low %v60_v13, %v188_v14  ;;  %v319_v33 = vld [vmem:[#allocation2 + $0x818] sm:$0xff]  ;;  %v11981_v35 = vld [vmem:[#allocation5] sm:$0xf]  ;;  %v3924_v36 = vsel %vm3910_vm0, %v11052_v29, 0  ;;  %v10797_v38 = vcombine.high %v318_v31, %v446_v32 }
  0x2b   :  { %4732 = vmatprep.subr.bf16.mxu1 %v10795_v12  ;;  %v10539_v22 = vcombine.high %v61_v15, %v189_v18  ;;  %v10538_v26 = vcombine.low %v61_v15, %v189_v18  ;;  %v447_v34 = vld [vmem:[#allocation2 + $0xc18] sm:$0xff]  ;;  %v3930_v37 = vsel %vm3910_vm0, %v11054_v30, 0  ;;  %v62_v40 = vld [vmem:[#allocation2 + $0x10] sm:$0xff]  ;;  %v10796_v44 = vcombine.low %v318_v31, %v446_v32  ;;  %v576_v48 = vld [vmem:[#allocation2 + $0x1020] sm:$0x33] }
  0x2c   :  { %v10799_v39 = vcombine.high %v319_v33, %v447_v34  ;;  %v190_v41 = vld [vmem:[#allocation2 + $0x410] sm:$0xff]  ;;  %v63_v42 = vld [vmem:[#allocation2 + $0x18] sm:$0xff]  ;;  %v10798_v45 = vcombine.low %v319_v33, %v447_v34  ;;  %v577_v49 = vld [vmem:[#allocation2 + $0x1028] sm:$0x33]  ;;  %v11057_v52 = vcombine.high %v576_v48, %v576_v48  ;;  %v11056_v54 = vcombine.low %v576_v48, %v576_v48 }
  0x2d   :  { %4692 = vmatpush1.bf16.msra.mxu0 %v10792_v19  ;;  %v191_v43 = vld [vmem:[#allocation2 + $0x418] sm:$0xff]  ;;  %v10541_v46 = vcombine.high %v62_v40, %v190_v41  ;;  %v10540_v50 = vcombine.low %v62_v40, %v190_v41  ;;  %v11059_v53 = vcombine.high %v577_v49, %v577_v49  ;;  %v11058_v55 = vcombine.low %v577_v49, %v577_v49  ;;  %v320_v56 = vld [vmem:[#allocation2 + $0x820] sm:$0xff]  ;;  %v321_v58 = vld [vmem:[#allocation2 + $0x828] sm:$0xff] }
  0x2e   :  { %4733 = vmatpush1.bf16.msra.mxu1 %v10794_v20  ;;  %4693 = vmatprep.subr.bf16.mxu0 %v10537_v21  ;;  %v10543_v47 = vcombine.high %v63_v42, %v191_v43  ;;  %v10542_v51 = vcombine.low %v63_v42, %v191_v43  ;;  %v448_v57 = vld [vmem:[#allocation2 + $0xc20] sm:$0xff]  ;;  %v449_v59 = vld [vmem:[#allocation2 + $0xc28] sm:$0xff]  ;;  %v3936_v61 = vsel %vm3910_vm0, %v11056_v54, 0  ;;  %v578_v10 = vld [vmem:[#allocation2 + $0x1030] sm:$0x33]  ;;  %vm11933_vm2 = vmmov 0  }
  0x2f   :  { %4734 = vmatprep.subr.bf16.mxu1 %v10539_v22  ;;  %v700_v60 = vld [vmem:[%s13647_s2] sm:$0xff]  ;;  %v3942_v62 = vsel %vm3910_vm0, %v11058_v55, 0  ;;  %v10801_v63 = vcombine.high %v320_v56, %v448_v57  ;;  %v10803_v1 = vcombine.high %v321_v58, %v449_v59  ;;  %v65_v4 = vld [vmem:[#allocation2 + $0x28] sm:$0xff]  ;;  %v10800_v6 = vcombine.low %v320_v56, %v448_v57  ;;  %v579_v11 = vld [vmem:[#allocation2 + $0x1038] sm:$0x33] }
  0x30   :  { %v64_v2 = vld [vmem:[#allocation2 + $0x20] sm:$0xff]  ;;  %v193_v5 = vld [vmem:[#allocation2 + $0x428] sm:$0xff]  ;;  %703 = vperm.xlu0 %11577, %v700_v60   ;;  %v10802_v7 = vcombine.low %v321_v58, %v449_v59  ;;  %v11061_v14 = vcombine.high %v578_v10, %v578_v10  ;;  %v11063_v15 = vcombine.high %v579_v11, %v579_v11  ;;  %v11060_v16 = vcombine.low %v578_v10, %v578_v10  ;;  %v322_v18 = vld [vmem:[#allocation2 + $0x830] sm:$0xff] }
  0x31   :  { %4694 = vmatpush1.bf16.msra.mxu0 %v10536_v25  ;;  %v192_v3 = vld [vmem:[#allocation2 + $0x420] sm:$0xff]  ;;  %v10547_v9 = vcombine.high %v65_v4, %v193_v5  ;;  %v10546_v13 = vcombine.low %v65_v4, %v193_v5  ;;  %v11062_v17 = vcombine.low %v579_v11, %v579_v11  ;;  %v450_v19 = vld [vmem:[#allocation2 + $0xc30] sm:$0xff]  ;;  %v323_v20 = vld [vmem:[#allocation2 + $0x838] sm:$0xff]  ;;  %vm10445_vm3 = vcmask 64512  }
  0x32   :  { %4735 = vmatpush1.bf16.msra.mxu1 %v10538_v26  ;;  %11308 = vmatprep.subr.msk.bf16.mxu0 %vm3910_vm0, %v11053_v27  ;;  %v10545_v8 = vcombine.high %v64_v2, %v192_v3  ;;  %v10544_v12 = vcombine.low %v64_v2, %v192_v3  ;;  %v451_v21 = vld [vmem:[#allocation2 + $0xc38] sm:$0xff]  ;;  %v3948_v22 = vsel %vm3910_vm0, %v11060_v16, 0  ;;  %v10805_v24 = vcombine.high %v322_v18, %v450_v19  ;;  %v66_v26 = vld [vmem:[#allocation2 + $0x30] sm:$0xff]  ;;  %v580_v34 = vld [vmem:[#allocation2 + $0x1040] sm:$0x33] }
  0x33   :  { %11310 = vmatprep.subr.msk.bf16.mxu1 %vm3910_vm0, %v11055_v28  ;;  %v3954_v23 = vsel %vm3910_vm0, %v11062_v17, 0  ;;  %v10807_v25 = vcombine.high %v323_v20, %v451_v21  ;;  %v194_v27 = vld [vmem:[#allocation2 + $0x430] sm:$0xff]  ;;  %v67_v28 = vld [vmem:[#allocation2 + $0x38] sm:$0xff]  ;;  %v10804_v30 = vcombine.low %v322_v18, %v450_v19  ;;  %v10806_v31 = vcombine.low %v323_v20, %v451_v21  ;;  %v324_v43 = vld [vmem:[#allocation2 + $0x840] sm:$0xff] }
  0x34   :  { %11305 = vmatmul.mubr.msk.bf16.vlgmr.msra.gmra.mxu0 %vm3906_vm1, %v11981_v35  ;;  %v195_v29 = vld [vmem:[#allocation2 + $0x438] sm:$0xff]  ;;  %v10549_v32 = vcombine.high %v66_v26, %v194_v27  ;;  %v11064_v41 = vcombine.low %v580_v34, %v580_v34  ;;  %v197_v54 = vld [vmem:[#allocation2 + $0x448] sm:$0xff]  ;;  %v582_v59 = vld [vmem:[#allocation2 + $0x1050] sm:$0x33] }
  0x35   :  { %11307 = vmatmul.mubr.msk.bf16.vlgmr.msra.gmra.mxu1 %vm3906_vm1, %v11981_v35  ;;  %4772 = vmatpush1.bf16.msra.mxu0 %v3924_v36  ;;  %v10551_v33 = vcombine.high %v67_v28, %v195_v29  ;;  %v581_v36 = vld [vmem:[#allocation2 + $0x1048] sm:$0x33]  ;;  %v583_v60 = vld [vmem:[#allocation2 + $0x1058] sm:$0x33]  ;;  %v11068_v2 = vcombine.low %v582_v59, %v582_v59  ;;  %v326_v4 = vld [vmem:[#allocation2 + $0x850] sm:$0xff] }
  0x36   :  { %4813 = vmatpush1.bf16.msra.mxu1 %v3930_v37  ;;  %4773 = vmatprep.subr.bf16.mxu0 %v10797_v38  ;;  %v10548_v37 = vcombine.low %v66_v26, %v194_v27  ;;  %v10550_v38 = vcombine.low %v67_v28, %v195_v29  ;;  %v11067_v40 = vcombine.high %v581_v36, %v581_v36  ;;  %v454_v5 = vld [vmem:[#allocation2 + $0xc50] sm:$0xff]  ;;  %v584_v20 = vld [vmem:[#allocation2 + $0x1060] sm:$0x33]  ;;  %v585_v21 = vld [vmem:[#allocation2 + $0x1068] sm:$0x33] }
  0x37   :  { %4814 = vmatprep.subr.bf16.mxu1 %v10799_v39  ;;  %4793 = vmatprep.mubr.bf16.mxu0 %v13651_v0  ;;  %v11065_v39 = vcombine.high %v580_v34, %v580_v34  ;;  %v11066_v42 = vcombine.low %v581_v36, %v581_v36  ;;  %v11070_v3 = vcombine.low %v583_v60, %v583_v60  ;;  %v328_v28 = vld [vmem:[#allocation2 + $0x860] sm:$0xff] }
  0x38   :  { %4834 = vmatprep.mubr.bf16.mxu1 %v13651_v0  ;;  %v10813_v10 = vcombine.high %v326_v4, %v454_v5  ;;  %v10812_v16 = vcombine.low %v326_v4, %v454_v5  ;;  %v11072_v26 = vcombine.low %v584_v20, %v584_v20  ;;  %v11074_v27 = vcombine.low %v585_v21, %v585_v21  ;;  %v456_v29 = vld [vmem:[#allocation2 + $0xc60] sm:$0xff] }
  0x39   :  { %4774 = vmatpush1.bf16.msra.mxu0 %v10796_v44  ;;  %v452_v44 = vld [vmem:[#allocation2 + $0xc40] sm:$0xff]  ;;  %v3966_v48 = vsel %vm3910_vm0, %v11066_v42, 0  ;;  %v10817_v34 = vcombine.high %v328_v28, %v456_v29 }
  0x3a   :  { %4815 = vmatpush1.bf16.msra.mxu1 %v10798_v45  ;;  %4775 = vmatprep.subr.bf16.mxu0 %v10541_v46  ;;  %v325_v45 = vld [vmem:[#allocation2 + $0x848] sm:$0xff]  ;;  %v10809_v49 = vcombine.high %v324_v43, %v452_v44  ;;  %v10808_v55 = vcombine.low %v324_v43, %v452_v44 }
  0x3b   :  { %4816 = vmatprep.subr.bf16.mxu1 %v10543_v47  ;;  %v453_v46 = vld [vmem:[#allocation2 + $0xc48] sm:$0xff]  ;;  %v3960_v47 = vsel %vm3910_vm0, %v11064_v41, 0  ;;  %v10816_v41 = vcombine.low %v328_v28, %v456_v29 }
  0x3c   :  { %v10810_v56 = vcombine.low %v325_v45, %v453_v46 }
  0x3d   :  { %4776 = vmatpush1.bf16.msra.mxu0 %v10540_v50  ;;  %v10811_v50 = vcombine.high %v325_v45, %v453_v46  ;;  %v586_v45 = vld [vmem:[#allocation2 + $0x1070] sm:$0x33]  ;;  %v587_v46 = vld [vmem:[#allocation2 + $0x1078] sm:$0x33] }
  0x3e   :  { %4817 = vmatpush1.bf16.msra.mxu1 %v10542_v51  ;;  %11312 = vmatprep.subr.msk.bf16.mxu0 %vm3910_vm0, %v11057_v52  ;;  %v68_v51 = vld [vmem:[#allocation2 + $0x40] sm:$0xff] }
  0x3f   :  { %11314 = vmatprep.subr.msk.bf16.mxu1 %vm3910_vm0, %v11059_v53  ;;  %v196_v52 = vld [vmem:[#allocation2 + $0x440] sm:$0xff]  ;;  %v69_v53 = vld [vmem:[#allocation2 + $0x48] sm:$0xff] }
  0x40   :  { %11309 = vmatmul.mubr.msk.bf16.vlgmr.msra.gmra.mxu0 %vm3906_vm1, %v11981_v35  ;;  %v10553_v57 = vcombine.high %v68_v51, %v196_v52  ;;  %v10555_v58 = vcombine.high %v69_v53, %v197_v54 }
  0x41   :  { %11311 = vmatmul.mubr.msk.bf16.vlgmr.msra.gmra.mxu1 %vm3906_vm1, %v11981_v35  ;;  %4854 = vmatpush1.bf16.msra.mxu0 %v3936_v61  ;;  %v10552_v61 = vcombine.low %v68_v51, %v196_v52  ;;  %v11076_v51 = vcombine.low %v586_v45, %v586_v45  ;;  %v11078_v52 = vcombine.low %v587_v46, %v587_v46 }
  0x42   :  { %4895 = vmatpush1.bf16.msra.mxu1 %v3942_v62  ;;  %4855 = vmatprep.subr.bf16.mxu0 %v10801_v63  ;;  %v10554_v62 = vcombine.low %v69_v53, %v197_v54  ;;  %v11069_v63 = vcombine.high %v582_v59, %v582_v59  ;;  %v330_v53 = vld [vmem:[#allocation2 + $0x870] sm:$0xff] }
  0x43   :  { %4896 = vmatprep.subr.bf16.mxu1 %v10803_v1  ;;  %4875 = vmatprep.mubr.bf16.mxu0 %v13651_v0  ;;  %v11071_v1 = vcombine.high %v583_v60, %v583_v60  ;;  %v458_v54 = vld [vmem:[#allocation2 + $0xc70] sm:$0xff] }
  0x44   :  { %4916 = vmatprep.mubr.bf16.mxu1 %v13651_v0  ;;  %v10821_v59 = vcombine.high %v330_v53, %v458_v54 }
  0x45   :  { %4856 = vmatpush1.bf16.msra.mxu0 %v10800_v6  ;;  %v327_v6 = vld [vmem:[#allocation2 + $0x858] sm:$0xff] }
  0x46   :  { %4897 = vmatpush1.bf16.msra.mxu1 %v10802_v7  ;;  %4857 = vmatprep.subr.bf16.mxu0 %v10545_v8  ;;  %v455_v7 = vld [vmem:[#allocation2 + $0xc58] sm:$0xff]  ;;  %v3972_v8 = vsel %vm3910_vm0, %v11068_v2, 0  ;;  %v10820_v2 = vcombine.low %v330_v53, %v458_v54 }
  0x47   :  { %4898 = vmatprep.subr.bf16.mxu1 %v10547_v9  ;;  %v3978_v9 = vsel %vm3910_vm0, %v11070_v3, 0  ;;  %v10815_v11 = vcombine.high %v327_v6, %v455_v7  ;;  %v10814_v17 = vcombine.low %v327_v6, %v455_v7  ;;  %v588_v6 = vld [vmem:[#allocation2 + $0x1080] sm:$0x33]  ;;  %v589_v7 = vld [vmem:[#allocation2 + $0x1088] sm:$0x33] }
  0x49   :  { %4858 = vmatpush1.bf16.msra.mxu0 %v10544_v12  ;;  %v70_v12 = vld [vmem:[#allocation2 + $0x50] sm:$0xff] }
  0x4a   :  { %4899 = vmatpush1.bf16.msra.mxu1 %v10546_v13  ;;  %11316 = vmatprep.subr.msk.bf16.mxu0 %vm3910_vm0, %v11061_v14  ;;  %v198_v13 = vld [vmem:[#allocation2 + $0x450] sm:$0xff]  ;;  %v71_v14 = vld [vmem:[#allocation2 + $0x58] sm:$0xff] }
  0x4b   :  { %11318 = vmatprep.subr.msk.bf16.mxu1 %vm3910_vm0, %v11063_v15  ;;  %v199_v15 = vld [vmem:[#allocation2 + $0x458] sm:$0xff]  ;;  %v10557_v18 = vcombine.high %v70_v12, %v198_v13 }
  0x4c   :  { %11313 = vmatmul.mubr.msk.bf16.vlgmr.msra.gmra.mxu0 %vm3906_vm1, %v11981_v35  ;;  %v10559_v19 = vcombine.high %v71_v14, %v199_v15 }
  0x4d   :  { %11315 = vmatmul.mubr.msk.bf16.vlgmr.msra.gmra.mxu1 %vm3906_vm1, %v11981_v35  ;;  %4936 = vmatpush1.bf16.msra.mxu0 %v3948_v22  ;;  %v10556_v22 = vcombine.low %v70_v12, %v198_v13  ;;  %v11080_v12 = vcombine.low %v588_v6, %v588_v6  ;;  %v11082_v13 = vcombine.low %v589_v7, %v589_v7 }
  0x4e   :  { %4977 = vmatpush1.bf16.msra.mxu1 %v3954_v23  ;;  %4937 = vmatprep.subr.bf16.mxu0 %v10805_v24  ;;  %v10558_v23 = vcombine.low %v71_v14, %v199_v15  ;;  %v11073_v24 = vcombine.high %v584_v20, %v584_v20  ;;  %v332_v14 = vld [vmem:[#allocation2 + $0x880] sm:$0xff] }
  0x4f   :  { %4978 = vmatprep.subr.bf16.mxu1 %v10807_v25  ;;  %4957 = vmatprep.mubr.bf16.mxu0 %v13651_v0  ;;  %v11075_v25 = vcombine.high %v585_v21, %v585_v21  ;;  %v460_v15 = vld [vmem:[#allocation2 + $0xc80] sm:$0xff] }
  0x50   :  { %4998 = vmatprep.mubr.bf16.mxu1 %v13651_v0  ;;  %v10825_v20 = vcombine.high %v332_v14, %v460_v15 }
  0x51   :  { %4938 = vmatpush1.bf16.msra.mxu0 %v10804_v30  ;;  %v329_v30 = vld [vmem:[#allocation2 + $0x868] sm:$0xff] }
  0x52   :  { %4979 = vmatpush1.bf16.msra.mxu1 %v10806_v31  ;;  %4939 = vmatprep.subr.bf16.mxu0 %v10549_v32  ;;  %v457_v31 = vld [vmem:[#allocation2 + $0xc68] sm:$0xff]  ;;  %v3984_v32 = vsel %vm3910_vm0, %v11072_v26, 0  ;;  %v10824_v26 = vcombine.low %v332_v14, %v460_v15 }
  0x53   :  { %4980 = vmatprep.subr.bf16.mxu1 %v10551_v33  ;;  %v3990_v33 = vsel %vm3910_vm0, %v11074_v27, 0  ;;  %v10819_v36 = vcombine.high %v329_v30, %v457_v31  ;;  %v10818_v42 = vcombine.low %v329_v30, %v457_v31  ;;  %v590_v30 = vld [vmem:[#allocation2 + $0x1090] sm:$0x33]  ;;  %v591_v31 = vld [vmem:[#allocation2 + $0x1098] sm:$0x33] }
  0x55   :  { %4940 = vmatpush1.bf16.msra.mxu0 %v10548_v37  ;;  %v72_v37 = vld [vmem:[#allocation2 + $0x60] sm:$0xff] }
  0x56   :  { %4981 = vmatpush1.bf16.msra.mxu1 %v10550_v38  ;;  %11320 = vmatprep.subr.msk.bf16.mxu0 %vm3910_vm0, %v11065_v39  ;;  %v200_v38 = vld [vmem:[#allocation2 + $0x460] sm:$0xff]  ;;  %v73_v39 = vld [vmem:[#allocation2 + $0x68] sm:$0xff] }
  0x57   :  { %11322 = vmatprep.subr.msk.bf16.mxu1 %vm3910_vm0, %v11067_v40  ;;  %v201_v40 = vld [vmem:[#allocation2 + $0x468] sm:$0xff]  ;;  %v10561_v43 = vcombine.high %v72_v37, %v200_v38 }
  0x58   :  { %11317 = vmatmul.mubr.msk.bf16.vlgmr.msra.gmra.mxu0 %vm3906_vm1, %v11981_v35  ;;  %v10563_v44 = vcombine.high %v73_v39, %v201_v40 }
  0x59   :  { %11319 = vmatmul.mubr.msk.bf16.vlgmr.msra.gmra.mxu1 %vm3906_vm1, %v11981_v35  ;;  %5018 = vmatpush1.bf16.msra.mxu0 %v3960_v47  ;;  %v10560_v47 = vcombine.low %v72_v37, %v200_v38  ;;  %v11084_v37 = vcombine.low %v590_v30, %v590_v30  ;;  %v11086_v38 = vcombine.low %v591_v31, %v591_v31 }
  0x5a   :  { %5059 = vmatpush1.bf16.msra.mxu1 %v3966_v48  ;;  %5019 = vmatprep.subr.bf16.mxu0 %v10809_v49  ;;  %v10562_v48 = vcombine.low %v73_v39, %v201_v40  ;;  %v11077_v49 = vcombine.high %v586_v45, %v586_v45  ;;  %v334_v39 = vld [vmem:[#allocation2 + $0x890] sm:$0xff] }
  0x5b   :  { %5060 = vmatprep.subr.bf16.mxu1 %v10811_v50  ;;  %5039 = vmatprep.mubr.bf16.mxu0 %v13651_v0  ;;  %v11079_v50 = vcombine.high %v587_v46, %v587_v46  ;;  %v462_v40 = vld [vmem:[#allocation2 + $0xc90] sm:$0xff] }
  0x5c   :  { %5080 = vmatprep.mubr.bf16.mxu1 %v13651_v0  ;;  %v10829_v45 = vcombine.high %v334_v39, %v462_v40 }
  0x5d   :  { %5020 = vmatpush1.bf16.msra.mxu0 %v10808_v55  ;;  %v331_v55 = vld [vmem:[#allocation2 + $0x878] sm:$0xff] }
  0x5e   :  { %5061 = vmatpush1.bf16.msra.mxu1 %v10810_v56  ;;  %5021 = vmatprep.subr.bf16.mxu0 %v10553_v57  ;;  %v459_v56 = vld [vmem:[#allocation2 + $0xc78] sm:$0xff]  ;;  %v3996_v57 = vsel %vm3910_vm0, %v11076_v51, 0  ;;  %v10828_v51 = vcombine.low %v334_v39, %v462_v40 }
  0x5f   :  { %5062 = vmatprep.subr.bf16.mxu1 %v10555_v58  ;;  %v4002_v58 = vsel %vm3910_vm0, %v11078_v52, 0  ;;  %v10823_v60 = vcombine.high %v331_v55, %v459_v56  ;;  %v10822_v3 = vcombine.low %v331_v55, %v459_v56  ;;  %v592_v55 = vld [vmem:[#allocation2 + $0x10a0] sm:$0x33]  ;;  %v593_v56 = vld [vmem:[#allocation2 + $0x10a8] sm:$0x33] }
  0x61   :  { %5022 = vmatpush1.bf16.msra.mxu0 %v10552_v61  ;;  %v74_v61 = vld [vmem:[#allocation2 + $0x70] sm:$0xff] }
  0x62   :  { %5063 = vmatpush1.bf16.msra.mxu1 %v10554_v62  ;;  %11324 = vmatprep.subr.msk.bf16.mxu0 %vm3910_vm0, %v11069_v63  ;;  %v202_v62 = vld [vmem:[#allocation2 + $0x470] sm:$0xff]  ;;  %v75_v63 = vld [vmem:[#allocation2 + $0x78] sm:$0xff] }
  0x63   :  { %11326 = vmatprep.subr.msk.bf16.mxu1 %vm3910_vm0, %v11071_v1  ;;  %v203_v1 = vld [vmem:[#allocation2 + $0x478] sm:$0xff]  ;;  %v10565_v4 = vcombine.high %v74_v61, %v202_v62 }
  0x64   :  { %11321 = vmatmul.mubr.msk.bf16.vlgmr.msra.gmra.mxu0 %vm3906_vm1, %v11981_v35  ;;  %v10567_v5 = vcombine.high %v75_v63, %v203_v1 }
  0x65   :  { %11323 = vmatmul.mubr.msk.bf16.vlgmr.msra.gmra.mxu1 %vm3906_vm1, %v11981_v35  ;;  %5100 = vmatpush1.bf16.msra.mxu0 %v3972_v8  ;;  %v10564_v8 = vcombine.low %v74_v61, %v202_v62  ;;  %v11088_v61 = vcombine.low %v592_v55, %v592_v55  ;;  %v11090_v62 = vcombine.low %v593_v56, %v593_v56 }
  0x66   :  { %5141 = vmatpush1.bf16.msra.mxu1 %v3978_v9  ;;  %5101 = vmatprep.subr.bf16.mxu0 %v10813_v10  ;;  %v10566_v9 = vcombine.low %v75_v63, %v203_v1  ;;  %v11081_v10 = vcombine.high %v588_v6, %v588_v6  ;;  %v336_v63 = vld [vmem:[#allocation2 + $0x8a0] sm:$0xff] }
  0x67   :  { %5142 = vmatprep.subr.bf16.mxu1 %v10815_v11  ;;  %5121 = vmatprep.mubr.bf16.mxu0 %v13651_v0  ;;  %v11083_v11 = vcombine.high %v589_v7, %v589_v7  ;;  %v464_v1 = vld [vmem:[#allocation2 + $0xca0] sm:$0xff] }
  0x68   :  { %5162 = vmatprep.mubr.bf16.mxu1 %v13651_v0  ;;  %v10833_v6 = vcombine.high %v336_v63, %v464_v1 }
  0x69   :  { %5102 = vmatpush1.bf16.msra.mxu0 %v10812_v16  ;;  %v333_v16 = vld [vmem:[#allocation2 + $0x888] sm:$0xff] }
  0x6a   :  { %5143 = vmatpush1.bf16.msra.mxu1 %v10814_v17  ;;  %5103 = vmatprep.subr.bf16.mxu0 %v10557_v18  ;;  %v461_v17 = vld [vmem:[#allocation2 + $0xc88] sm:$0xff]  ;;  %v4008_v18 = vsel %vm3910_vm0, %v11080_v12, 0  ;;  %v10832_v12 = vcombine.low %v336_v63, %v464_v1 }
  0x6b   :  { %5144 = vmatprep.subr.bf16.mxu1 %v10559_v19  ;;  %v4014_v19 = vsel %vm3910_vm0, %v11082_v13, 0  ;;  %v10827_v21 = vcombine.high %v333_v16, %v461_v17  ;;  %v10826_v27 = vcombine.low %v333_v16, %v461_v17  ;;  %v594_v16 = vld [vmem:[#allocation2 + $0x10b0] sm:$0x33]  ;;  %v595_v17 = vld [vmem:[#allocation2 + $0x10b8] sm:$0x33] }
  0x6d   :  { %5104 = vmatpush1.bf16.msra.mxu0 %v10556_v22  ;;  %v76_v22 = vld [vmem:[#allocation2 + $0x80] sm:$0xff] }
  0x6e   :  { %5145 = vmatpush1.bf16.msra.mxu1 %v10558_v23  ;;  %11328 = vmatprep.subr.msk.bf16.mxu0 %vm3910_vm0, %v11073_v24  ;;  %v204_v23 = vld [vmem:[#allocation2 + $0x480] sm:$0xff]  ;;  %v77_v24 = vld [vmem:[#allocation2 + $0x88] sm:$0xff] }
  0x6f   :  { %11330 = vmatprep.subr.msk.bf16.mxu1 %vm3910_vm0, %v11075_v25  ;;  %v205_v25 = vld [vmem:[#allocation2 + $0x488] sm:$0xff]  ;;  %v10569_v28 = vcombine.high %v76_v22, %v204_v23 }
  0x70   :  { %11325 = vmatmul.mubr.msk.bf16.vlgmr.msra.gmra.mxu0 %vm3906_vm1, %v11981_v35  ;;  %v10571_v29 = vcombine.high %v77_v24, %v205_v25 }
  0x71   :  { %11327 = vmatmul.mubr.msk.bf16.vlgmr.msra.gmra.mxu1 %vm3906_vm1, %v11981_v35  ;;  %5182 = vmatpush1.bf16.msra.mxu0 %v3984_v32  ;;  %v10568_v32 = vcombine.low %v76_v22, %v204_v23  ;;  %v11092_v22 = vcombine.low %v594_v16, %v594_v16  ;;  %v11094_v23 = vcombine.low %v595_v17, %v595_v17 }
  0x72   :  { %5223 = vmatpush1.bf16.msra.mxu1 %v3990_v33  ;;  %5183 = vmatprep.subr.bf16.mxu0 %v10817_v34  ;;  %v10570_v33 = vcombine.low %v77_v24, %v205_v25  ;;  %v11085_v34 = vcombine.high %v590_v30, %v590_v30  ;;  %v338_v24 = vld [vmem:[#allocation2 + $0x8b0] sm:$0xff] }
  0x73   :  { %5224 = vmatprep.subr.bf16.mxu1 %v10819_v36  ;;  %5203 = vmatprep.mubr.bf16.mxu0 %v13651_v0  ;;  %v11087_v36 = vcombine.high %v591_v31, %v591_v31  ;;  %v466_v25 = vld [vmem:[#allocation2 + $0xcb0] sm:$0xff] }
  0x74   :  { %5244 = vmatprep.mubr.bf16.mxu1 %v13651_v0  ;;  %v10837_v30 = vcombine.high %v338_v24, %v466_v25 }
  0x75   :  { %5184 = vmatpush1.bf16.msra.mxu0 %v10816_v41  ;;  %v335_v41 = vld [vmem:[#allocation2 + $0x898] sm:$0xff] }
  0x76   :  { %5225 = vmatpush1.bf16.msra.mxu1 %v10818_v42  ;;  %5185 = vmatprep.subr.bf16.mxu0 %v10561_v43  ;;  %v463_v42 = vld [vmem:[#allocation2 + $0xc98] sm:$0xff]  ;;  %v4020_v43 = vsel %vm3910_vm0, %v11084_v37, 0  ;;  %v10836_v37 = vcombine.low %v338_v24, %v466_v25 }
  0x77   :  { %5226 = vmatprep.subr.bf16.mxu1 %v10563_v44  ;;  %v4026_v44 = vsel %vm3910_vm0, %v11086_v38, 0  ;;  %v10831_v46 = vcombine.high %v335_v41, %v463_v42  ;;  %v10830_v52 = vcombine.low %v335_v41, %v463_v42  ;;  %v596_v41 = vld [vmem:[#allocation2 + $0x10c0] sm:$0x33]  ;;  %v597_v42 = vld [vmem:[#allocation2 + $0x10c8] sm:$0x33] }
  0x79   :  { %5186 = vmatpush1.bf16.msra.mxu0 %v10560_v47  ;;  %v78_v47 = vld [vmem:[#allocation2 + $0x90] sm:$0xff] }
  0x7a   :  { %5227 = vmatpush1.bf16.msra.mxu1 %v10562_v48  ;;  %11332 = vmatprep.subr.msk.bf16.mxu0 %vm3910_vm0, %v11077_v49  ;;  %v206_v48 = vld [vmem:[#allocation2 + $0x490] sm:$0xff]  ;;  %v79_v49 = vld [vmem:[#allocation2 + $0x98] sm:$0xff] }
  0x7b   :  { %11334 = vmatprep.subr.msk.bf16.mxu1 %vm3910_vm0, %v11079_v50  ;;  %v207_v50 = vld [vmem:[#allocation2 + $0x498] sm:$0xff]  ;;  %v10573_v53 = vcombine.high %v78_v47, %v206_v48 }
  0x7c   :  { %11329 = vmatmul.mubr.msk.bf16.vlgmr.msra.gmra.mxu0 %vm3906_vm1, %v11981_v35  ;;  %v10575_v54 = vcombine.high %v79_v49, %v207_v50 }
  0x7d   :  { %11331 = vmatmul.mubr.msk.bf16.vlgmr.msra.gmra.mxu1 %vm3906_vm1, %v11981_v35  ;;  %5264 = vmatpush1.bf16.msra.mxu0 %v3996_v57  ;;  %v10572_v57 = vcombine.low %v78_v47, %v206_v48  ;;  %v11096_v47 = vcombine.low %v596_v41, %v596_v41  ;;  %v11098_v48 = vcombine.low %v597_v42, %v597_v42 }
  0x7e   :  { %5305 = vmatpush1.bf16.msra.mxu1 %v4002_v58  ;;  %5265 = vmatprep.subr.bf16.mxu0 %v10821_v59  ;;  %v10574_v58 = vcombine.low %v79_v49, %v207_v50  ;;  %v11089_v59 = vcombine.high %v592_v55, %v592_v55  ;;  %v340_v49 = vld [vmem:[#allocation2 + $0x8c0] sm:$0xff] }
  0x7f   :  { %5306 = vmatprep.subr.bf16.mxu1 %v10823_v60  ;;  %5285 = vmatprep.mubr.bf16.mxu0 %v13651_v0  ;;  %v11091_v60 = vcombine.high %v593_v56, %v593_v56  ;;  %v468_v50 = vld [vmem:[#allocation2 + $0xcc0] sm:$0xff] }
  0x80   :  { %5326 = vmatprep.mubr.bf16.mxu1 %v13651_v0  ;;  %v10841_v55 = vcombine.high %v340_v49, %v468_v50 }
  0x81   :  { %5266 = vmatpush1.bf16.msra.mxu0 %v10820_v2  ;;  %v337_v2 = vld [vmem:[#allocation2 + $0x8a8] sm:$0xff] }
  0x82   :  { %5307 = vmatpush1.bf16.msra.mxu1 %v10822_v3  ;;  %5267 = vmatprep.subr.bf16.mxu0 %v10565_v4  ;;  %v465_v3 = vld [vmem:[#allocation2 + $0xca8] sm:$0xff]  ;;  %v4032_v4 = vsel %vm3910_vm0, %v11088_v61, 0  ;;  %v10840_v61 = vcombine.low %v340_v49, %v468_v50 }
  0x83   :  { %5308 = vmatprep.subr.bf16.mxu1 %v10567_v5  ;;  %v4038_v5 = vsel %vm3910_vm0, %v11090_v62, 0  ;;  %v10835_v7 = vcombine.high %v337_v2, %v465_v3  ;;  %v10834_v13 = vcombine.low %v337_v2, %v465_v3  ;;  %v598_v2 = vld [vmem:[#allocation2 + $0x10d0] sm:$0x33]  ;;  %v599_v3 = vld [vmem:[#allocation2 + $0x10d8] sm:$0x33] }
  0x85   :  { %5268 = vmatpush1.bf16.msra.mxu0 %v10564_v8  ;;  %v80_v8 = vld [vmem:[#allocation2 + $0xa0] sm:$0xff] }
  0x86   :  { %5309 = vmatpush1.bf16.msra.mxu1 %v10566_v9  ;;  %11336 = vmatprep.subr.msk.bf16.mxu0 %vm3910_vm0, %v11081_v10  ;;  %v208_v9 = vld [vmem:[#allocation2 + $0x4a0] sm:$0xff]  ;;  %v81_v10 = vld [vmem:[#allocation2 + $0xa8] sm:$0xff] }
  0x87   :  { %11338 = vmatprep.subr.msk.bf16.mxu1 %vm3910_vm0, %v11083_v11  ;;  %v209_v11 = vld [vmem:[#allocation2 + $0x4a8] sm:$0xff]  ;;  %v10577_v14 = vcombine.high %v80_v8, %v208_v9 }
  0x88   :  { %11333 = vmatmul.mubr.msk.bf16.vlgmr.msra.gmra.mxu0 %vm3906_vm1, %v11981_v35  ;;  %v10579_v15 = vcombine.high %v81_v10, %v209_v11 }
  0x89   :  { %11335 = vmatmul.mubr.msk.bf16.vlgmr.msra.gmra.mxu1 %vm3906_vm1, %v11981_v35  ;;  %5346 = vmatpush1.bf16.msra.mxu0 %v4008_v18  ;;  %v10576_v18 = vcombine.low %v80_v8, %v208_v9  ;;  %v11100_v8 = vcombine.low %v598_v2, %v598_v2  ;;  %v11102_v9 = vcombine.low %v599_v3, %v599_v3 }
  0x8a   :  { %5387 = vmatpush1.bf16.msra.mxu1 %v4014_v19  ;;  %5347 = vmatprep.subr.bf16.mxu0 %v10825_v20  ;;  %v10578_v19 = vcombine.low %v81_v10, %v209_v11  ;;  %v11093_v20 = vcombine.high %v594_v16, %v594_v16  ;;  %v342_v10 = vld [vmem:[#allocation2 + $0x8d0] sm:$0xff] }
  0x8b   :  { %5388 = vmatprep.subr.bf16.mxu1 %v10827_v21  ;;  %5367 = vmatprep.mubr.bf16.mxu0 %v13651_v0  ;;  %v11095_v21 = vcombine.high %v595_v17, %v595_v17  ;;  %v470_v11 = vld [vmem:[#allocation2 + $0xcd0] sm:$0xff] }
  0x8c   :  { %5408 = vmatprep.mubr.bf16.mxu1 %v13651_v0  ;;  %v10845_v16 = vcombine.high %v342_v10, %v470_v11 }
  0x8d   :  { %5348 = vmatpush1.bf16.msra.mxu0 %v10824_v26  ;;  %v339_v26 = vld [vmem:[#allocation2 + $0x8b8] sm:$0xff] }
  0x8e   :  { %5389 = vmatpush1.bf16.msra.mxu1 %v10826_v27  ;;  %5349 = vmatprep.subr.bf16.mxu0 %v10569_v28  ;;  %v467_v27 = vld [vmem:[#allocation2 + $0xcb8] sm:$0xff]  ;;  %v4044_v28 = vsel %vm3910_vm0, %v11092_v22, 0  ;;  %v10844_v22 = vcombine.low %v342_v10, %v470_v11 }
  0x8f   :  { %5390 = vmatprep.subr.bf16.mxu1 %v10571_v29  ;;  %v4050_v29 = vsel %vm3910_vm0, %v11094_v23, 0  ;;  %v10839_v31 = vcombine.high %v339_v26, %v467_v27  ;;  %v10838_v38 = vcombine.low %v339_v26, %v467_v27  ;;  %v600_v26 = vld [vmem:[#allocation2 + $0x10e0] sm:$0x33]  ;;  %v601_v27 = vld [vmem:[#allocation2 + $0x10e8] sm:$0x33] }
  0x91   :  { %5350 = vmatpush1.bf16.msra.mxu0 %v10568_v32  ;;  %v82_v32 = vld [vmem:[#allocation2 + $0xb0] sm:$0xff] }
  0x92   :  { %5391 = vmatpush1.bf16.msra.mxu1 %v10570_v33  ;;  %11340 = vmatprep.subr.msk.bf16.mxu0 %vm3910_vm0, %v11085_v34  ;;  %v210_v33 = vld [vmem:[#allocation2 + $0x4b0] sm:$0xff]  ;;  %v83_v34 = vld [vmem:[#allocation2 + $0xb8] sm:$0xff] }
  0x93   :  { %11342 = vmatprep.subr.msk.bf16.mxu1 %vm3910_vm0, %v11087_v36  ;;  %v211_v36 = vld [vmem:[#allocation2 + $0x4b8] sm:$0xff]  ;;  %v10581_v39 = vcombine.high %v82_v32, %v210_v33 }
  0x94   :  { %11337 = vmatmul.mubr.msk.bf16.vlgmr.msra.gmra.mxu0 %vm3906_vm1, %v11981_v35  ;;  %v10583_v40 = vcombine.high %v83_v34, %v211_v36 }
  0x95   :  { %11339 = vmatmul.mubr.msk.bf16.vlgmr.msra.gmra.mxu1 %vm3906_vm1, %v11981_v35  ;;  %5428 = vmatpush1.bf16.msra.mxu0 %v4020_v43  ;;  %v10580_v43 = vcombine.low %v82_v32, %v210_v33  ;;  %v11106_v32 = vcombine.low %v601_v27, %v601_v27  ;;  %v344_v33 = vld [vmem:[#allocation2 + $0x8e0] sm:$0xff] }
  0x96   :  { %5469 = vmatpush1.bf16.msra.mxu1 %v4026_v44  ;;  %5429 = vmatprep.subr.bf16.mxu0 %v10829_v45  ;;  %v10582_v44 = vcombine.low %v83_v34, %v211_v36  ;;  %v11097_v45 = vcombine.high %v596_v41, %v596_v41  ;;  %v472_v34 = vld [vmem:[#allocation2 + $0xce0] sm:$0xff]  ;;  %v345_v36 = vld [vmem:[#allocation2 + $0x8e8] sm:$0xff] }
  0x97   :  { %5470 = vmatprep.subr.bf16.mxu1 %v10831_v46  ;;  %5449 = vmatprep.mubr.bf16.mxu0 %v13651_v0  ;;  %v11099_v46 = vcombine.high %v597_v42, %v597_v42  ;;  %v88_v42 = vld [vmem:[#allocation2 + $0xe0] sm:$0xff] }
  0x98   :  { %5490 = vmatprep.mubr.bf16.mxu1 %v13651_v0 }
  0x99   :  { %5430 = vmatpush1.bf16.msra.mxu0 %v10828_v51  ;;  %v341_v51 = vld [vmem:[#allocation2 + $0x8c8] sm:$0xff] }
  0x9a   :  { %5471 = vmatpush1.bf16.msra.mxu1 %v10830_v52  ;;  %5431 = vmatprep.subr.bf16.mxu0 %v10573_v53  ;;  %v469_v52 = vld [vmem:[#allocation2 + $0xcc8] sm:$0xff]  ;;  %v4056_v53 = vsel %vm3910_vm0, %v11096_v47, 0  ;;  %v10848_v47 = vcombine.low %v344_v33, %v472_v34 }
  0x9b   :  { %5472 = vmatprep.subr.bf16.mxu1 %v10575_v54  ;;  %v4062_v54 = vsel %vm3910_vm0, %v11098_v48, 0  ;;  %v10843_v56 = vcombine.high %v341_v51, %v469_v52  ;;  %v10842_v62 = vcombine.low %v341_v51, %v469_v52  ;;  %v602_v51 = vld [vmem:[#allocation2 + $0x10f0] sm:$0x33]  ;;  %v603_v52 = vld [vmem:[#allocation2 + $0x10f8] sm:$0x33] }
  0x9d   :  { %5432 = vmatpush1.bf16.msra.mxu0 %v10572_v57  ;;  %v84_v57 = vld [vmem:[#allocation2 + $0xc0] sm:$0xff] }
  0x9e   :  { %5473 = vmatpush1.bf16.msra.mxu1 %v10574_v58  ;;  %11344 = vmatprep.subr.msk.bf16.mxu0 %vm3910_vm0, %v11089_v59  ;;  %v212_v58 = vld [vmem:[#allocation2 + $0x4c0] sm:$0xff]  ;;  %v85_v59 = vld [vmem:[#allocation2 + $0xc8] sm:$0xff] }
  0x9f   :  { %11346 = vmatprep.subr.msk.bf16.mxu1 %vm3910_vm0, %v11091_v60  ;;  %v213_v60 = vld [vmem:[#allocation2 + $0x4c8] sm:$0xff]  ;;  %v10585_v63 = vcombine.high %v84_v57, %v212_v58 }
  0xa0   :  { %11341 = vmatmul.mubr.msk.bf16.vlgmr.msra.gmra.mxu0 %vm3906_vm1, %v11981_v35  ;;  %v10587_v1 = vcombine.high %v85_v59, %v213_v60 }
  0xa1   :  { %11343 = vmatmul.mubr.msk.bf16.vlgmr.msra.gmra.mxu1 %vm3906_vm1, %v11981_v35  ;;  %5510 = vmatpush1.bf16.msra.mxu0 %v4032_v4  ;;  %v10584_v4 = vcombine.low %v84_v57, %v212_v58  ;;  %v11108_v57 = vcombine.low %v602_v51, %v602_v51  ;;  %v11110_v58 = vcombine.low %v603_v52, %v603_v52 }
  0xa2   :  { %5551 = vmatpush1.bf16.msra.mxu1 %v4038_v5  ;;  %5511 = vmatprep.subr.bf16.mxu0 %v10833_v6  ;;  %v10586_v5 = vcombine.low %v85_v59, %v213_v60  ;;  %v11101_v6 = vcombine.high %v598_v2, %v598_v2  ;;  %v346_v59 = vld [vmem:[#allocation2 + $0x8f0] sm:$0xff] }
  0xa3   :  { %5552 = vmatprep.subr.bf16.mxu1 %v10835_v7  ;;  %5531 = vmatprep.mubr.bf16.mxu0 %v13651_v0  ;;  %v11103_v7 = vcombine.high %v599_v3, %v599_v3  ;;  %v474_v60 = vld [vmem:[#allocation2 + $0xcf0] sm:$0xff] }
  0xa4   :  { %5572 = vmatprep.mubr.bf16.mxu1 %v13651_v0  ;;  %v10853_v2 = vcombine.high %v346_v59, %v474_v60 }
  0xa5   :  { %5512 = vmatpush1.bf16.msra.mxu0 %v10832_v12  ;;  %v343_v12 = vld [vmem:[#allocation2 + $0x8d8] sm:$0xff] }
  0xa6   :  { %5553 = vmatpush1.bf16.msra.mxu1 %v10834_v13  ;;  %5513 = vmatprep.subr.bf16.mxu0 %v10577_v14  ;;  %v471_v13 = vld [vmem:[#allocation2 + $0xcd8] sm:$0xff]  ;;  %v4068_v14 = vsel %vm3910_vm0, %v11100_v8, 0  ;;  %v10852_v8 = vcombine.low %v346_v59, %v474_v60 }
  0xa7   :  { %5554 = vmatprep.subr.bf16.mxu1 %v10579_v15  ;;  %v4074_v15 = vsel %vm3910_vm0, %v11102_v9, 0  ;;  %v10847_v17 = vcombine.high %v343_v12, %v471_v13  ;;  %v10846_v23 = vcombine.low %v343_v12, %v471_v13  ;;  %v604_v12 = vld [vmem:[#allocation2 + $0x1100] sm:$0x33]  ;;  %v605_v13 = vld [vmem:[#allocation2 + $0x1108] sm:$0x33] }
  0xa9   :  { %5514 = vmatpush1.bf16.msra.mxu0 %v10576_v18  ;;  %v86_v18 = vld [vmem:[#allocation2 + $0xd0] sm:$0xff] }
  0xaa   :  { %5555 = vmatpush1.bf16.msra.mxu1 %v10578_v19  ;;  %11348 = vmatprep.subr.msk.bf16.mxu0 %vm3910_vm0, %v11093_v20  ;;  %v214_v19 = vld [vmem:[#allocation2 + $0x4d0] sm:$0xff]  ;;  %v87_v20 = vld [vmem:[#allocation2 + $0xd8] sm:$0xff] }
  0xab   :  { %11350 = vmatprep.subr.msk.bf16.mxu1 %vm3910_vm0, %v11095_v21  ;;  %v215_v21 = vld [vmem:[#allocation2 + $0x4d8] sm:$0xff]  ;;  %v10589_v24 = vcombine.high %v86_v18, %v214_v19 }
  0xac   :  { %11345 = vmatmul.mubr.msk.bf16.vlgmr.msra.gmra.mxu0 %vm3906_vm1, %v11981_v35  ;;  %v10591_v25 = vcombine.high %v87_v20, %v215_v21 }
  0xad   :  { %11347 = vmatmul.mubr.msk.bf16.vlgmr.msra.gmra.mxu1 %vm3906_vm1, %v11981_v35  ;;  %5592 = vmatpush1.bf16.msra.mxu0 %v4044_v28  ;;  %v10588_v28 = vcombine.low %v86_v18, %v214_v19  ;;  %v11112_v18 = vcombine.low %v604_v12, %v604_v12  ;;  %v11114_v19 = vcombine.low %v605_v13, %v605_v13 }
  0xae   :  { %5633 = vmatpush1.bf16.msra.mxu1 %v4050_v29  ;;  %5593 = vmatprep.subr.bf16.mxu0 %v10837_v30  ;;  %v10590_v29 = vcombine.low %v87_v20, %v215_v21  ;;  %v11105_v30 = vcombine.high %v600_v26, %v600_v26  ;;  %v348_v20 = vld [vmem:[#allocation2 + $0x900] sm:$0xff] }
  0xaf   :  { %5634 = vmatprep.subr.bf16.mxu1 %v10839_v31  ;;  %5613 = vmatprep.mubr.bf16.mxu0 %v13651_v0  ;;  %v11104_v31 = vcombine.low %v600_v26, %v600_v26  ;;  %v476_v21 = vld [vmem:[#allocation2 + $0xd00] sm:$0xff] }
  0xb0   :  { %5654 = vmatprep.mubr.bf16.mxu1 %v13651_v0  ;;  %v10857_v26 = vcombine.high %v348_v20, %v476_v21 }
  0xb1   :  { %5594 = vmatpush1.bf16.msra.mxu0 %v10836_v37  ;;  %v473_v37 = vld [vmem:[#allocation2 + $0xce8] sm:$0xff] }
  0xb2   :  { %5635 = vmatpush1.bf16.msra.mxu1 %v10838_v38  ;;  %5595 = vmatprep.subr.bf16.mxu0 %v10581_v39  ;;  %v4080_v38 = vsel %vm3910_vm0, %v11104_v31, 0  ;;  %v4086_v39 = vsel %vm3910_vm0, %v11106_v32, 0  ;;  %v10851_v41 = vcombine.high %v345_v36, %v473_v37  ;;  %v10850_v48 = vcombine.low %v345_v36, %v473_v37  ;;  %v606_v36 = vld [vmem:[#allocation2 + $0x1110] sm:$0x33]  ;;  %v607_v37 = vld [vmem:[#allocation2 + $0x1118] sm:$0x33] }
  0xb3   :  { %5636 = vmatprep.subr.bf16.mxu1 %v10583_v40  ;;  %v10849_v40 = vcombine.high %v344_v33, %v472_v34  ;;  %v10856_v31 = vcombine.low %v348_v20, %v476_v21 }
  0xb5   :  { %5596 = vmatpush1.bf16.msra.mxu0 %v10580_v43  ;;  %v216_v43 = vld [vmem:[#allocation2 + $0x4e0] sm:$0xff] }
  0xb6   :  { %5637 = vmatpush1.bf16.msra.mxu1 %v10582_v44  ;;  %11352 = vmatprep.subr.msk.bf16.mxu0 %vm3910_vm0, %v11097_v45  ;;  %v89_v44 = vld [vmem:[#allocation2 + $0xe8] sm:$0xff]  ;;  %v10593_v49 = vcombine.high %v88_v42, %v216_v43 }
  0xb7   :  { %11354 = vmatprep.subr.msk.bf16.mxu1 %vm3910_vm0, %v11099_v46  ;;  %v217_v45 = vld [vmem:[#allocation2 + $0x4e8] sm:$0xff]  ;;  %v12120_v46 = vld [vmem:[#allocation5] sm:$0xf] }
  0xb8   :  { %11349 = vmatmul.mubr.msk.bf16.vlgmr.msra.gmra.mxu0 %vm3906_vm1, %v11981_v35  ;;  %v10595_v50 = vcombine.high %v89_v44, %v217_v45 }
  0xb9   :  { %11351 = vmatmul.mubr.msk.bf16.vlgmr.msra.gmra.mxu1 %vm3906_vm1, %v11981_v35  ;;  %5674 = vmatpush1.bf16.msra.mxu0 %v4056_v53  ;;  %v10592_v53 = vcombine.low %v88_v42, %v216_v43  ;;  %v11116_v42 = vcombine.low %v606_v36, %v606_v36  ;;  %v11118_v43 = vcombine.low %v607_v37, %v607_v37 }
  0xba   :  { %5715 = vmatpush1.bf16.msra.mxu1 %v4062_v54  ;;  %5675 = vmatprep.subr.bf16.mxu0 %v10841_v55  ;;  %v10594_v54 = vcombine.low %v89_v44, %v217_v45  ;;  %v11109_v55 = vcombine.high %v602_v51, %v602_v51  ;;  %v350_v44 = vld [vmem:[#allocation2 + $0x910] sm:$0xff] }
  0xbb   :  { %5716 = vmatprep.subr.bf16.mxu1 %v10843_v56  ;;  %5695 = vmatprep.mubr.bf16.mxu0 %v13651_v0  ;;  %v11111_v56 = vcombine.high %v603_v52, %v603_v52  ;;  %v478_v45 = vld [vmem:[#allocation2 + $0xd10] sm:$0xff] }
  0xbc   :  { %5736 = vmatprep.mubr.bf16.mxu1 %v13651_v0  ;;  %v10861_v51 = vcombine.high %v350_v44, %v478_v45  ;;  %v10860_v59 = vcombine.low %v350_v44, %v478_v45 }
  0xbd   :  { %5676 = vmatpush1.bf16.msra.mxu0 %v10840_v61  ;;  %v347_v61 = vld [vmem:[#allocation2 + $0x8f8] sm:$0xff] }
  0xbe   :  { %5717 = vmatpush1.bf16.msra.mxu1 %v10842_v62  ;;  %5677 = vmatprep.subr.bf16.mxu0 %v10585_v63  ;;  %v475_v62 = vld [vmem:[#allocation2 + $0xcf8] sm:$0xff]  ;;  %v4092_v63 = vsel %vm3910_vm0, %v11108_v57, 0 }
  0xbf   :  { %5718 = vmatprep.subr.bf16.mxu1 %v10587_v1  ;;  %v4098_v1 = vsel %vm3910_vm0, %v11110_v58, 0  ;;  %v10855_v3 = vcombine.high %v347_v61, %v475_v62  ;;  %v10854_v9 = vcombine.low %v347_v61, %v475_v62 }
  0xc1   :  { %5678 = vmatpush1.bf16.msra.mxu0 %v10584_v4  ;;  %v90_v4 = vld [vmem:[#allocation2 + $0xf0] sm:$0xff] }
  0xc2   :  { %5719 = vmatpush1.bf16.msra.mxu1 %v10586_v5  ;;  %11356 = vmatprep.subr.msk.bf16.mxu0 %vm3910_vm0, %v11101_v6  ;;  %v218_v5 = vld [vmem:[#allocation2 + $0x4f0] sm:$0xff]  ;;  %v91_v6 = vld [vmem:[#allocation2 + $0xf8] sm:$0xff] }
  0xc3   :  { %11358 = vmatprep.subr.msk.bf16.mxu1 %vm3910_vm0, %v11103_v7  ;;  %v219_v7 = vld [vmem:[#allocation2 + $0x4f8] sm:$0xff]  ;;  %v10597_v10 = vcombine.high %v90_v4, %v218_v5 }
  0xc4   :  { %11353 = vmatmul.mubr.msk.bf16.vlgmr.msra.gmra.mxu0 %vm3906_vm1, %v11981_v35  ;;  %v10599_v11 = vcombine.high %v91_v6, %v219_v7 }
  0xc5   :  { %11355 = vmatmul.mubr.msk.bf16.vlgmr.msra.gmra.mxu1 %vm3906_vm1, %v11981_v35  ;;  %5756 = vmatpush1.bf16.msra.mxu0 %v4068_v14  ;;  %v11107_v35 = vcombine.high %v601_v27, %v601_v27  ;;  %v10596_v14 = vcombine.low %v90_v4, %v218_v5 }
  0xc6   :  { %5797 = vmatpush1.bf16.msra.mxu1 %v4074_v15  ;;  %5757 = vmatprep.subr.bf16.mxu0 %v10845_v16  ;;  %v10598_v15 = vcombine.low %v91_v6, %v219_v7  ;;  %v11113_v16 = vcombine.high %v604_v12, %v604_v12 }
  0xc7   :  { %5798 = vmatprep.subr.bf16.mxu1 %v10847_v17  ;;  %5777 = vmatprep.mubr.bf16.mxu0 %v13651_v0  ;;  %v11115_v17 = vcombine.high %v605_v13, %v605_v13 }
  0xc8   :  { %5818 = vmatprep.mubr.bf16.mxu1 %v13651_v0 }
  0xc9   :  { %5758 = vmatpush1.bf16.msra.mxu0 %v10844_v22  ;;  %v349_v22 = vld [vmem:[#allocation2 + $0x908] sm:$0xff] }
  0xca   :  { %5799 = vmatpush1.bf16.msra.mxu1 %v10846_v23  ;;  %5759 = vmatprep.subr.bf16.mxu0 %v10589_v24  ;;  %v477_v23 = vld [vmem:[#allocation2 + $0xd08] sm:$0xff]  ;;  %v4104_v24 = vsel %vm3910_vm0, %v11112_v18, 0 }
  0xcb   :  { %5800 = vmatprep.subr.bf16.mxu1 %v10591_v25  ;;  %v4110_v25 = vsel %vm3910_vm0, %v11114_v19, 0  ;;  %v10859_v27 = vcombine.high %v349_v22, %v477_v23  ;;  %v10858_v32 = vcombine.low %v349_v22, %v477_v23  ;;  %v96_v22 = vld [vmem:[#allocation2 + $0x120] sm:$0xff] }
  0xcc   :  { %v224_v23 = vld [vmem:[#allocation2 + $0x520] sm:$0xff] }
  0xcd   :  { %5760 = vmatpush1.bf16.msra.mxu0 %v10588_v28  ;;  %v92_v28 = vld [vmem:[#allocation2 + $0x100] sm:$0xff] }
  0xce   :  { %5801 = vmatpush1.bf16.msra.mxu1 %v10590_v29  ;;  %11360 = vmatprep.subr.msk.bf16.mxu0 %vm3910_vm0, %v11105_v30  ;;  %v220_v29 = vld [vmem:[#allocation2 + $0x500] sm:$0xff]  ;;  %v93_v30 = vld [vmem:[#allocation2 + $0x108] sm:$0xff] }
  0xcf   :  { %11362 = vmatprep.subr.msk.bf16.mxu1 %vm3910_vm0, %v11107_v35  ;;  %v221_v35 = vld [vmem:[#allocation2 + $0x508] sm:$0xff]  ;;  %v10601_v33 = vcombine.high %v92_v28, %v220_v29 }
  0xd0   :  { %11357 = vmatmul.mubr.msk.bf16.vlgmr.msra.gmra.mxu0 %vm3906_vm1, %v12120_v46  ;;  %v10603_v34 = vcombine.high %v93_v30, %v221_v35 }
  0xd1   :  { %11359 = vmatmul.mubr.msk.bf16.vlgmr.msra.gmra.mxu1 %vm3906_vm1, %v12120_v46  ;;  %5838 = vmatpush1.bf16.msra.mxu0 %v4080_v38  ;;  %v10600_v38 = vcombine.low %v92_v28, %v220_v29 }
  0xd2   :  { %5879 = vmatpush1.bf16.msra.mxu1 %v4086_v39  ;;  %5839 = vmatprep.subr.bf16.mxu0 %v10849_v40  ;;  %v10602_v39 = vcombine.low %v93_v30, %v221_v35  ;;  %v11117_v40 = vcombine.high %v606_v36, %v606_v36 }
  0xd3   :  { %5880 = vmatprep.subr.bf16.mxu1 %v10851_v41  ;;  %5859 = vmatprep.mubr.bf16.mxu0 %v13651_v0  ;;  %v11119_v41 = vcombine.high %v607_v37, %v607_v37 }
  0xd4   :  { %5900 = vmatprep.mubr.bf16.mxu1 %v13651_v0 }
  0xd5   :  { %5840 = vmatpush1.bf16.msra.mxu0 %v10848_v47  ;;  %v351_v47 = vld [vmem:[#allocation2 + $0x918] sm:$0xff] }
  0xd6   :  { %5881 = vmatpush1.bf16.msra.mxu1 %v10850_v48  ;;  %5841 = vmatprep.subr.bf16.mxu0 %v10593_v49  ;;  %v479_v48 = vld [vmem:[#allocation2 + $0xd18] sm:$0xff]  ;;  %v4116_v49 = vsel %vm3910_vm0, %v11116_v42, 0 }
  0xd7   :  { %5882 = vmatprep.subr.bf16.mxu1 %v10595_v50  ;;  %v4122_v50 = vsel %vm3910_vm0, %v11118_v43, 0  ;;  %v10863_v52 = vcombine.high %v351_v47, %v479_v48  ;;  %v10862_v60 = vcombine.low %v351_v47, %v479_v48  ;;  %v354_v47 = vld [vmem:[#allocation2 + $0x930] sm:$0xff] }
  0xd8   :  { %v482_v48 = vld [vmem:[#allocation2 + $0xd30] sm:$0xff] }
  0xd9   :  { %5842 = vmatpush1.bf16.msra.mxu0 %v10592_v53  ;;  %v94_v53 = vld [vmem:[#allocation2 + $0x110] sm:$0xff] }
  0xda   :  { %5883 = vmatpush1.bf16.msra.mxu1 %v10594_v54  ;;  %11364 = vmatprep.subr.msk.bf16.mxu0 %vm3910_vm0, %v11109_v55  ;;  %v222_v54 = vld [vmem:[#allocation2 + $0x510] sm:$0xff]  ;;  %v95_v55 = vld [vmem:[#allocation2 + $0x118] sm:$0xff] }
  0xdb   :  { %11366 = vmatprep.subr.msk.bf16.mxu1 %vm3910_vm0, %v11111_v56  ;;  %v223_v56 = vld [vmem:[#allocation2 + $0x518] sm:$0xff]  ;;  %v10604_v6 = vcombine.low %v94_v53, %v222_v54 }
  0xdc   :  { %11361 = vmatmul.mubr.msk.bf16.vlgmr.msra.gmra.mxu0 %vm3906_vm1, %v12120_v46  ;;  %v10606_v7 = vcombine.low %v95_v55, %v223_v56 }
  0xdd   :  { %11363 = vmatmul.mubr.msk.bf16.vlgmr.msra.gmra.mxu1 %vm3906_vm1, %v12120_v46  ;;  %5920 = vmatpush1.bf16.msra.mxu0 %v4092_v63  ;;  %v10605_v63 = vcombine.high %v94_v53, %v222_v54  ;;  %v10869_v53 = vcombine.high %v354_v47, %v482_v48 }
  0xde   :  { %5961 = vmatpush1.bf16.msra.mxu1 %v4098_v1  ;;  %5921 = vmatprep.subr.bf16.mxu0 %v10853_v2  ;;  %v10607_v1 = vcombine.high %v95_v55, %v223_v56  ;;  %v608_v2 = vld [vmem:[#allocation2 + $0x1120] sm:$0x33]  ;;  %v98_v55 = vld [vmem:[#allocation2 + $0x130] sm:$0xff] }
  0xdf   :  { %5962 = vmatprep.subr.bf16.mxu1 %v10855_v3  ;;  %5941 = vmatprep.mubr.bf16.mxu0 %v13651_v0  ;;  %v609_v3 = vld [vmem:[#allocation2 + $0x1128] sm:$0x33]  ;;  %v11120_v12 = vcombine.low %v608_v2, %v608_v2  ;;  %v226_v56 = vld [vmem:[#allocation2 + $0x530] sm:$0xff] }
  0xe0   :  { %5982 = vmatprep.mubr.bf16.mxu1 %v13651_v0  ;;  %v11122_v13 = vcombine.low %v609_v3, %v609_v3 }
  0xe1   :  { %5922 = vmatpush1.bf16.msra.mxu0 %v10852_v8  ;;  %v11121_v8 = vcombine.high %v608_v2, %v608_v2  ;;  %v4128_v18 = vsel %vm3910_vm0, %v11120_v12, 0  ;;  %v10868_v2 = vcombine.low %v354_v47, %v482_v48  ;;  %v10612_v12 = vcombine.low %v98_v55, %v226_v56 }
  0xe2   :  { %5963 = vmatpush1.bf16.msra.mxu1 %v10854_v9  ;;  %5923 = vmatprep.subr.bf16.mxu0 %v10597_v10  ;;  %v4134_v19 = vsel %vm3910_vm0, %v11122_v13, 0 }
  0xe3   :  { %5964 = vmatprep.subr.bf16.mxu1 %v10599_v11  ;;  %v11123_v11 = vcombine.high %v609_v3, %v609_v3 }
  0xe5   :  { %5924 = vmatpush1.bf16.msra.mxu0 %v10596_v14  ;;  %v352_v14 = vld [vmem:[#allocation2 + $0x920] sm:$0xff] }
  0xe6   :  { %5965 = vmatpush1.bf16.msra.mxu1 %v10598_v15  ;;  %11368 = vmatprep.subr.msk.bf16.mxu0 %vm3910_vm0, %v11113_v16  ;;  %v480_v15 = vld [vmem:[#allocation2 + $0xd20] sm:$0xff]  ;;  %v353_v16 = vld [vmem:[#allocation2 + $0x928] sm:$0xff] }
  0xe7   :  { %11370 = vmatprep.subr.msk.bf16.mxu1 %vm3910_vm0, %v11115_v17  ;;  %v481_v17 = vld [vmem:[#allocation2 + $0xd28] sm:$0xff]  ;;  %v10865_v20 = vcombine.high %v352_v14, %v480_v15  ;;  %v10864_v28 = vcombine.low %v352_v14, %v480_v15 }
  0xe8   :  { %11365 = vmatmul.mubr.msk.bf16.vlgmr.msra.gmra.mxu0 %vm3906_vm1, %v12120_v46  ;;  %v10867_v21 = vcombine.high %v353_v16, %v481_v17  ;;  %v10866_v29 = vcombine.low %v353_v16, %v481_v17 }
  0xe9   :  { %11367 = vmatmul.mubr.msk.bf16.vlgmr.msra.gmra.mxu1 %vm3906_vm1, %v12120_v46  ;;  %6002 = vmatpush1.bf16.msra.mxu0 %v4104_v24  ;;  %v97_v24 = vld [vmem:[#allocation2 + $0x128] sm:$0xff] }
  0xea   :  { %6043 = vmatpush1.bf16.msra.mxu1 %v4110_v25  ;;  %6003 = vmatprep.subr.bf16.mxu0 %v10857_v26  ;;  %v225_v25 = vld [vmem:[#allocation2 + $0x528] sm:$0xff] }
  0xeb   :  { %6044 = vmatprep.subr.bf16.mxu1 %v10859_v27  ;;  %6023 = vmatprep.mubr.bf16.mxu0 %v13651_v0 }
  0xec   :  { %6064 = vmatprep.mubr.bf16.mxu1 %v13651_v0 }
  0xed   :  { %6004 = vmatpush1.bf16.msra.mxu0 %v10856_v31  ;;  %v10609_v31 = vcombine.high %v96_v22, %v224_v23 }
  0xee   :  { %6045 = vmatpush1.bf16.msra.mxu1 %v10858_v32  ;;  %6005 = vmatprep.subr.bf16.mxu0 %v10601_v33  ;;  %v10611_v32 = vcombine.high %v97_v24, %v225_v25  ;;  %v610_v33 = vld [vmem:[#allocation2 + $0x1130] sm:$0x33] }
  0xef   :  { %6046 = vmatprep.subr.bf16.mxu1 %v10603_v34  ;;  %v611_v34 = vld [vmem:[#allocation2 + $0x1138] sm:$0x33]  ;;  %v11124_v44 = vcombine.low %v610_v33, %v610_v33 }
  0xf0   :  { %v11127_v43 = vcombine.high %v611_v34, %v611_v34  ;;  %v11126_v45 = vcombine.low %v611_v34, %v611_v34  ;;  %v229_v34 = vld [vmem:[#allocation2 + $0x548] sm:$0xff] }
  0xf1   :  { %6006 = vmatpush1.bf16.msra.mxu0 %v10600_v38  ;;  %v10608_v38 = vcombine.low %v96_v22, %v224_v23  ;;  %v357_v22 = vld [vmem:[#allocation2 + $0x948] sm:$0xff] }
  0xf2   :  { %6047 = vmatpush1.bf16.msra.mxu1 %v10602_v39  ;;  %11372 = vmatprep.subr.msk.bf16.mxu0 %vm3910_vm0, %v11117_v40  ;;  %v10610_v39 = vcombine.low %v97_v24, %v225_v25  ;;  %v11125_v40 = vcombine.high %v610_v33, %v610_v33  ;;  %v485_v23 = vld [vmem:[#allocation2 + $0xd48] sm:$0xff] }
  0xf3   :  { %11374 = vmatprep.subr.msk.bf16.mxu1 %vm3910_vm0, %v11119_v41  ;;  %v101_v33 = vld [vmem:[#allocation2 + $0x148] sm:$0xff] }
  0xf4   :  { %v12152_v57 = vpop.f32.mrf.mxu0  ;;  %11369 = vmatmul.mubr.msk.bf16.vlgmr.msra.gmra.mxu0 %vm3906_vm1, %v12120_v46 }
  0xf5   :  { %v12154_v58 = vpop.f32.mrf.mxu1  ;;  %11371 = vmatmul.mubr.msk.bf16.vlgmr.msra.gmra.mxu1 %vm3906_vm1, %v12120_v46  ;;  %6084 = vmatpush1.bf16.msra.mxu0 %v4116_v49  ;;  %v355_v49 = vld [vmem:[#allocation2 + $0x938] sm:$0xff] }
  0xf6   :  { %6125 = vmatpush1.bf16.msra.mxu1 %v4122_v50  ;;  %v12160_v61 = vpop.f32.mrf.mxu0  ;;  %6085 = vmatprep.subr.bf16.mxu0 %v10861_v51  ;;  %v483_v50 = vld [vmem:[#allocation2 + $0xd38] sm:$0xff]  ;;  %v4140_v51 = vsel %vm3910_vm0, %v11124_v44, 0  ;;  %v614_v44 = vld [vmem:[#allocation2 + $0x1150] sm:$0x33] }
  0xf7   :  { %v12162_v62 = vpop.f32.mrf.mxu1  ;;  %6126 = vmatprep.subr.bf16.mxu1 %v10863_v52  ;;  %6105 = vmatprep.mubr.bf16.mxu0 %v13651_v0  ;;  %v4146_v52 = vsel %vm3910_vm0, %v11126_v45, 0  ;;  %v10871_v54 = vcombine.high %v355_v49, %v483_v50  ;;  %v10870_v3 = vcombine.low %v355_v49, %v483_v50  ;;  %v615_v45 = vld [vmem:[#allocation2 + $0x1158] sm:$0x33]  ;;  %v10618_v50 = vcombine.low %v101_v33, %v229_v34 }
  0xf8   :  { %6146 = vmatprep.mubr.bf16.mxu1 %v13651_v0  ;;  %v4717_v4 = vpop.f32.mrf.mxu0 }
  0xf9   :  { %v4758_v5 = vpop.f32.mrf.mxu1  ;;  %6086 = vmatpush1.bf16.msra.mxu0 %v10860_v59  ;;  %v99_v59 = vld [vmem:[#allocation2 + $0x138] sm:$0xff] }
  0xfa   :  { %6127 = vmatpush1.bf16.msra.mxu1 %v10862_v60  ;;  %v4718_v9 = vpop.f32.mrf.mxu0  ;;  %6087 = vmatprep.subr.bf16.mxu0 %v10605_v63  ;;  %v227_v60 = vld [vmem:[#allocation2 + $0x538] sm:$0xff] }
  0xfb   :  { %v4759_v10 = vpop.f32.mrf.mxu1  ;;  %6128 = vmatprep.subr.bf16.mxu1 %v10607_v1  ;;  %v613_v9 = vld [vmem:[#allocation2 + $0x1148] sm:$0x33]  ;;  %v10614_v13 = vcombine.low %v99_v59, %v227_v60 }
  0xfc   :  { %v11131_v17 = vcombine.high %v613_v9, %v613_v9 }
  0xfd   :  { %6088 = vmatpush1.bf16.msra.mxu0 %v10604_v6  ;;  %v10613_v6 = vcombine.high %v98_v55, %v226_v56  ;;  %v11132_v55 = vcombine.low %v614_v44, %v614_v44  ;;  %v11134_v56 = vcombine.low %v615_v45, %v615_v45 }
  0xfe   :  { %6129 = vmatpush1.bf16.msra.mxu1 %v10606_v7  ;;  %11376 = vmatprep.subr.msk.bf16.mxu0 %vm3910_vm0, %v11121_v8  ;;  %v10615_v7 = vcombine.high %v99_v59, %v227_v60  ;;  %v612_v8 = vld [vmem:[#allocation2 + $0x1140] sm:$0x33]  ;;  %v358_v59 = vld [vmem:[#allocation2 + $0x950] sm:$0xff] }
  0xff   :  { %11378 = vmatprep.subr.msk.bf16.mxu1 %vm3910_vm0, %v11123_v11  ;;  %v11129_v14 = vcombine.high %v612_v8, %v612_v8  ;;  %v486_v60 = vld [vmem:[#allocation2 + $0xd50] sm:$0xff] }
 0x100   :  { %v12170_v26 = vpop.f32.mrf.mxu0  ;;  %11373 = vmatmul.mubr.msk.bf16.vlgmr.msra.gmra.mxu0 %vm3906_vm1, %v12120_v46 }
 0x101   :  { %v12172_v27 = vpop.f32.mrf.mxu1  ;;  %11375 = vmatmul.mubr.msk.bf16.vlgmr.msra.gmra.mxu1 %vm3906_vm1, %v12120_v46  ;;  %6166 = vmatpush1.bf16.msra.mxu0 %v4128_v18  ;;  %v11128_v18 = vcombine.low %v612_v8, %v612_v8  ;;  %v10877_v8 = vcombine.high %v358_v59, %v486_v60 }
 0x102   :  { %6207 = vmatpush1.bf16.msra.mxu1 %v4134_v19  ;;  %v12178_v30 = vpop.f32.mrf.mxu0  ;;  %6167 = vmatprep.subr.bf16.mxu0 %v10865_v20  ;;  %v11130_v19 = vcombine.low %v613_v9, %v613_v9  ;;  %v356_v20 = vld [vmem:[#allocation2 + $0x940] sm:$0xff] }
 0x103   :  { %v12180_v35 = vpop.f32.mrf.mxu1  ;;  %6208 = vmatprep.subr.bf16.mxu1 %v10867_v21  ;;  %6187 = vmatprep.mubr.bf16.mxu0 %v13651_v0  ;;  %v484_v21 = vld [vmem:[#allocation2 + $0xd40] sm:$0xff]  ;;  %v4152_v24 = vsel %vm3910_vm0, %v11128_v18, 0 }
 0x104   :  { %6228 = vmatprep.mubr.bf16.mxu1 %v13651_v0  ;;  %v4799_v36 = vpop.f32.mrf.mxu0  ;;  %v4158_v25 = vsel %vm3910_vm0, %v11130_v19, 0 }
 0x105   :  { %v4840_v37 = vpop.f32.mrf.mxu1  ;;  %6168 = vmatpush1.bf16.msra.mxu0 %v10864_v28  ;;  %v10873_v28 = vcombine.high %v356_v20, %v484_v21 }
 0x106   :  { %6209 = vmatpush1.bf16.msra.mxu1 %v10866_v29  ;;  %v4800_v41 = vpop.f32.mrf.mxu0  ;;  %6169 = vmatprep.subr.bf16.mxu0 %v10609_v31  ;;  %v10875_v29 = vcombine.high %v357_v22, %v485_v23  ;;  %v100_v31 = vld [vmem:[#allocation2 + $0x140] sm:$0xff] }
 0x107   :  { %v4841_v42 = vpop.f32.mrf.mxu1  ;;  %6210 = vmatprep.subr.bf16.mxu1 %v10611_v32  ;;  %v228_v32 = vld [vmem:[#allocation2 + $0x540] sm:$0xff] }
 0x108   :  { %v10617_v42 = vcombine.high %v100_v31, %v228_v32  ;;  %v10616_v49 = vcombine.low %v100_v31, %v228_v32 }
 0x109   :  { %6170 = vmatpush1.bf16.msra.mxu0 %v10608_v38  ;;  %v10872_v38 = vcombine.low %v356_v20, %v484_v21 }
 0x10a   :  { %6211 = vmatpush1.bf16.msra.mxu1 %v10610_v39  ;;  %11380 = vmatprep.subr.msk.bf16.mxu0 %vm3910_vm0, %v11125_v40  ;;  %v10874_v39 = vcombine.low %v357_v22, %v485_v23  ;;  %v616_v22 = vld [vmem:[#allocation2 + $0x1160] sm:$0x33]  ;;  %v617_v23 = vld [vmem:[#allocation2 + $0x1168] sm:$0x33] }
 0x10b   :  { %11382 = vmatprep.subr.msk.bf16.mxu1 %vm3910_vm0, %v11127_v43  ;;  %v10619_v43 = vcombine.high %v101_v33, %v229_v34  ;;  %v11137_v31 = vcombine.high %v616_v22, %v616_v22  ;;  %v11139_v34 = vcombine.high %v617_v23, %v617_v23 }
 0x10c   :  { %v12188_v63 = vpop.f32.mrf.mxu0  ;;  %11377 = vmatmul.mubr.msk.bf16.vlgmr.msra.gmra.mxu0 %vm3906_vm1, %v12120_v46 }
 0x10d   :  { %v12190_v1 = vpop.f32.mrf.mxu1  ;;  %11379 = vmatmul.mubr.msk.bf16.vlgmr.msra.gmra.mxu1 %vm3906_vm1, %v12120_v46  ;;  %6248 = vmatpush1.bf16.msra.mxu0 %v4140_v51  ;;  %v11133_v51 = vcombine.high %v614_v44, %v614_v44  ;;  %v361_v44 = vld [vmem:[#allocation2 + $0x968] sm:$0xff] }
 0x10e   :  { %6289 = vmatpush1.bf16.msra.mxu1 %v4146_v52  ;;  %v12196_v4 = vpop.f32.mrf.mxu0  ;;  %6249 = vmatprep.subr.bf16.mxu0 %v10869_v53 }
 0x10f   :  { %v12198_v5 = vpop.f32.mrf.mxu1  ;;  %6290 = vmatprep.subr.bf16.mxu1 %v10871_v54  ;;  %6269 = vmatprep.mubr.bf16.mxu0 %v13651_v0  ;;  %v11135_v54 = vcombine.high %v615_v45, %v615_v45  ;;  %v489_v45 = vld [vmem:[#allocation2 + $0xd68] sm:$0xff] }
 0x110   :  { %6310 = vmatprep.mubr.bf16.mxu1 %v13651_v0  ;;  %v4881_v10 = vpop.f32.mrf.mxu0 }
 0x111   :  { %v4922_v11 = vpop.f32.mrf.mxu1  ;;  %6250 = vmatpush1.bf16.msra.mxu0 %v10868_v2  ;;  %v359_v2 = vld [vmem:[#allocation2 + $0x958] sm:$0xff]  ;;  %v102_v10 = vld [vmem:[#allocation2 + $0x150] sm:$0xff] }
 0x112   :  { %6291 = vmatpush1.bf16.msra.mxu1 %v10870_v3  ;;  %v4882_v15 = vpop.f32.mrf.mxu0  ;;  %6251 = vmatprep.subr.bf16.mxu0 %v10613_v6  ;;  %v487_v3 = vld [vmem:[#allocation2 + $0xd58] sm:$0xff]  ;;  %v4164_v6 = vsel %vm3910_vm0, %v11132_v55, 0  ;;  %v230_v11 = vld [vmem:[#allocation2 + $0x550] sm:$0xff] }
 0x113   :  { %v4923_v16 = vpop.f32.mrf.mxu1  ;;  %6292 = vmatprep.subr.bf16.mxu1 %v10615_v7  ;;  %v4170_v7 = vsel %vm3910_vm0, %v11134_v56, 0  ;;  %v10879_v9 = vcombine.high %v359_v2, %v487_v3  ;;  %v10621_v20 = vcombine.high %v102_v10, %v230_v11 }
 0x114   :  { %v10876_v16 = vcombine.low %v358_v59, %v486_v60  ;;  %v10882_v60 = vcombine.low %v361_v44, %v489_v45 }
 0x115   :  { %6252 = vmatpush1.bf16.msra.mxu0 %v10612_v12  ;;  %v103_v12 = vld [vmem:[#allocation2 + $0x158] sm:$0xff] }
 0x116   :  { %6293 = vmatpush1.bf16.msra.mxu1 %v10614_v13  ;;  %11384 = vmatprep.subr.msk.bf16.mxu0 %vm3910_vm0, %v11129_v14  ;;  %v231_v13 = vld [vmem:[#allocation2 + $0x558] sm:$0xff] }
 0x117   :  { %11386 = vmatprep.subr.msk.bf16.mxu1 %vm3910_vm0, %v11131_v17  ;;  %v10878_v17 = vcombine.low %v359_v2, %v487_v3  ;;  %v10623_v21 = vcombine.high %v103_v12, %v231_v13 }
 0x118   :  { %v12206_v36 = vpop.f32.mrf.mxu0  ;;  %11381 = vmatmul.mubr.msk.bf16.vlgmr.msra.gmra.mxu0 %vm3906_vm1, %v12120_v46 }
 0x119   :  { %v12208_v37 = vpop.f32.mrf.mxu1  ;;  %11383 = vmatmul.mubr.msk.bf16.vlgmr.msra.gmra.mxu1 %vm3906_vm1, %v12120_v46  ;;  %6330 = vmatpush1.bf16.msra.mxu0 %v4152_v24 }
 0x11a   :  { %6371 = vmatpush1.bf16.msra.mxu1 %v4158_v25  ;;  %v12214_v40 = vpop.f32.mrf.mxu0  ;;  %6331 = vmatprep.subr.bf16.mxu0 %v10873_v28  ;;  %v10620_v28 = vcombine.low %v102_v10, %v230_v11 }
 0x11b   :  { %v12216_v41 = vpop.f32.mrf.mxu1  ;;  %6372 = vmatprep.subr.bf16.mxu1 %v10875_v29  ;;  %6351 = vmatprep.mubr.bf16.mxu0 %v13651_v0  ;;  %v10622_v29 = vcombine.low %v103_v12, %v231_v13 }
 0x11c   :  { %6392 = vmatprep.mubr.bf16.mxu1 %v13651_v0  ;;  %v4963_v47 = vpop.f32.mrf.mxu0 }
 0x11d   :  { %v5004_v48 = vpop.f32.mrf.mxu1  ;;  %6332 = vmatpush1.bf16.msra.mxu0 %v10872_v38  ;;  %v11136_v38 = vcombine.low %v616_v22, %v616_v22 }
 0x11e   :  { %6373 = vmatpush1.bf16.msra.mxu1 %v10874_v39  ;;  %v4964_v52 = vpop.f32.mrf.mxu0  ;;  %6333 = vmatprep.subr.bf16.mxu0 %v10617_v42  ;;  %v11138_v39 = vcombine.low %v617_v23, %v617_v23  ;;  %v360_v42 = vld [vmem:[#allocation2 + $0x960] sm:$0xff] }
 0x11f   :  { %v5005_v53 = vpop.f32.mrf.mxu1  ;;  %6374 = vmatprep.subr.bf16.mxu1 %v10619_v43  ;;  %v488_v43 = vld [vmem:[#allocation2 + $0xd60] sm:$0xff]  ;;  %v4176_v47 = vsel %vm3910_vm0, %v11136_v38, 0  ;;  %v106_v38 = vld [vmem:[#allocation2 + $0x170] sm:$0xff] }
 0x120   :  { %v4182_v48 = vsel %vm3910_vm0, %v11138_v39, 0  ;;  %v232_v52 = vld [vmem:[#allocation2 + $0x560] sm:$0xff]  ;;  %v105_v53 = vld [vmem:[#allocation2 + $0x168] sm:$0xff]  ;;  %v10880_v59 = vcombine.low %v360_v42, %v488_v43  ;;  %v234_v39 = vld [vmem:[#allocation2 + $0x570] sm:$0xff] }
 0x121   :  { %6334 = vmatpush1.bf16.msra.mxu0 %v10616_v49  ;;  %v10881_v49 = vcombine.high %v360_v42, %v488_v43  ;;  %v107_v42 = vld [vmem:[#allocation2 + $0x178] sm:$0xff] }
 0x122   :  { %6375 = vmatpush1.bf16.msra.mxu1 %v10618_v50  ;;  %11388 = vmatprep.subr.msk.bf16.mxu0 %vm3910_vm0, %v11133_v51  ;;  %v10883_v50 = vcombine.high %v361_v44, %v489_v45  ;;  %v104_v51 = vld [vmem:[#allocation2 + $0x160] sm:$0xff]  ;;  %v235_v43 = vld [vmem:[#allocation2 + $0x578] sm:$0xff] }
 0x123   :  { %11390 = vmatprep.subr.msk.bf16.mxu1 %vm3910_vm0, %v11135_v54  ;;  %v233_v54 = vld [vmem:[#allocation2 + $0x568] sm:$0xff]  ;;  %v10624_v12 = vcombine.low %v104_v51, %v232_v52 }
 0x124   :  { %v12224_v14 = vpop.f32.mrf.mxu0  ;;  %11385 = vmatmul.mubr.msk.bf16.vlgmr.msra.gmra.mxu0 %vm3906_vm1, %v12120_v46  ;;  %v10626_v13 = vcombine.low %v105_v53, %v233_v54 }
 0x125   :  { %v12226_v15 = vpop.f32.mrf.mxu1  ;;  %11387 = vmatmul.mubr.msk.bf16.vlgmr.msra.gmra.mxu1 %vm3906_vm1, %v12120_v46  ;;  %6412 = vmatpush1.bf16.msra.mxu0 %v4164_v6  ;;  %v10625_v6 = vcombine.high %v104_v51, %v232_v52  ;;  %v10629_v51 = vcombine.high %v106_v38, %v234_v39  ;;  %v10631_v52 = vcombine.high %v107_v42, %v235_v43 }
 0x126   :  { %6453 = vmatpush1.bf16.msra.mxu1 %v4170_v7  ;;  %v12232_v18 = vpop.f32.mrf.mxu0  ;;  %6413 = vmatprep.subr.bf16.mxu0 %v10877_v8  ;;  %v10627_v7 = vcombine.high %v105_v53, %v233_v54  ;;  %v618_v8 = vld [vmem:[#allocation2 + $0x1170] sm:$0x33]  ;;  %v620_v53 = vld [vmem:[#allocation2 + $0x1180] sm:$0x33]  ;;  %v621_v54 = vld [vmem:[#allocation2 + $0x1188] sm:$0x33] }
 0x127   :  { %13653 = vst [vmem:[#allocation12_spill] sm:$0xff] %v12232_v18  ;;  %v12234_v19 = vpop.f32.mrf.mxu1  ;;  %6454 = vmatprep.subr.bf16.mxu1 %v10879_v9  ;;  %6433 = vmatprep.mubr.bf16.mxu0 %v13651_v0  ;;  %v619_v9 = vld [vmem:[#allocation2 + $0x1178] sm:$0x33]  ;;  %v11140_v22 = vcombine.low %v618_v8, %v618_v8 }
 0x128   :  { %6474 = vmatprep.mubr.bf16.mxu1 %v13651_v0  ;;  %v5045_v24 = vpop.f32.mrf.mxu0  ;;  %v11142_v23 = vcombine.low %v619_v9, %v619_v9  ;;  %v371_v18 = vld [vmem:[#allocation2 + $0x9b8] sm:$0xff] }
 0x129   :  { %v5086_v25 = vpop.f32.mrf.mxu1  ;;  %6414 = vmatpush1.bf16.msra.mxu0 %v10876_v16  ;;  %v11141_v16 = vcombine.high %v618_v8, %v618_v8  ;;  %v362_v24 = vld [vmem:[#allocation2 + $0x970] sm:$0xff]  ;;  %v11145_v8 = vcombine.high %v620_v53, %v620_v53 }
 0x12a   :  { %6455 = vmatpush1.bf16.msra.mxu1 %v10878_v17  ;;  %v5046_v32 = vpop.f32.mrf.mxu0  ;;  %6415 = vmatprep.subr.bf16.mxu0 %v10621_v20  ;;  %v490_v25 = vld [vmem:[#allocation2 + $0xd70] sm:$0xff] }
 0x12b   :  { %v5087_v33 = vpop.f32.mrf.mxu1  ;;  %6456 = vmatprep.subr.bf16.mxu1 %v10623_v21  ;;  %v11143_v21 = vcombine.high %v619_v9, %v619_v9  ;;  %v4194_v32 = vsel %vm3910_vm0, %v11142_v23, 0 }
 0x12c   :  { %v10885_v33 = vcombine.high %v362_v24, %v490_v25 }
 0x12d   :  { %6416 = vmatpush1.bf16.msra.mxu0 %v10620_v28  ;;  %v363_v28 = vld [vmem:[#allocation2 + $0x978] sm:$0xff] }
 0x12e   :  { %6457 = vmatpush1.bf16.msra.mxu1 %v10622_v29  ;;  %11392 = vmatprep.subr.msk.bf16.mxu0 %vm3910_vm0, %v11137_v31  ;;  %v491_v29 = vld [vmem:[#allocation2 + $0xd78] sm:$0xff]  ;;  %v4188_v31 = vsel %vm3910_vm0, %v11140_v22, 0 }
 0x12f   :  { %11394 = vmatprep.subr.msk.bf16.mxu1 %vm3910_vm0, %v11139_v34  ;;  %v10887_v34 = vcombine.high %v363_v28, %v491_v29 }
 0x130   :  { %v12242_v55 = vpop.f32.mrf.mxu0  ;;  %11389 = vmatmul.mubr.msk.bf16.vlgmr.msra.gmra.mxu0 %vm3906_vm1, %v12120_v46 }
 0x131   :  { %v12244_v56 = vpop.f32.mrf.mxu1  ;;  %11391 = vmatmul.mubr.msk.bf16.vlgmr.msra.gmra.mxu1 %vm3906_vm1, %v12120_v46  ;;  %6494 = vmatpush1.bf16.msra.mxu0 %v4176_v47  ;;  %v10884_v47 = vcombine.low %v362_v24, %v490_v25 }
 0x132   :  { %6535 = vmatpush1.bf16.msra.mxu1 %v4182_v48  ;;  %v12250_v2 = vpop.f32.mrf.mxu0  ;;  %6495 = vmatprep.subr.bf16.mxu0 %v10881_v49  ;;  %v10886_v48 = vcombine.low %v363_v28, %v491_v29  ;;  %v108_v28 = vld [vmem:[#allocation2 + $0x180] sm:$0xff] }
 0x133   :  { %v12252_v3 = vpop.f32.mrf.mxu1  ;;  %6536 = vmatprep.subr.bf16.mxu1 %v10883_v50  ;;  %6515 = vmatprep.mubr.bf16.mxu0 %v13651_v0  ;;  %v236_v29 = vld [vmem:[#allocation2 + $0x580] sm:$0xff] }
 0x134   :  { %6556 = vmatprep.mubr.bf16.mxu1 %v13651_v0  ;;  %v5127_v10 = vpop.f32.mrf.mxu0 }
 0x135   :  { %v5168_v11 = vpop.f32.mrf.mxu1  ;;  %6496 = vmatpush1.bf16.msra.mxu0 %v10880_v59 }
 0x136   :  { %6537 = vmatpush1.bf16.msra.mxu1 %v10882_v60  ;;  %v5128_v17 = vpop.f32.mrf.mxu0  ;;  %6497 = vmatprep.subr.bf16.mxu0 %v10625_v6  ;;  %v10628_v6 = vcombine.low %v106_v38, %v234_v39  ;;  %v11147_v11 = vcombine.high %v621_v54, %v621_v54 }
 0x137   :  { %v5169_v20 = vpop.f32.mrf.mxu1  ;;  %6538 = vmatprep.subr.bf16.mxu1 %v10627_v7  ;;  %v10630_v7 = vcombine.low %v107_v42, %v235_v43  ;;  %v492_v17 = vld [vmem:[#allocation2 + $0xd80] sm:$0xff] }
 0x138   :  { %v365_v20 = vld [vmem:[#allocation2 + $0x988] sm:$0xff] }
 0x139   :  { %6498 = vmatpush1.bf16.msra.mxu0 %v10624_v12  ;;  %v11144_v12 = vcombine.low %v620_v53, %v620_v53 }
 0x13a   :  { %6539 = vmatpush1.bf16.msra.mxu1 %v10626_v13  ;;  %11396 = vmatprep.subr.msk.bf16.mxu0 %vm3910_vm0, %v11141_v16  ;;  %v11146_v13 = vcombine.low %v621_v54, %v621_v54  ;;  %v364_v16 = vld [vmem:[#allocation2 + $0x980] sm:$0xff] }
 0x13b   :  { %11398 = vmatprep.subr.msk.bf16.mxu1 %vm3910_vm0, %v11143_v21  ;;  %v493_v21 = vld [vmem:[#allocation2 + $0xd88] sm:$0xff]  ;;  %v4200_v22 = vsel %vm3910_vm0, %v11144_v12, 0  ;;  %v10889_v24 = vcombine.high %v364_v16, %v492_v17  ;;  %v10888_v38 = vcombine.low %v364_v16, %v492_v17  ;;  %v366_v12 = vld [vmem:[#allocation2 + $0x990] sm:$0xff]  ;;  %v367_v16 = vld [vmem:[#allocation2 + $0x998] sm:$0xff] }
 0x13c   :  { %v12260_v44 = vpop.f32.mrf.mxu0  ;;  %11393 = vmatmul.mubr.msk.bf16.vlgmr.msra.gmra.mxu0 %vm3906_vm1, %v12120_v46  ;;  %v4206_v23 = vsel %vm3910_vm0, %v11146_v13, 0  ;;  %v10891_v25 = vcombine.high %v365_v20, %v493_v21  ;;  %v10890_v39 = vcombine.low %v365_v20, %v493_v21  ;;  %v494_v13 = vld [vmem:[#allocation2 + $0xd90] sm:$0xff]  ;;  %v495_v17 = vld [vmem:[#allocation2 + $0xd98] sm:$0xff] }
 0x13d   :  { %v12262_v45 = vpop.f32.mrf.mxu1  ;;  %11395 = vmatmul.mubr.msk.bf16.vlgmr.msra.gmra.mxu1 %vm3906_vm1, %v12120_v46  ;;  %6576 = vmatpush1.bf16.msra.mxu0 %v4188_v31  ;;  %v109_v31 = vld [vmem:[#allocation2 + $0x188] sm:$0xff] }
 0x13e   :  { %6617 = vmatpush1.bf16.msra.mxu1 %v4194_v32  ;;  %v12268_v49 = vpop.f32.mrf.mxu0  ;;  %6577 = vmatprep.subr.bf16.mxu0 %v10885_v33  ;;  %v237_v32 = vld [vmem:[#allocation2 + $0x588] sm:$0xff] }
 0x13f   :  { %v12270_v50 = vpop.f32.mrf.mxu1  ;;  %6618 = vmatprep.subr.bf16.mxu1 %v10887_v34  ;;  %6597 = vmatprep.mubr.bf16.mxu0 %v13651_v0 }
 0x140   :  { %6638 = vmatprep.mubr.bf16.mxu1 %v13651_v0  ;;  %v5209_v59 = vpop.f32.mrf.mxu0 }
 0x141   :  { %v5250_v60 = vpop.f32.mrf.mxu1  ;;  %6578 = vmatpush1.bf16.msra.mxu0 %v10884_v47  ;;  %v10633_v47 = vcombine.high %v108_v28, %v236_v29  ;;  %v10632_v59 = vcombine.low %v108_v28, %v236_v29  ;;  %v111_v28 = vld [vmem:[#allocation2 + $0x198] sm:$0xff] }
 0x142   :  { %6619 = vmatpush1.bf16.msra.mxu1 %v10886_v48  ;;  %v5210_v9 = vpop.f32.mrf.mxu0  ;;  %6579 = vmatprep.subr.bf16.mxu0 %v10629_v51  ;;  %v10635_v48 = vcombine.high %v109_v31, %v237_v32  ;;  %v622_v51 = vld [vmem:[#allocation2 + $0x1190] sm:$0x33]  ;;  %v10634_v60 = vcombine.low %v109_v31, %v237_v32  ;;  %v239_v29 = vld [vmem:[#allocation2 + $0x598] sm:$0xff] }
 0x143   :  { %v5251_v10 = vpop.f32.mrf.mxu1  ;;  %6620 = vmatprep.subr.bf16.mxu1 %v10631_v52  ;;  %v623_v52 = vld [vmem:[#allocation2 + $0x1198] sm:$0x33] }
 0x144   :  { %v11151_v9 = vcombine.high %v623_v52, %v623_v52  ;;  %v11148_v10 = vcombine.low %v622_v51, %v622_v51 }
 0x145   :  { %6580 = vmatpush1.bf16.msra.mxu0 %v10628_v6  ;;  %v11149_v6 = vcombine.high %v622_v51, %v622_v51 }
 0x146   :  { %6621 = vmatpush1.bf16.msra.mxu1 %v10630_v7  ;;  %11400 = vmatprep.subr.msk.bf16.mxu0 %vm3910_vm0, %v11145_v8  ;;  %v4212_v20 = vsel %vm3910_vm0, %v11148_v10, 0 }
 0x147   :  { %11402 = vmatprep.subr.msk.bf16.mxu1 %vm3910_vm0, %v11147_v11  ;;  %v11150_v11 = vcombine.low %v623_v52, %v623_v52  ;;  %v10639_v52 = vcombine.high %v111_v28, %v239_v29 }
 0x148   :  { %v12278_v33 = vpop.f32.mrf.mxu0  ;;  %11397 = vmatmul.mubr.msk.bf16.vlgmr.msra.gmra.mxu0 %vm3906_vm1, %v12120_v46 }
 0x149   :  { %v12280_v34 = vpop.f32.mrf.mxu1  ;;  %11399 = vmatmul.mubr.msk.bf16.vlgmr.msra.gmra.mxu1 %vm3906_vm1, %v12120_v46  ;;  %6658 = vmatpush1.bf16.msra.mxu0 %v4200_v22  ;;  %v4218_v21 = vsel %vm3910_vm0, %v11150_v11, 0  ;;  %v10893_v22 = vcombine.high %v366_v12, %v494_v13 }
 0x14a   :  { %6699 = vmatpush1.bf16.msra.mxu1 %v4206_v23  ;;  %v12286_v42 = vpop.f32.mrf.mxu0  ;;  %6659 = vmatprep.subr.bf16.mxu0 %v10889_v24  ;;  %v10895_v23 = vcombine.high %v367_v16, %v495_v17  ;;  %v110_v24 = vld [vmem:[#allocation2 + $0x190] sm:$0xff] }
 0x14b   :  { %v12288_v43 = vpop.f32.mrf.mxu1  ;;  %6700 = vmatprep.subr.bf16.mxu1 %v10891_v25  ;;  %6679 = vmatprep.mubr.bf16.mxu0 %v13651_v0  ;;  %v238_v25 = vld [vmem:[#allocation2 + $0x590] sm:$0xff] }
 0x14c   :  { %6720 = vmatprep.mubr.bf16.mxu1 %v13651_v0  ;;  %v5291_v53 = vpop.f32.mrf.mxu0  ;;  %v10637_v51 = vcombine.high %v110_v24, %v238_v25 }
 0x14d   :  { %v5332_v54 = vpop.f32.mrf.mxu1  ;;  %6660 = vmatpush1.bf16.msra.mxu0 %v10888_v38  ;;  %v10892_v38 = vcombine.low %v366_v12, %v494_v13  ;;  %v624_v53 = vld [vmem:[#allocation2 + $0x11a0] sm:$0x33] }
 0x14e   :  { %6701 = vmatpush1.bf16.msra.mxu1 %v10890_v39  ;;  %v5292_v7 = vpop.f32.mrf.mxu0  ;;  %6661 = vmatprep.subr.bf16.mxu0 %v10633_v47  ;;  %v10894_v39 = vcombine.low %v367_v16, %v495_v17  ;;  %v625_v54 = vld [vmem:[#allocation2 + $0x11a8] sm:$0x33]  ;;  %v11152_v11 = vcombine.low %v624_v53, %v624_v53  ;;  %v368_v13 = vld [vmem:[#allocation2 + $0x9a0] sm:$0xff] }
 0x14f   :  { %v5333_v8 = vpop.f32.mrf.mxu1  ;;  %6702 = vmatprep.subr.bf16.mxu1 %v10635_v48  ;;  %v11153_v7 = vcombine.high %v624_v53, %v624_v53  ;;  %v11155_v10 = vcombine.high %v625_v54, %v625_v54  ;;  %v11154_v12 = vcombine.low %v625_v54, %v625_v54  ;;  %v496_v16 = vld [vmem:[#allocation2 + $0xda0] sm:$0xff]  ;;  %v369_v17 = vld [vmem:[#allocation2 + $0x9a8] sm:$0xff] }
 0x150   :  { %v10896_v53 = vcombine.low %v368_v13, %v496_v16 }
 0x151   :  { %6662 = vmatpush1.bf16.msra.mxu0 %v10632_v59 }
 0x152   :  { %6703 = vmatpush1.bf16.msra.mxu1 %v10634_v60  ;;  %11404 = vmatprep.subr.msk.bf16.mxu0 %vm3910_vm0, %v11149_v6  ;;  %v10636_v60 = vcombine.low %v110_v24, %v238_v25  ;;  %v10638_v6 = vcombine.low %v111_v28, %v239_v29  ;;  %v112_v25 = vld [vmem:[#allocation2 + $0x1a0] sm:$0xff]  ;;  %v113_v29 = vld [vmem:[#allocation2 + $0x1a8] sm:$0xff] }
 0x153   :  { %11406 = vmatprep.subr.msk.bf16.mxu1 %vm3910_vm0, %v11151_v9  ;;  %v240_v28 = vld [vmem:[#allocation2 + $0x5a0] sm:$0xff] }
 0x154   :  { %v12296_v31 = vpop.f32.mrf.mxu0  ;;  %11401 = vmatmul.mubr.msk.bf16.vlgmr.msra.gmra.mxu0 %vm3906_vm1, %v12120_v46 }
 0x155   :  { %v12298_v32 = vpop.f32.mrf.mxu1  ;;  %11403 = vmatmul.mubr.msk.bf16.vlgmr.msra.gmra.mxu1 %vm3906_vm1, %v12120_v46  ;;  %6740 = vmatpush1.bf16.msra.mxu0 %v4212_v20  ;;  %v497_v20 = vld [vmem:[#allocation2 + $0xda8] sm:$0xff] }
 0x156   :  { %6781 = vmatpush1.bf16.msra.mxu1 %v4218_v21  ;;  %v12304_v47 = vpop.f32.mrf.mxu0  ;;  %6741 = vmatprep.subr.bf16.mxu0 %v10893_v22  ;;  %v4224_v21 = vsel %vm3910_vm0, %v11152_v11, 0  ;;  %v4230_v22 = vsel %vm3910_vm0, %v11154_v12, 0  ;;  %v10899_v24 = vcombine.high %v369_v17, %v497_v20  ;;  %v10898_v54 = vcombine.low %v369_v17, %v497_v20 }
 0x157   :  { %13654 = vst [vmem:[#allocation13_spill] sm:$0xff] %v12304_v47  ;;  %v12306_v48 = vpop.f32.mrf.mxu1  ;;  %6782 = vmatprep.subr.bf16.mxu1 %v10895_v23  ;;  %6761 = vmatprep.mubr.bf16.mxu0 %v13651_v0  ;;  %v10897_v23 = vcombine.high %v368_v13, %v496_v16  ;;  %v10640_v11 = vcombine.low %v112_v25, %v240_v28 }
 0x158   :  { %13655 = vst [vmem:[#allocation14_spill] sm:$0xff] %v12306_v48  ;;  %6802 = vmatprep.mubr.bf16.mxu1 %v13651_v0  ;;  %v5373_v59 = vpop.f32.mrf.mxu0 }
 0x159   :  { %v5414_v46 = vpop.f32.mrf.mxu1  ;;  %6742 = vmatpush1.bf16.msra.mxu0 %v10892_v38  ;;  %v241_v38 = vld [vmem:[#allocation2 + $0x5a8] sm:$0xff] }
 0x15a   :  { %6783 = vmatpush1.bf16.msra.mxu1 %v10894_v39  ;;  %v5374_v8 = vpop.f32.mrf.mxu0  ;;  %6743 = vmatprep.subr.bf16.mxu0 %v10637_v51  ;;  %v10642_v12 = vcombine.low %v113_v29, %v241_v38 }
 0x15b   :  { %v5415_v9 = vpop.f32.mrf.mxu1  ;;  %6784 = vmatprep.subr.bf16.mxu1 %v10639_v52  ;;  %v12318_v52 = vld [vmem:[#allocation5] sm:$0xf]  ;;  %v627_v8 = vld [vmem:[#allocation2 + $0x11b8] sm:$0x33] }
 0x15c   :  { %v11159_v20 = vcombine.high %v627_v8, %v627_v8 }
 0x15d   :  { %6744 = vmatpush1.bf16.msra.mxu0 %v10636_v60  ;;  %v10641_v60 = vcombine.high %v112_v25, %v240_v28 }
 0x15e   :  { %6785 = vmatpush1.bf16.msra.mxu1 %v10638_v6  ;;  %11408 = vmatprep.subr.msk.bf16.mxu0 %vm3910_vm0, %v11153_v7  ;;  %v10643_v6 = vcombine.high %v113_v29, %v241_v38  ;;  %v626_v7 = vld [vmem:[#allocation2 + $0x11b0] sm:$0x33] }
 0x15f   :  { %11410 = vmatprep.subr.msk.bf16.mxu1 %vm3910_vm0, %v11155_v10  ;;  %v11157_v13 = vcombine.high %v626_v7, %v626_v7 }
 0x160   :  { %v12314_v39 = vpop.f32.mrf.mxu0  ;;  %11405 = vmatmul.mubr.msk.bf16.vlgmr.msra.gmra.mxu0 %vm3906_vm1, %v12318_v52 }
 0x161   :  { %13656 = vst [vmem:[#allocation15_spill] sm:$0xff] %v12314_v39  ;;  %v12316_v51 = vpop.f32.mrf.mxu1  ;;  %11407 = vmatmul.mubr.msk.bf16.vlgmr.msra.gmra.mxu1 %vm3906_vm1, %v12318_v52  ;;  %6822 = vmatpush1.bf16.msra.mxu0 %v4224_v21  ;;  %v11156_v21 = vcombine.low %v626_v7, %v626_v7 }
 0x162   :  { %13657 = vst [vmem:[#allocation16_spill] sm:$0xff] %v12316_v51  ;;  %6863 = vmatpush1.bf16.msra.mxu1 %v4230_v22  ;;  %v12324_v59 = vpop.f32.mrf.mxu0  ;;  %6823 = vmatprep.subr.bf16.mxu0 %v10897_v23  ;;  %v11158_v22 = vcombine.low %v627_v8, %v627_v8  ;;  %v370_v23 = vld [vmem:[#allocation2 + $0x9b0] sm:$0xff] }
 0x163   :  { %13658 = vst [vmem:[#allocation17_spill] sm:$0xff] %v12324_v59  ;;  %v12326_v46 = vpop.f32.mrf.mxu1  ;;  %6864 = vmatprep.subr.bf16.mxu1 %v10899_v24  ;;  %6843 = vmatprep.mubr.bf16.mxu0 %v13651_v0  ;;  %v498_v24 = vld [vmem:[#allocation2 + $0xdb0] sm:$0xff]  ;;  %v4236_v25 = vsel %vm3910_vm0, %v11156_v21, 0 }
 0x164   :  { %13659 = vst [vmem:[#allocation18_spill] sm:$0xff] %v12326_v46  ;;  %6884 = vmatprep.mubr.bf16.mxu1 %v13651_v0  ;;  %v5455_v9 = vpop.f32.mrf.mxu0  ;;  %v499_v46 = vld [vmem:[#allocation2 + $0xdb8] sm:$0xff]  ;;  %v4242_v28 = vsel %vm3910_vm0, %v11158_v22, 0  ;;  %v10901_v29 = vcombine.high %v370_v23, %v498_v24 }
 0x165   :  { %v5496_v10 = vpop.f32.mrf.mxu1  ;;  %6824 = vmatpush1.bf16.msra.mxu0 %v10896_v53  ;;  %v10903_v38 = vcombine.high %v371_v18, %v499_v46  ;;  %v114_v53 = vld [vmem:[#allocation2 + $0x1b0] sm:$0xff]  ;;  %v10900_v9 = vcombine.low %v370_v23, %v498_v24 }
 0x166   :  { %6865 = vmatpush1.bf16.msra.mxu1 %v10898_v54  ;;  %v5456_v16 = vpop.f32.mrf.mxu0  ;;  %6825 = vmatprep.subr.bf16.mxu0 %v10641_v60  ;;  %v242_v54 = vld [vmem:[#allocation2 + $0x5b0] sm:$0xff]  ;;  %v115_v60 = vld [vmem:[#allocation2 + $0x1b8] sm:$0xff]  ;;  %v10902_v10 = vcombine.low %v371_v18, %v499_v46 }
 0x167   :  { %v5497_v17 = vpop.f32.mrf.mxu1  ;;  %6866 = vmatprep.subr.bf16.mxu1 %v10643_v6  ;;  %v243_v6 = vld [vmem:[#allocation2 + $0x5b8] sm:$0xff]  ;;  %v10644_v23 = vcombine.low %v114_v53, %v242_v54 }
 0x168   :  { %v10647_v16 = vcombine.high %v115_v60, %v243_v6  ;;  %v628_v17 = vld [vmem:[#allocation2 + $0x11c0] sm:$0x33]  ;;  %v10646_v18 = vcombine.low %v115_v60, %v243_v6 }
 0x169   :  { %6826 = vmatpush1.bf16.msra.mxu0 %v10640_v11  ;;  %v11161_v46 = vcombine.high %v628_v17, %v628_v17 }
 0x16a   :  { %6867 = vmatpush1.bf16.msra.mxu1 %v10642_v12  ;;  %11412 = vmatprep.subr.msk.bf16.mxu0 %vm3910_vm0, %v11157_v13  ;;  %v10645_v13 = vcombine.high %v114_v53, %v242_v54 }
 0x16b   :  { %11414 = vmatprep.subr.msk.bf16.mxu1 %vm3910_vm0, %v11159_v20  ;;  %v629_v20 = vld [vmem:[#allocation2 + $0x11c8] sm:$0x33] }
 0x16c   :  { %v12334_v7 = vpop.f32.mrf.mxu0  ;;  %11409 = vmatmul.mubr.msk.bf16.vlgmr.msra.gmra.mxu0 %vm3906_vm1, %v12318_v52 }
 0x16d   :  { %13660 = vst [vmem:[#allocation19_spill] sm:$0xff] %v12334_v7  ;;  %v12336_v8 = vpop.f32.mrf.mxu1  ;;  %11411 = vmatmul.mubr.msk.bf16.vlgmr.msra.gmra.mxu1 %vm3906_vm1, %v12318_v52  ;;  %6904 = vmatpush1.bf16.msra.mxu0 %v4236_v25  ;;  %v501_v7 = vld [vmem:[#allocation2 + $0xdc8] sm:$0xff] }
 0x16e   :  { %13661 = vst [vmem:[#allocation20_spill] sm:$0xff] %v12336_v8  ;;  %6945 = vmatpush1.bf16.msra.mxu1 %v4242_v28  ;;  %v12342_v11 = vpop.f32.mrf.mxu0  ;;  %6905 = vmatprep.subr.bf16.mxu0 %v10901_v29  ;;  %v11163_v28 = vcombine.high %v629_v20, %v629_v20  ;;  %v11160_v29 = vcombine.low %v628_v17, %v628_v17  ;;  %v373_v8 = vld [vmem:[#allocation2 + $0x9c8] sm:$0xff] }
 0x16f   :  { %13662 = vst [vmem:[#allocation21_spill] sm:$0xff] %v12342_v11  ;;  %v12344_v12 = vpop.f32.mrf.mxu1  ;;  %6946 = vmatprep.subr.bf16.mxu1 %v10903_v38  ;;  %6925 = vmatprep.mubr.bf16.mxu0 %v13651_v0  ;;  %v11162_v38 = vcombine.low %v629_v20, %v629_v20  ;;  %v500_v11 = vld [vmem:[#allocation2 + $0xdc0] sm:$0xff]  ;;  %v10907_v6 = vcombine.high %v373_v8, %v501_v7 }
 0x170   :  { %13663 = vst [vmem:[#allocation22_spill] sm:$0xff] %v12344_v12  ;;  %6966 = vmatprep.mubr.bf16.mxu1 %v13651_v0  ;;  %v5537_v21 = vpop.f32.mrf.mxu0  ;;  %v372_v12 = vld [vmem:[#allocation2 + $0x9c0] sm:$0xff]  ;;  %v4248_v53 = vsel %vm3910_vm0, %v11160_v29, 0 }
 0x171   :  { %v5578_v22 = vpop.f32.mrf.mxu1  ;;  %6906 = vmatpush1.bf16.msra.mxu0 %v10900_v9  ;;  %v4254_v54 = vsel %vm3910_vm0, %v11162_v38, 0  ;;  %v10905_v60 = vcombine.high %v372_v12, %v500_v11  ;;  %v116_v9 = vld [vmem:[#allocation2 + $0x1c0] sm:$0xff]  ;;  %v10904_v21 = vcombine.low %v372_v12, %v500_v11 }
 0x172   :  { %6947 = vmatpush1.bf16.msra.mxu1 %v10902_v10  ;;  %v5538_v24 = vpop.f32.mrf.mxu0  ;;  %6907 = vmatprep.subr.bf16.mxu0 %v10645_v13  ;;  %v244_v10 = vld [vmem:[#allocation2 + $0x5c0] sm:$0xff]  ;;  %v117_v13 = vld [vmem:[#allocation2 + $0x1c8] sm:$0xff]  ;;  %v10906_v22 = vcombine.low %v373_v8, %v501_v7 }
 0x173   :  { %v5579_v25 = vpop.f32.mrf.mxu1  ;;  %6948 = vmatprep.subr.bf16.mxu1 %v10647_v16  ;;  %v245_v16 = vld [vmem:[#allocation2 + $0x5c8] sm:$0xff]  ;;  %v10648_v11 = vcombine.low %v116_v9, %v244_v10 }
 0x174   :  { %v10651_v24 = vcombine.high %v117_v13, %v245_v16  ;;  %v630_v25 = vld [vmem:[#allocation2 + $0x11d0] sm:$0x33]  ;;  %v10650_v7 = vcombine.low %v117_v13, %v245_v16 }
 0x175   :  { %6908 = vmatpush1.bf16.msra.mxu0 %v10644_v23  ;;  %v11165_v8 = vcombine.high %v630_v25, %v630_v25 }
 0x176   :  { %6949 = vmatpush1.bf16.msra.mxu1 %v10646_v18  ;;  %11416 = vmatprep.subr.msk.bf16.mxu0 %vm3910_vm0, %v11161_v46  ;;  %v10649_v46 = vcombine.high %v116_v9, %v244_v10 }
 0x177   :  { %11418 = vmatprep.subr.msk.bf16.mxu1 %vm3910_vm0, %v11163_v28  ;;  %v631_v28 = vld [vmem:[#allocation2 + $0x11d8] sm:$0x33] }
 0x178   :  { %v12352_v17 = vpop.f32.mrf.mxu0  ;;  %11413 = vmatmul.mubr.msk.bf16.vlgmr.msra.gmra.mxu0 %vm3906_vm1, %v12318_v52 }
 0x179   :  { %13664 = vst [vmem:[#allocation23_spill] sm:$0xff] %v12352_v17  ;;  %v12354_v20 = vpop.f32.mrf.mxu1  ;;  %11415 = vmatmul.mubr.msk.bf16.vlgmr.msra.gmra.mxu1 %vm3906_vm1, %v12318_v52  ;;  %6986 = vmatpush1.bf16.msra.mxu0 %v4248_v53  ;;  %v503_v17 = vld [vmem:[#allocation2 + $0xdd8] sm:$0xff] }
 0x17a   :  { %13665 = vst [vmem:[#allocation24_spill] sm:$0xff] %v12354_v20  ;;  %7027 = vmatpush1.bf16.msra.mxu1 %v4254_v54  ;;  %v12360_v23 = vpop.f32.mrf.mxu0  ;;  %6987 = vmatprep.subr.bf16.mxu0 %v10905_v60  ;;  %v11167_v54 = vcombine.high %v631_v28, %v631_v28  ;;  %v11164_v60 = vcombine.low %v630_v25, %v630_v25  ;;  %v375_v20 = vld [vmem:[#allocation2 + $0x9d8] sm:$0xff] }
 0x17b   :  { %13666 = vst [vmem:[#allocation25_spill] sm:$0xff] %v12360_v23  ;;  %v12362_v18 = vpop.f32.mrf.mxu1  ;;  %7028 = vmatprep.subr.bf16.mxu1 %v10907_v6  ;;  %7007 = vmatprep.mubr.bf16.mxu0 %v13651_v0  ;;  %v11166_v6 = vcombine.low %v631_v28, %v631_v28  ;;  %v502_v23 = vld [vmem:[#allocation2 + $0xdd0] sm:$0xff]  ;;  %v10911_v16 = vcombine.high %v375_v20, %v503_v17 }
 0x17c   :  { %13667 = vst [vmem:[#allocation26_spill] sm:$0xff] %v12362_v18  ;;  %7048 = vmatprep.mubr.bf16.mxu1 %v13651_v0  ;;  %v5619_v29 = vpop.f32.mrf.mxu0  ;;  %v374_v18 = vld [vmem:[#allocation2 + $0x9d0] sm:$0xff]  ;;  %v4260_v9 = vsel %vm3910_vm0, %v11164_v60, 0 }
 0x17d   :  { %v5660_v38 = vpop.f32.mrf.mxu1  ;;  %6988 = vmatpush1.bf16.msra.mxu0 %v10904_v21  ;;  %v4266_v10 = vsel %vm3910_vm0, %v11166_v6, 0  ;;  %v10909_v13 = vcombine.high %v374_v18, %v502_v23  ;;  %v118_v21 = vld [vmem:[#allocation2 + $0x1d0] sm:$0xff]  ;;  %v10908_v29 = vcombine.low %v374_v18, %v502_v23 }
 0x17e   :  { %7029 = vmatpush1.bf16.msra.mxu1 %v10906_v22  ;;  %v5620_v12 = vpop.f32.mrf.mxu0  ;;  %6989 = vmatprep.subr.bf16.mxu0 %v10649_v46  ;;  %v246_v22 = vld [vmem:[#allocation2 + $0x5d0] sm:$0xff]  ;;  %v119_v46 = vld [vmem:[#allocation2 + $0x1d8] sm:$0xff]  ;;  %v10910_v38 = vcombine.low %v375_v20, %v503_v17 }
 0x17f   :  { %v5661_v53 = vpop.f32.mrf.mxu1  ;;  %7030 = vmatprep.subr.bf16.mxu1 %v10651_v24  ;;  %v247_v24 = vld [vmem:[#allocation2 + $0x5d8] sm:$0xff]  ;;  %v10652_v23 = vcombine.low %v118_v21, %v246_v22 }
 0x180   :  { %v10655_v12 = vcombine.high %v119_v46, %v247_v24  ;;  %v632_v53 = vld [vmem:[#allocation2 + $0x11e0] sm:$0x33]  ;;  %v10654_v17 = vcombine.low %v119_v46, %v247_v24 }
 0x181   :  { %6990 = vmatpush1.bf16.msra.mxu0 %v10648_v11  ;;  %v11169_v20 = vcombine.high %v632_v53, %v632_v53 }
 0x182   :  { %7031 = vmatpush1.bf16.msra.mxu1 %v10650_v7  ;;  %11420 = vmatprep.subr.msk.bf16.mxu0 %vm3910_vm0, %v11165_v8  ;;  %v10653_v8 = vcombine.high %v118_v21, %v246_v22 }
 0x183   :  { %11422 = vmatprep.subr.msk.bf16.mxu1 %vm3910_vm0, %v11167_v54  ;;  %v633_v54 = vld [vmem:[#allocation2 + $0x11e8] sm:$0x33] }
 0x184   :  { %v12370_v25 = vpop.f32.mrf.mxu0  ;;  %11417 = vmatmul.mubr.msk.bf16.vlgmr.msra.gmra.mxu0 %vm3906_vm1, %v12318_v52 }
 0x185   :  { %13668 = vst [vmem:[#allocation27_spill] sm:$0xff] %v12370_v25  ;;  %v12372_v28 = vpop.f32.mrf.mxu1  ;;  %11419 = vmatmul.mubr.msk.bf16.vlgmr.msra.gmra.mxu1 %vm3906_vm1, %v12318_v52  ;;  %7068 = vmatpush1.bf16.msra.mxu0 %v4260_v9  ;;  %v505_v25 = vld [vmem:[#allocation2 + $0xde8] sm:$0xff] }
 0x186   :  { %13669 = vst [vmem:[#allocation28_spill] sm:$0xff] %v12372_v28  ;;  %7109 = vmatpush1.bf16.msra.mxu1 %v4266_v10  ;;  %v12378_v11 = vpop.f32.mrf.mxu0  ;;  %7069 = vmatprep.subr.bf16.mxu0 %v10909_v13  ;;  %v11171_v10 = vcombine.high %v633_v54, %v633_v54  ;;  %v11168_v13 = vcombine.low %v632_v53, %v632_v53  ;;  %v377_v28 = vld [vmem:[#allocation2 + $0x9e8] sm:$0xff] }
 0x187   :  { %13670 = vst [vmem:[#allocation29_spill] sm:$0xff] %v12378_v11  ;;  %v12380_v7 = vpop.f32.mrf.mxu1  ;;  %7110 = vmatprep.subr.bf16.mxu1 %v10911_v16  ;;  %7089 = vmatprep.mubr.bf16.mxu0 %v13651_v0  ;;  %v11170_v16 = vcombine.low %v633_v54, %v633_v54  ;;  %v504_v11 = vld [vmem:[#allocation2 + $0xde0] sm:$0xff]  ;;  %v10915_v24 = vcombine.high %v377_v28, %v505_v25 }
 0x188   :  { %13671 = vst [vmem:[#allocation30_spill] sm:$0xff] %v12380_v7  ;;  %7130 = vmatprep.mubr.bf16.mxu1 %v13651_v0  ;;  %v5701_v60 = vpop.f32.mrf.mxu0  ;;  %v376_v7 = vld [vmem:[#allocation2 + $0x9e0] sm:$0xff]  ;;  %v4272_v21 = vsel %vm3910_vm0, %v11168_v13, 0 }
 0x189   :  { %v5742_v6 = vpop.f32.mrf.mxu1  ;;  %7070 = vmatpush1.bf16.msra.mxu0 %v10908_v29  ;;  %v4278_v22 = vsel %vm3910_vm0, %v11170_v16, 0  ;;  %v10913_v46 = vcombine.high %v376_v7, %v504_v11  ;;  %v120_v29 = vld [vmem:[#allocation2 + $0x1e0] sm:$0xff]  ;;  %v10912_v60 = vcombine.low %v376_v7, %v504_v11 }
 0x18a   :  { %7111 = vmatpush1.bf16.msra.mxu1 %v10910_v38  ;;  %v5702_v18 = vpop.f32.mrf.mxu0  ;;  %7071 = vmatprep.subr.bf16.mxu0 %v10653_v8  ;;  %v248_v38 = vld [vmem:[#allocation2 + $0x5e0] sm:$0xff]  ;;  %v121_v8 = vld [vmem:[#allocation2 + $0x1e8] sm:$0xff]  ;;  %v10914_v6 = vcombine.low %v377_v28, %v505_v25 }
 0x18b   :  { %v5743_v9 = vpop.f32.mrf.mxu1  ;;  %7112 = vmatprep.subr.bf16.mxu1 %v10655_v12  ;;  %v249_v12 = vld [vmem:[#allocation2 + $0x5e8] sm:$0xff]  ;;  %v10656_v11 = vcombine.low %v120_v29, %v248_v38 }
 0x18c   :  { %v10659_v18 = vcombine.high %v121_v8, %v249_v12  ;;  %v634_v9 = vld [vmem:[#allocation2 + $0x11f0] sm:$0x33]  ;;  %v10658_v25 = vcombine.low %v121_v8, %v249_v12 }
 0x18d   :  { %7072 = vmatpush1.bf16.msra.mxu0 %v10652_v23  ;;  %v11173_v28 = vcombine.high %v634_v9, %v634_v9 }
 0x18e   :  { %7113 = vmatpush1.bf16.msra.mxu1 %v10654_v17  ;;  %11424 = vmatprep.subr.msk.bf16.mxu0 %vm3910_vm0, %v11169_v20  ;;  %v10657_v20 = vcombine.high %v120_v29, %v248_v38 }
 0x18f   :  { %11426 = vmatprep.subr.msk.bf16.mxu1 %vm3910_vm0, %v11171_v10  ;;  %v635_v10 = vld [vmem:[#allocation2 + $0x11f8] sm:$0x33] }
 0x190   :  { %v12388_v53 = vpop.f32.mrf.mxu0  ;;  %11421 = vmatmul.mubr.msk.bf16.vlgmr.msra.gmra.mxu0 %vm3906_vm1, %v12318_v52 }
 0x191   :  { %13672 = vst [vmem:[#allocation31_spill] sm:$0xff] %v12388_v53  ;;  %v12390_v54 = vpop.f32.mrf.mxu1  ;;  %11423 = vmatmul.mubr.msk.bf16.vlgmr.msra.gmra.mxu1 %vm3906_vm1, %v12318_v52  ;;  %7150 = vmatpush1.bf16.msra.mxu0 %v4272_v21  ;;  %v507_v53 = vld [vmem:[#allocation2 + $0xdf8] sm:$0xff] }
 0x192   :  { %13673 = vst [vmem:[#allocation32_spill] sm:$0xff] %v12390_v54  ;;  %7191 = vmatpush1.bf16.msra.mxu1 %v4278_v22  ;;  %v12396_v23 = vpop.f32.mrf.mxu0  ;;  %7151 = vmatprep.subr.bf16.mxu0 %v10913_v46  ;;  %v11175_v22 = vcombine.high %v635_v10, %v635_v10  ;;  %v11172_v46 = vcombine.low %v634_v9, %v634_v9  ;;  %v379_v54 = vld [vmem:[#allocation2 + $0x9f8] sm:$0xff] }
 0x193   :  { %13674 = vst [vmem:[#allocation33_spill] sm:$0xff] %v12396_v23  ;;  %v12398_v17 = vpop.f32.mrf.mxu1  ;;  %7192 = vmatprep.subr.bf16.mxu1 %v10915_v24  ;;  %7171 = vmatprep.mubr.bf16.mxu0 %v13651_v0  ;;  %v11174_v24 = vcombine.low %v635_v10, %v635_v10  ;;  %v506_v23 = vld [vmem:[#allocation2 + $0xdf0] sm:$0xff]  ;;  %v10919_v12 = vcombine.high %v379_v54, %v507_v53 }
 0x194   :  { %13675 = vst [vmem:[#allocation34_spill] sm:$0xff] %v12398_v17  ;;  %7212 = vmatprep.mubr.bf16.mxu1 %v13651_v0  ;;  %v5783_v13 = vpop.f32.mrf.mxu0  ;;  %v378_v17 = vld [vmem:[#allocation2 + $0x9f0] sm:$0xff]  ;;  %v4284_v29 = vsel %vm3910_vm0, %v11172_v46, 0 }
 0x195   :  { %v5824_v16 = vpop.f32.mrf.mxu1  ;;  %7152 = vmatpush1.bf16.msra.mxu0 %v10912_v60  ;;  %v4290_v38 = vsel %vm3910_vm0, %v11174_v24, 0  ;;  %v10917_v8 = vcombine.high %v378_v17, %v506_v23  ;;  %v122_v60 = vld [vmem:[#allocation2 + $0x1f0] sm:$0xff]  ;;  %v10916_v13 = vcombine.low %v378_v17, %v506_v23 }
 0x196   :  { %7193 = vmatpush1.bf16.msra.mxu1 %v10914_v6  ;;  %v5784_v7 = vpop.f32.mrf.mxu0  ;;  %7153 = vmatprep.subr.bf16.mxu0 %v10657_v20  ;;  %v250_v6 = vld [vmem:[#allocation2 + $0x5f0] sm:$0xff]  ;;  %v123_v20 = vld [vmem:[#allocation2 + $0x1f8] sm:$0xff]  ;;  %v10918_v16 = vcombine.low %v379_v54, %v507_v53 }
 0x197   :  { %v5825_v21 = vpop.f32.mrf.mxu1  ;;  %7194 = vmatprep.subr.bf16.mxu1 %v10659_v18  ;;  %v251_v18 = vld [vmem:[#allocation2 + $0x5f8] sm:$0xff]  ;;  %v10660_v23 = vcombine.low %v122_v60, %v250_v6 }
 0x198   :  { %v10663_v7 = vcombine.high %v123_v20, %v251_v18  ;;  %v636_v21 = vld [vmem:[#allocation2 + $0x1200] sm:$0x33]  ;;  %v10662_v53 = vcombine.low %v123_v20, %v251_v18 }
 0x199   :  { %7154 = vmatpush1.bf16.msra.mxu0 %v10656_v11  ;;  %v11177_v54 = vcombine.high %v636_v21, %v636_v21 }
 0x19a   :  { %7195 = vmatpush1.bf16.msra.mxu1 %v10658_v25  ;;  %11428 = vmatprep.subr.msk.bf16.mxu0 %vm3910_vm0, %v11173_v28  ;;  %v10661_v28 = vcombine.high %v122_v60, %v250_v6 }
 0x19b   :  { %11430 = vmatprep.subr.msk.bf16.mxu1 %vm3910_vm0, %v11175_v22  ;;  %v637_v22 = vld [vmem:[#allocation2 + $0x1208] sm:$0x33] }
 0x19c   :  { %v12406_v9 = vpop.f32.mrf.mxu0  ;;  %11425 = vmatmul.mubr.msk.bf16.vlgmr.msra.gmra.mxu0 %vm3906_vm1, %v12318_v52 }
 0x19d   :  { %13676 = vst [vmem:[#allocation35_spill] sm:$0xff] %v12406_v9  ;;  %v12408_v10 = vpop.f32.mrf.mxu1  ;;  %11427 = vmatmul.mubr.msk.bf16.vlgmr.msra.gmra.mxu1 %vm3906_vm1, %v12318_v52  ;;  %7232 = vmatpush1.bf16.msra.mxu0 %v4284_v29  ;;  %v509_v9 = vld [vmem:[#allocation2 + $0xe08] sm:$0xff] }
 0x19e   :  { %13677 = vst [vmem:[#allocation36_spill] sm:$0xff] %v12408_v10  ;;  %7273 = vmatpush1.bf16.msra.mxu1 %v4290_v38  ;;  %v12414_v11 = vpop.f32.mrf.mxu0  ;;  %7233 = vmatprep.subr.bf16.mxu0 %v10917_v8  ;;  %v11179_v38 = vcombine.high %v637_v22, %v637_v22  ;;  %v11176_v8 = vcombine.low %v636_v21, %v636_v21  ;;  %v381_v10 = vld [vmem:[#allocation2 + $0xa08] sm:$0xff] }
 0x19f   :  { %13678 = vst [vmem:[#allocation37_spill] sm:$0xff] %v12414_v11  ;;  %v12416_v25 = vpop.f32.mrf.mxu1  ;;  %7274 = vmatprep.subr.bf16.mxu1 %v10919_v12  ;;  %7253 = vmatprep.mubr.bf16.mxu0 %v13651_v0  ;;  %v11178_v12 = vcombine.low %v637_v22, %v637_v22  ;;  %v508_v11 = vld [vmem:[#allocation2 + $0xe00] sm:$0xff]  ;;  %v10923_v18 = vcombine.high %v381_v10, %v509_v9 }
 0x1a0   :  { %13679 = vst [vmem:[#allocation38_spill] sm:$0xff] %v12416_v25  ;;  %7294 = vmatprep.mubr.bf16.mxu1 %v13651_v0  ;;  %v5865_v46 = vpop.f32.mrf.mxu0  ;;  %v380_v25 = vld [vmem:[#allocation2 + $0xa00] sm:$0xff]  ;;  %v4296_v60 = vsel %vm3910_vm0, %v11176_v8, 0 }
 0x1a1   :  { %v5906_v24 = vpop.f32.mrf.mxu1  ;;  %7234 = vmatpush1.bf16.msra.mxu0 %v10916_v13  ;;  %v4302_v6 = vsel %vm3910_vm0, %v11178_v12, 0  ;;  %v10921_v20 = vcombine.high %v380_v25, %v508_v11  ;;  %v124_v13 = vld [vmem:[#allocation2 + $0x200] sm:$0xff]  ;;  %v10920_v46 = vcombine.low %v380_v25, %v508_v11 }
 0x1a2   :  { %7275 = vmatpush1.bf16.msra.mxu1 %v10918_v16  ;;  %v5866_v17 = vpop.f32.mrf.mxu0  ;;  %7235 = vmatprep.subr.bf16.mxu0 %v10661_v28  ;;  %v252_v16 = vld [vmem:[#allocation2 + $0x600] sm:$0xff]  ;;  %v125_v28 = vld [vmem:[#allocation2 + $0x208] sm:$0xff]  ;;  %v10922_v24 = vcombine.low %v381_v10, %v509_v9 }
 0x1a3   :  { %v5907_v29 = vpop.f32.mrf.mxu1  ;;  %7276 = vmatprep.subr.bf16.mxu1 %v10663_v7  ;;  %v253_v7 = vld [vmem:[#allocation2 + $0x608] sm:$0xff]  ;;  %v10664_v11 = vcombine.low %v124_v13, %v252_v16 }
 0x1a4   :  { %v10667_v17 = vcombine.high %v125_v28, %v253_v7  ;;  %v638_v29 = vld [vmem:[#allocation2 + $0x1210] sm:$0x33]  ;;  %v10666_v9 = vcombine.low %v125_v28, %v253_v7 }
 0x1a5   :  { %7236 = vmatpush1.bf16.msra.mxu0 %v10660_v23  ;;  %v11181_v10 = vcombine.high %v638_v29, %v638_v29 }
 0x1a6   :  { %7277 = vmatpush1.bf16.msra.mxu1 %v10662_v53  ;;  %11432 = vmatprep.subr.msk.bf16.mxu0 %vm3910_vm0, %v11177_v54  ;;  %v10665_v54 = vcombine.high %v124_v13, %v252_v16 }
 0x1a7   :  { %11434 = vmatprep.subr.msk.bf16.mxu1 %vm3910_vm0, %v11179_v38  ;;  %v639_v38 = vld [vmem:[#allocation2 + $0x1218] sm:$0x33] }
 0x1a8   :  { %v12424_v21 = vpop.f32.mrf.mxu0  ;;  %11429 = vmatmul.mubr.msk.bf16.vlgmr.msra.gmra.mxu0 %vm3906_vm1, %v12318_v52 }
 0x1a9   :  { %13680 = vst [vmem:[#allocation39_spill] sm:$0xff] %v12424_v21  ;;  %v12426_v22 = vpop.f32.mrf.mxu1  ;;  %11431 = vmatmul.mubr.msk.bf16.vlgmr.msra.gmra.mxu1 %vm3906_vm1, %v12318_v52  ;;  %7314 = vmatpush1.bf16.msra.mxu0 %v4296_v60  ;;  %v511_v21 = vld [vmem:[#allocation2 + $0xe18] sm:$0xff] }
 0x1aa   :  { %13681 = vst [vmem:[#allocation40_spill] sm:$0xff] %v12426_v22  ;;  %7355 = vmatpush1.bf16.msra.mxu1 %v4302_v6  ;;  %v12432_v23 = vpop.f32.mrf.mxu0  ;;  %7315 = vmatprep.subr.bf16.mxu0 %v10921_v20  ;;  %v11183_v6 = vcombine.high %v639_v38, %v639_v38  ;;  %v11180_v20 = vcombine.low %v638_v29, %v638_v29  ;;  %v383_v22 = vld [vmem:[#allocation2 + $0xa18] sm:$0xff] }
 0x1ab   :  { %13682 = vst [vmem:[#allocation41_spill] sm:$0xff] %v12432_v23  ;;  %v12434_v53 = vpop.f32.mrf.mxu1  ;;  %7356 = vmatprep.subr.bf16.mxu1 %v10923_v18  ;;  %7335 = vmatprep.mubr.bf16.mxu0 %v13651_v0  ;;  %v11182_v18 = vcombine.low %v639_v38, %v639_v38  ;;  %v510_v23 = vld [vmem:[#allocation2 + $0xe10] sm:$0xff]  ;;  %v10927_v7 = vcombine.high %v383_v22, %v511_v21 }
 0x1ac   :  { %13683 = vst [vmem:[#allocation42_spill] sm:$0xff] %v12434_v53  ;;  %7376 = vmatprep.mubr.bf16.mxu1 %v13651_v0  ;;  %v5947_v8 = vpop.f32.mrf.mxu0  ;;  %v382_v53 = vld [vmem:[#allocation2 + $0xa10] sm:$0xff]  ;;  %v4308_v13 = vsel %vm3910_vm0, %v11180_v20, 0 }
 0x1ad   :  { %v5988_v12 = vpop.f32.mrf.mxu1  ;;  %7316 = vmatpush1.bf16.msra.mxu0 %v10920_v46  ;;  %v4314_v16 = vsel %vm3910_vm0, %v11182_v18, 0  ;;  %v10925_v28 = vcombine.high %v382_v53, %v510_v23  ;;  %v126_v46 = vld [vmem:[#allocation2 + $0x210] sm:$0xff]  ;;  %v10924_v8 = vcombine.low %v382_v53, %v510_v23 }
 0x1ae   :  { %7357 = vmatpush1.bf16.msra.mxu1 %v10922_v24  ;;  %v5948_v25 = vpop.f32.mrf.mxu0  ;;  %7317 = vmatprep.subr.bf16.mxu0 %v10665_v54  ;;  %v254_v24 = vld [vmem:[#allocation2 + $0x610] sm:$0xff]  ;;  %v127_v54 = vld [vmem:[#allocation2 + $0x218] sm:$0xff]  ;;  %v10926_v12 = vcombine.low %v383_v22, %v511_v21 }
 0x1af   :  { %v5989_v60 = vpop.f32.mrf.mxu1  ;;  %7358 = vmatprep.subr.bf16.mxu1 %v10667_v17  ;;  %v255_v17 = vld [vmem:[#allocation2 + $0x618] sm:$0xff]  ;;  %v10668_v23 = vcombine.low %v126_v46, %v254_v24 }
 0x1b0   :  { %v10671_v25 = vcombine.high %v127_v54, %v255_v17  ;;  %v640_v60 = vld [vmem:[#allocation2 + $0x1220] sm:$0x33]  ;;  %v10670_v21 = vcombine.low %v127_v54, %v255_v17 }
 0x1b1   :  { %7318 = vmatpush1.bf16.msra.mxu0 %v10664_v11  ;;  %v11185_v22 = vcombine.high %v640_v60, %v640_v60 }
 0x1b2   :  { %7359 = vmatpush1.bf16.msra.mxu1 %v10666_v9  ;;  %11436 = vmatprep.subr.msk.bf16.mxu0 %vm3910_vm0, %v11181_v10  ;;  %v10669_v10 = vcombine.high %v126_v46, %v254_v24 }
 0x1b3   :  { %11438 = vmatprep.subr.msk.bf16.mxu1 %vm3910_vm0, %v11183_v6  ;;  %v641_v6 = vld [vmem:[#allocation2 + $0x1228] sm:$0x33] }
 0x1b4   :  { %v12442_v29 = vpop.f32.mrf.mxu0  ;;  %11433 = vmatmul.mubr.msk.bf16.vlgmr.msra.gmra.mxu0 %vm3906_vm1, %v12318_v52 }
 0x1b5   :  { %13684 = vst [vmem:[#allocation43_spill] sm:$0xff] %v12442_v29  ;;  %v12444_v38 = vpop.f32.mrf.mxu1  ;;  %11435 = vmatmul.mubr.msk.bf16.vlgmr.msra.gmra.mxu1 %vm3906_vm1, %v12318_v52  ;;  %7396 = vmatpush1.bf16.msra.mxu0 %v4308_v13  ;;  %v513_v29 = vld [vmem:[#allocation2 + $0xe28] sm:$0xff] }
 0x1b6   :  { %13685 = vst [vmem:[#allocation44_spill] sm:$0xff] %v12444_v38  ;;  %7437 = vmatpush1.bf16.msra.mxu1 %v4314_v16  ;;  %v12450_v11 = vpop.f32.mrf.mxu0  ;;  %7397 = vmatprep.subr.bf16.mxu0 %v10925_v28  ;;  %v11187_v16 = vcombine.high %v641_v6, %v641_v6  ;;  %v11184_v28 = vcombine.low %v640_v60, %v640_v60  ;;  %v385_v38 = vld [vmem:[#allocation2 + $0xa28] sm:$0xff] }
 0x1b7   :  { %13686 = vst [vmem:[#allocation45_spill] sm:$0xff] %v12450_v11  ;;  %v12452_v9 = vpop.f32.mrf.mxu1  ;;  %7438 = vmatprep.subr.bf16.mxu1 %v10927_v7  ;;  %7417 = vmatprep.mubr.bf16.mxu0 %v13651_v0  ;;  %v11186_v7 = vcombine.low %v641_v6, %v641_v6  ;;  %v512_v11 = vld [vmem:[#allocation2 + $0xe20] sm:$0xff]  ;;  %v10931_v17 = vcombine.high %v385_v38, %v513_v29 }
 0x1b8   :  { %13687 = vst [vmem:[#allocation46_spill] sm:$0xff] %v12452_v9  ;;  %7458 = vmatprep.mubr.bf16.mxu1 %v13651_v0  ;;  %v6029_v20 = vpop.f32.mrf.mxu0  ;;  %v384_v9 = vld [vmem:[#allocation2 + $0xa20] sm:$0xff]  ;;  %v4320_v46 = vsel %vm3910_vm0, %v11184_v28, 0 }
 0x1b9   :  { %v6070_v18 = vpop.f32.mrf.mxu1  ;;  %7398 = vmatpush1.bf16.msra.mxu0 %v10924_v8  ;;  %v4326_v24 = vsel %vm3910_vm0, %v11186_v7, 0  ;;  %v10929_v54 = vcombine.high %v384_v9, %v512_v11  ;;  %v128_v8 = vld [vmem:[#allocation2 + $0x220] sm:$0xff]  ;;  %v10928_v20 = vcombine.low %v384_v9, %v512_v11 }
 0x1ba   :  { %7439 = vmatpush1.bf16.msra.mxu1 %v10926_v12  ;;  %v6030_v53 = vpop.f32.mrf.mxu0  ;;  %7399 = vmatprep.subr.bf16.mxu0 %v10669_v10  ;;  %v256_v12 = vld [vmem:[#allocation2 + $0x620] sm:$0xff]  ;;  %v129_v10 = vld [vmem:[#allocation2 + $0x228] sm:$0xff]  ;;  %v10930_v18 = vcombine.low %v385_v38, %v513_v29 }
 0x1bb   :  { %v6071_v13 = vpop.f32.mrf.mxu1  ;;  %7440 = vmatprep.subr.bf16.mxu1 %v10671_v25  ;;  %v257_v25 = vld [vmem:[#allocation2 + $0x628] sm:$0xff]  ;;  %v10672_v11 = vcombine.low %v128_v8, %v256_v12 }
 0x1bc   :  { %v10675_v53 = vcombine.high %v129_v10, %v257_v25  ;;  %v642_v13 = vld [vmem:[#allocation2 + $0x1230] sm:$0x33]  ;;  %v10674_v29 = vcombine.low %v129_v10, %v257_v25 }
 0x1bd   :  { %7400 = vmatpush1.bf16.msra.mxu0 %v10668_v23  ;;  %v11189_v38 = vcombine.high %v642_v13, %v642_v13 }
 0x1be   :  { %7441 = vmatpush1.bf16.msra.mxu1 %v10670_v21  ;;  %11440 = vmatprep.subr.msk.bf16.mxu0 %vm3910_vm0, %v11185_v22  ;;  %v10673_v22 = vcombine.high %v128_v8, %v256_v12 }
 0x1bf   :  { %11442 = vmatprep.subr.msk.bf16.mxu1 %vm3910_vm0, %v11187_v16  ;;  %v643_v16 = vld [vmem:[#allocation2 + $0x1238] sm:$0x33] }
 0x1c0   :  { %v12460_v60 = vpop.f32.mrf.mxu0  ;;  %11437 = vmatmul.mubr.msk.bf16.vlgmr.msra.gmra.mxu0 %vm3906_vm1, %v12318_v52 }
 0x1c1   :  { %13688 = vst [vmem:[#allocation47_spill] sm:$0xff] %v12460_v60  ;;  %v12462_v6 = vpop.f32.mrf.mxu1  ;;  %11439 = vmatmul.mubr.msk.bf16.vlgmr.msra.gmra.mxu1 %vm3906_vm1, %v12318_v52  ;;  %7478 = vmatpush1.bf16.msra.mxu0 %v4320_v46  ;;  %v515_v60 = vld [vmem:[#allocation2 + $0xe38] sm:$0xff] }
 0x1c2   :  { %13689 = vst [vmem:[#allocation48_spill] sm:$0xff] %v12462_v6  ;;  %7519 = vmatpush1.bf16.msra.mxu1 %v4326_v24  ;;  %v12468_v23 = vpop.f32.mrf.mxu0  ;;  %7479 = vmatprep.subr.bf16.mxu0 %v10929_v54  ;;  %v11191_v24 = vcombine.high %v643_v16, %v643_v16  ;;  %v11188_v54 = vcombine.low %v642_v13, %v642_v13  ;;  %v387_v6 = vld [vmem:[#allocation2 + $0xa38] sm:$0xff] }
 0x1c3   :  { %13690 = vst [vmem:[#allocation49_spill] sm:$0xff] %v12468_v23  ;;  %v12470_v21 = vpop.f32.mrf.mxu1  ;;  %7520 = vmatprep.subr.bf16.mxu1 %v10931_v17  ;;  %7499 = vmatprep.mubr.bf16.mxu0 %v13651_v0  ;;  %v11190_v17 = vcombine.low %v643_v16, %v643_v16  ;;  %v514_v23 = vld [vmem:[#allocation2 + $0xe30] sm:$0xff]  ;;  %v10935_v25 = vcombine.high %v387_v6, %v515_v60 }
 0x1c4   :  { %13691 = vst [vmem:[#allocation50_spill] sm:$0xff] %v12470_v21  ;;  %7540 = vmatprep.mubr.bf16.mxu1 %v13651_v0  ;;  %v6111_v28 = vpop.f32.mrf.mxu0  ;;  %v386_v21 = vld [vmem:[#allocation2 + $0xa30] sm:$0xff]  ;;  %v4332_v8 = vsel %vm3910_vm0, %v11188_v54, 0 }
 0x1c5   :  { %v6152_v7 = vpop.f32.mrf.mxu1  ;;  %7480 = vmatpush1.bf16.msra.mxu0 %v10928_v20  ;;  %v4338_v12 = vsel %vm3910_vm0, %v11190_v17, 0  ;;  %v10933_v10 = vcombine.high %v386_v21, %v514_v23  ;;  %v130_v20 = vld [vmem:[#allocation2 + $0x230] sm:$0xff]  ;;  %v10932_v28 = vcombine.low %v386_v21, %v514_v23 }
 0x1c6   :  { %7521 = vmatpush1.bf16.msra.mxu1 %v10930_v18  ;;  %v6112_v9 = vpop.f32.mrf.mxu0  ;;  %7481 = vmatprep.subr.bf16.mxu0 %v10673_v22  ;;  %v258_v18 = vld [vmem:[#allocation2 + $0x630] sm:$0xff]  ;;  %v131_v22 = vld [vmem:[#allocation2 + $0x238] sm:$0xff]  ;;  %v10934_v7 = vcombine.low %v387_v6, %v515_v60 }
 0x1c7   :  { %v6153_v46 = vpop.f32.mrf.mxu1  ;;  %7522 = vmatprep.subr.bf16.mxu1 %v10675_v53  ;;  %v259_v53 = vld [vmem:[#allocation2 + $0x638] sm:$0xff]  ;;  %v10676_v23 = vcombine.low %v130_v20, %v258_v18 }
 0x1c8   :  { %v10679_v9 = vcombine.high %v131_v22, %v259_v53  ;;  %v644_v46 = vld [vmem:[#allocation2 + $0x1240] sm:$0x33]  ;;  %v10678_v60 = vcombine.low %v131_v22, %v259_v53 }
 0x1c9   :  { %7482 = vmatpush1.bf16.msra.mxu0 %v10672_v11  ;;  %v11193_v6 = vcombine.high %v644_v46, %v644_v46 }
 0x1ca   :  { %7523 = vmatpush1.bf16.msra.mxu1 %v10674_v29  ;;  %11444 = vmatprep.subr.msk.bf16.mxu0 %vm3910_vm0, %v11189_v38  ;;  %v10677_v38 = vcombine.high %v130_v20, %v258_v18 }
 0x1cb   :  { %11446 = vmatprep.subr.msk.bf16.mxu1 %vm3910_vm0, %v11191_v24  ;;  %v645_v24 = vld [vmem:[#allocation2 + $0x1248] sm:$0x33] }
 0x1cc   :  { %v12478_v13 = vpop.f32.mrf.mxu0  ;;  %11441 = vmatmul.mubr.msk.bf16.vlgmr.msra.gmra.mxu0 %vm3906_vm1, %v12318_v52 }
 0x1cd   :  { %13692 = vst [vmem:[#allocation51_spill] sm:$0xff] %v12478_v13  ;;  %v12480_v16 = vpop.f32.mrf.mxu1  ;;  %11443 = vmatmul.mubr.msk.bf16.vlgmr.msra.gmra.mxu1 %vm3906_vm1, %v12318_v52  ;;  %7560 = vmatpush1.bf16.msra.mxu0 %v4332_v8  ;;  %v517_v13 = vld [vmem:[#allocation2 + $0xe48] sm:$0xff] }
 0x1ce   :  { %13693 = vst [vmem:[#allocation52_spill] sm:$0xff] %v12480_v16  ;;  %7601 = vmatpush1.bf16.msra.mxu1 %v4338_v12  ;;  %v12486_v11 = vpop.f32.mrf.mxu0  ;;  %7561 = vmatprep.subr.bf16.mxu0 %v10933_v10  ;;  %v11195_v12 = vcombine.high %v645_v24, %v645_v24  ;;  %v11192_v10 = vcombine.low %v644_v46, %v644_v46  ;;  %v389_v16 = vld [vmem:[#allocation2 + $0xa48] sm:$0xff] }
 0x1cf   :  { %13694 = vst [vmem:[#allocation53_spill] sm:$0xff] %v12486_v11  ;;  %v12488_v29 = vpop.f32.mrf.mxu1  ;;  %7602 = vmatprep.subr.bf16.mxu1 %v10935_v25  ;;  %7581 = vmatprep.mubr.bf16.mxu0 %v13651_v0  ;;  %v11194_v25 = vcombine.low %v645_v24, %v645_v24  ;;  %v516_v11 = vld [vmem:[#allocation2 + $0xe40] sm:$0xff]  ;;  %v10939_v53 = vcombine.high %v389_v16, %v517_v13 }
 0x1d0   :  { %13695 = vst [vmem:[#allocation54_spill] sm:$0xff] %v12488_v29  ;;  %7622 = vmatprep.mubr.bf16.mxu1 %v13651_v0  ;;  %v6193_v54 = vpop.f32.mrf.mxu0  ;;  %v388_v29 = vld [vmem:[#allocation2 + $0xa40] sm:$0xff]  ;;  %v4344_v20 = vsel %vm3910_vm0, %v11192_v10, 0 }
 0x1d1   :  { %v6234_v17 = vpop.f32.mrf.mxu1  ;;  %7562 = vmatpush1.bf16.msra.mxu0 %v10932_v28  ;;  %v4350_v18 = vsel %vm3910_vm0, %v11194_v25, 0  ;;  %v10937_v22 = vcombine.high %v388_v29, %v516_v11  ;;  %v132_v28 = vld [vmem:[#allocation2 + $0x240] sm:$0xff]  ;;  %v10936_v54 = vcombine.low %v388_v29, %v516_v11 }
 0x1d2   :  { %7603 = vmatpush1.bf16.msra.mxu1 %v10934_v7  ;;  %v6194_v21 = vpop.f32.mrf.mxu0  ;;  %7563 = vmatprep.subr.bf16.mxu0 %v10677_v38  ;;  %v260_v7 = vld [vmem:[#allocation2 + $0x640] sm:$0xff]  ;;  %v133_v38 = vld [vmem:[#allocation2 + $0x248] sm:$0xff]  ;;  %v10938_v17 = vcombine.low %v389_v16, %v517_v13 }
 0x1d3   :  { %v6235_v8 = vpop.f32.mrf.mxu1  ;;  %7604 = vmatprep.subr.bf16.mxu1 %v10679_v9  ;;  %v261_v9 = vld [vmem:[#allocation2 + $0x648] sm:$0xff]  ;;  %v10680_v11 = vcombine.low %v132_v28, %v260_v7 }
 0x1d4   :  { %v10683_v21 = vcombine.high %v133_v38, %v261_v9  ;;  %v646_v8 = vld [vmem:[#allocation2 + $0x1250] sm:$0x33]  ;;  %v10682_v13 = vcombine.low %v133_v38, %v261_v9 }
 0x1d5   :  { %7564 = vmatpush1.bf16.msra.mxu0 %v10676_v23  ;;  %v11197_v16 = vcombine.high %v646_v8, %v646_v8 }
 0x1d6   :  { %7605 = vmatpush1.bf16.msra.mxu1 %v10678_v60  ;;  %11448 = vmatprep.subr.msk.bf16.mxu0 %vm3910_vm0, %v11193_v6  ;;  %v10681_v6 = vcombine.high %v132_v28, %v260_v7 }
 0x1d7   :  { %11450 = vmatprep.subr.msk.bf16.mxu1 %vm3910_vm0, %v11195_v12  ;;  %v647_v12 = vld [vmem:[#allocation2 + $0x1258] sm:$0x33] }
 0x1d8   :  { %v12496_v46 = vpop.f32.mrf.mxu0  ;;  %11445 = vmatmul.mubr.msk.bf16.vlgmr.msra.gmra.mxu0 %vm3906_vm1, %v12318_v52 }
 0x1d9   :  { %13696 = vst [vmem:[#allocation55_spill] sm:$0xff] %v12496_v46  ;;  %v12498_v24 = vpop.f32.mrf.mxu1  ;;  %11447 = vmatmul.mubr.msk.bf16.vlgmr.msra.gmra.mxu1 %vm3906_vm1, %v12318_v52  ;;  %7642 = vmatpush1.bf16.msra.mxu0 %v4344_v20  ;;  %v11199_v20 = vcombine.high %v647_v12, %v647_v12  ;;  %v521_v46 = vld [vmem:[#allocation2 + $0xe68] sm:$0xff] }
 0x1da   :  { %13697 = vst [vmem:[#allocation56_spill] sm:$0xff] %v12498_v24  ;;  %7683 = vmatpush1.bf16.msra.mxu1 %v4350_v18  ;;  %v12504_v23 = vpop.f32.mrf.mxu0  ;;  %7643 = vmatprep.subr.bf16.mxu0 %v10937_v22  ;;  %v11196_v18 = vcombine.low %v646_v8, %v646_v8  ;;  %v11198_v22 = vcombine.low %v647_v12, %v647_v12  ;;  %v519_v24 = vld [vmem:[#allocation2 + $0xe58] sm:$0xff] }
 0x1db   :  { %13698 = vst [vmem:[#allocation57_spill] sm:$0xff] %v12504_v23  ;;  %v12506_v60 = vpop.f32.mrf.mxu1  ;;  %7684 = vmatprep.subr.bf16.mxu1 %v10939_v53  ;;  %7663 = vmatprep.mubr.bf16.mxu0 %v13651_v0  ;;  %v390_v53 = vld [vmem:[#allocation2 + $0xa50] sm:$0xff]  ;;  %v391_v23 = vld [vmem:[#allocation2 + $0xa58] sm:$0xff] }
 0x1dc   :  { %13699 = vst [vmem:[#allocation58_spill] sm:$0xff] %v12506_v60  ;;  %7704 = vmatprep.mubr.bf16.mxu1 %v13651_v0  ;;  %v6275_v10 = vpop.f32.mrf.mxu0  ;;  %v518_v60 = vld [vmem:[#allocation2 + $0xe50] sm:$0xff]  ;;  %v4356_v28 = vsel %vm3910_vm0, %v11196_v18, 0  ;;  %v4362_v7 = vsel %vm3910_vm0, %v11198_v22, 0  ;;  %v10943_v9 = vcombine.high %v391_v23, %v519_v24  ;;  %v649_v18 = vld [vmem:[#allocation2 + $0x1268] sm:$0x33] }
 0x1dd   :  { %v6316_v52 = vpop.f32.mrf.mxu1  ;;  %7644 = vmatpush1.bf16.msra.mxu0 %v10936_v54  ;;  %v10941_v38 = vcombine.high %v390_v53, %v518_v60  ;;  %v134_v54 = vld [vmem:[#allocation2 + $0x250] sm:$0xff]  ;;  %v12518_v10 = vld [vmem:[#allocation5] sm:$0xf] }
 0x1de   :  { %7685 = vmatpush1.bf16.msra.mxu1 %v10938_v17  ;;  %v6276_v29 = vpop.f32.mrf.mxu0  ;;  %7645 = vmatprep.subr.bf16.mxu0 %v10681_v6  ;;  %v262_v17 = vld [vmem:[#allocation2 + $0x650] sm:$0xff]  ;;  %v135_v6 = vld [vmem:[#allocation2 + $0x258] sm:$0xff]  ;;  %v10940_v52 = vcombine.low %v390_v53, %v518_v60 }
 0x1df   :  { %v6317_v25 = vpop.f32.mrf.mxu1  ;;  %7686 = vmatprep.subr.bf16.mxu1 %v10683_v21  ;;  %v263_v21 = vld [vmem:[#allocation2 + $0x658] sm:$0xff]  ;;  %v10685_v29 = vcombine.high %v134_v54, %v262_v17  ;;  %v10684_v60 = vcombine.low %v134_v54, %v262_v17 }
 0x1e0   :  { %v10687_v25 = vcombine.high %v135_v6, %v263_v21 }
 0x1e1   :  { %7646 = vmatpush1.bf16.msra.mxu0 %v10680_v11  ;;  %v10942_v11 = vcombine.low %v391_v23, %v519_v24  ;;  %v10686_v24 = vcombine.low %v135_v6, %v263_v21 }
 0x1e2   :  { %7687 = vmatpush1.bf16.msra.mxu1 %v10682_v13  ;;  %11452 = vmatprep.subr.msk.bf16.mxu0 %vm3910_vm0, %v11197_v16 }
 0x1e3   :  { %11454 = vmatprep.subr.msk.bf16.mxu1 %vm3910_vm0, %v11199_v20  ;;  %v648_v20 = vld [vmem:[#allocation2 + $0x1260] sm:$0x33] }
 0x1e4   :  { %v12514_v8 = vpop.f32.mrf.mxu0  ;;  %11449 = vmatmul.mubr.msk.bf16.vlgmr.msra.gmra.mxu0 %vm3906_vm1, %v12518_v10  ;;  %v11201_v23 = vcombine.high %v648_v20, %v648_v20 }
 0x1e5   :  { %13700 = vst [vmem:[#allocation59_spill] sm:$0xff] %v12514_v8  ;;  %v12516_v12 = vpop.f32.mrf.mxu1  ;;  %11451 = vmatmul.mubr.msk.bf16.vlgmr.msra.gmra.mxu1 %vm3906_vm1, %v12518_v10  ;;  %7724 = vmatpush1.bf16.msra.mxu0 %v4356_v28  ;;  %v393_v8 = vld [vmem:[#allocation2 + $0xa68] sm:$0xff] }
 0x1e6   :  { %13701 = vst [vmem:[#allocation60_spill] sm:$0xff] %v12516_v12  ;;  %7765 = vmatpush1.bf16.msra.mxu1 %v4362_v7  ;;  %v12524_v13 = vpop.f32.mrf.mxu0  ;;  %7725 = vmatprep.subr.bf16.mxu0 %v10941_v38  ;;  %v11203_v7 = vcombine.high %v649_v18, %v649_v18  ;;  %v11200_v38 = vcombine.low %v648_v20, %v648_v20 }
 0x1e7   :  { %13702 = vst [vmem:[#allocation61_spill] sm:$0xff] %v12524_v13  ;;  %v12526_v16 = vpop.f32.mrf.mxu1  ;;  %7766 = vmatprep.subr.bf16.mxu1 %v10943_v9  ;;  %7745 = vmatprep.mubr.bf16.mxu0 %v13651_v0  ;;  %v11202_v9 = vcombine.low %v649_v18, %v649_v18  ;;  %v520_v13 = vld [vmem:[#allocation2 + $0xe60] sm:$0xff]  ;;  %v10947_v21 = vcombine.high %v393_v8, %v521_v46 }
 0x1e8   :  { %13703 = vst [vmem:[#allocation62_spill] sm:$0xff] %v12526_v16  ;;  %7786 = vmatprep.mubr.bf16.mxu1 %v13651_v0  ;;  %v6357_v22 = vpop.f32.mrf.mxu0  ;;  %v392_v16 = vld [vmem:[#allocation2 + $0xa60] sm:$0xff]  ;;  %v4368_v54 = vsel %vm3910_vm0, %v11200_v38, 0 }
 0x1e9   :  { %v6398_v12 = vpop.f32.mrf.mxu1  ;;  %7726 = vmatpush1.bf16.msra.mxu0 %v10940_v52  ;;  %v4374_v17 = vsel %vm3910_vm0, %v11202_v9, 0  ;;  %v10945_v6 = vcombine.high %v392_v16, %v520_v13  ;;  %v264_v52 = vld [vmem:[#allocation2 + $0x660] sm:$0xff]  ;;  %v10944_v18 = vcombine.low %v392_v16, %v520_v13  ;;  %v10946_v22 = vcombine.low %v393_v8, %v521_v46 }
 0x1ea   :  { %7767 = vmatpush1.bf16.msra.mxu1 %v10942_v11  ;;  %v6358_v53 = vpop.f32.mrf.mxu0  ;;  %7727 = vmatprep.subr.bf16.mxu0 %v10685_v29  ;;  %v136_v12 = vld [vmem:[#allocation2 + $0x260] sm:$0xff]  ;;  %v137_v11 = vld [vmem:[#allocation2 + $0x268] sm:$0xff] }
 0x1eb   :  { %v6399_v28 = vpop.f32.mrf.mxu1  ;;  %7768 = vmatprep.subr.bf16.mxu1 %v10687_v25  ;;  %v265_v29 = vld [vmem:[#allocation2 + $0x668] sm:$0xff]  ;;  %v10688_v13 = vcombine.low %v136_v12, %v264_v52 }
 0x1ec   :  { %v10691_v53 = vcombine.high %v137_v11, %v265_v29  ;;  %v650_v28 = vld [vmem:[#allocation2 + $0x1270] sm:$0x33]  ;;  %v10690_v46 = vcombine.low %v137_v11, %v265_v29 }
 0x1ed   :  { %7728 = vmatpush1.bf16.msra.mxu0 %v10684_v60  ;;  %v11205_v8 = vcombine.high %v650_v28, %v650_v28 }
 0x1ee   :  { %7769 = vmatpush1.bf16.msra.mxu1 %v10686_v24  ;;  %11456 = vmatprep.subr.msk.bf16.mxu0 %vm3910_vm0, %v11201_v23  ;;  %v10689_v23 = vcombine.high %v136_v12, %v264_v52 }
 0x1ef   :  { %11458 = vmatprep.subr.msk.bf16.mxu1 %vm3910_vm0, %v11203_v7  ;;  %v651_v7 = vld [vmem:[#allocation2 + $0x1278] sm:$0x33] }
 0x1f0   :  { %v12534_v25 = vpop.f32.mrf.mxu0  ;;  %11453 = vmatmul.mubr.msk.bf16.vlgmr.msra.gmra.mxu0 %vm3906_vm1, %v12518_v10 }
 0x1f1   :  { %13704 = vst [vmem:[#allocation63_spill] sm:$0xff] %v12534_v25  ;;  %v12536_v20 = vpop.f32.mrf.mxu1  ;;  %11455 = vmatmul.mubr.msk.bf16.vlgmr.msra.gmra.mxu1 %vm3906_vm1, %v12518_v10  ;;  %7806 = vmatpush1.bf16.msra.mxu0 %v4368_v54  ;;  %v523_v25 = vld [vmem:[#allocation2 + $0xe78] sm:$0xff] }
 0x1f2   :  { %13705 = vst [vmem:[#allocation64_spill] sm:$0xff] %v12536_v20  ;;  %7847 = vmatpush1.bf16.msra.mxu1 %v4374_v17  ;;  %v12542_v60 = vpop.f32.mrf.mxu0  ;;  %7807 = vmatprep.subr.bf16.mxu0 %v10945_v6  ;;  %v11207_v17 = vcombine.high %v651_v7, %v651_v7  ;;  %v11204_v6 = vcombine.low %v650_v28, %v650_v28  ;;  %v395_v20 = vld [vmem:[#allocation2 + $0xa78] sm:$0xff] }
 0x1f3   :  { %13706 = vst [vmem:[#allocation65_spill] sm:$0xff] %v12542_v60  ;;  %v12544_v24 = vpop.f32.mrf.mxu1  ;;  %7848 = vmatprep.subr.bf16.mxu1 %v10947_v21  ;;  %7827 = vmatprep.mubr.bf16.mxu0 %v13651_v0  ;;  %v11206_v21 = vcombine.low %v651_v7, %v651_v7  ;;  %v522_v60 = vld [vmem:[#allocation2 + $0xe70] sm:$0xff]  ;;  %v10951_v29 = vcombine.high %v395_v20, %v523_v25 }
 0x1f4   :  { %13707 = vst [vmem:[#allocation66_spill] sm:$0xff] %v12544_v24  ;;  %7868 = vmatprep.mubr.bf16.mxu1 %v13651_v0  ;;  %v6439_v38 = vpop.f32.mrf.mxu0  ;;  %v394_v24 = vld [vmem:[#allocation2 + $0xa70] sm:$0xff]  ;;  %v4380_v12 = vsel %vm3910_vm0, %v11204_v6, 0 }
 0x1f5   :  { %v6480_v9 = vpop.f32.mrf.mxu1  ;;  %7808 = vmatpush1.bf16.msra.mxu0 %v10944_v18  ;;  %v4386_v52 = vsel %vm3910_vm0, %v11206_v21, 0  ;;  %v10949_v11 = vcombine.high %v394_v24, %v522_v60  ;;  %v138_v18 = vld [vmem:[#allocation2 + $0x270] sm:$0xff]  ;;  %v10948_v38 = vcombine.low %v394_v24, %v522_v60 }
 0x1f6   :  { %7849 = vmatpush1.bf16.msra.mxu1 %v10946_v22  ;;  %v6440_v16 = vpop.f32.mrf.mxu0  ;;  %7809 = vmatprep.subr.bf16.mxu0 %v10689_v23  ;;  %v266_v22 = vld [vmem:[#allocation2 + $0x670] sm:$0xff]  ;;  %v139_v23 = vld [vmem:[#allocation2 + $0x278] sm:$0xff]  ;;  %v10950_v9 = vcombine.low %v395_v20, %v523_v25 }
 0x1f7   :  { %v6481_v54 = vpop.f32.mrf.mxu1  ;;  %7850 = vmatprep.subr.bf16.mxu1 %v10691_v53  ;;  %v267_v53 = vld [vmem:[#allocation2 + $0x678] sm:$0xff]  ;;  %v10692_v60 = vcombine.low %v138_v18, %v266_v22 }
 0x1f8   :  { %v10695_v16 = vcombine.high %v139_v23, %v267_v53  ;;  %v652_v54 = vld [vmem:[#allocation2 + $0x1280] sm:$0x33]  ;;  %v10694_v25 = vcombine.low %v139_v23, %v267_v53 }
 0x1f9   :  { %7810 = vmatpush1.bf16.msra.mxu0 %v10688_v13  ;;  %v11209_v20 = vcombine.high %v652_v54, %v652_v54 }
 0x1fa   :  { %7851 = vmatpush1.bf16.msra.mxu1 %v10690_v46  ;;  %11460 = vmatprep.subr.msk.bf16.mxu0 %vm3910_vm0, %v11205_v8  ;;  %v10693_v8 = vcombine.high %v138_v18, %v266_v22 }
 0x1fb   :  { %11462 = vmatprep.subr.msk.bf16.mxu1 %vm3910_vm0, %v11207_v17  ;;  %v653_v17 = vld [vmem:[#allocation2 + $0x1288] sm:$0x33] }
 0x1fc   :  { %v12552_v28 = vpop.f32.mrf.mxu0  ;;  %11457 = vmatmul.mubr.msk.bf16.vlgmr.msra.gmra.mxu0 %vm3906_vm1, %v12518_v10 }
 0x1fd   :  { %13708 = vst [vmem:[#allocation67_spill] sm:$0xff] %v12552_v28  ;;  %v12554_v7 = vpop.f32.mrf.mxu1  ;;  %11459 = vmatmul.mubr.msk.bf16.vlgmr.msra.gmra.mxu1 %vm3906_vm1, %v12518_v10  ;;  %7888 = vmatpush1.bf16.msra.mxu0 %v4380_v12  ;;  %v525_v28 = vld [vmem:[#allocation2 + $0xe88] sm:$0xff] }
 0x1fe   :  { %13709 = vst [vmem:[#allocation68_spill] sm:$0xff] %v12554_v7  ;;  %7929 = vmatpush1.bf16.msra.mxu1 %v4386_v52  ;;  %v12560_v13 = vpop.f32.mrf.mxu0  ;;  %7889 = vmatprep.subr.bf16.mxu0 %v10949_v11  ;;  %v11211_v52 = vcombine.high %v653_v17, %v653_v17  ;;  %v11208_v11 = vcombine.low %v652_v54, %v652_v54  ;;  %v397_v7 = vld [vmem:[#allocation2 + $0xa88] sm:$0xff] }
 0x1ff   :  { %13710 = vst [vmem:[#allocation69_spill] sm:$0xff] %v12560_v13  ;;  %v12562_v46 = vpop.f32.mrf.mxu1  ;;  %7930 = vmatprep.subr.bf16.mxu1 %v10951_v29  ;;  %7909 = vmatprep.mubr.bf16.mxu0 %v13651_v0  ;;  %v11210_v29 = vcombine.low %v653_v17, %v653_v17  ;;  %v524_v13 = vld [vmem:[#allocation2 + $0xe80] sm:$0xff]  ;;  %v10955_v53 = vcombine.high %v397_v7, %v525_v28 }
 0x200   :  { %13711 = vst [vmem:[#allocation70_spill] sm:$0xff] %v12562_v46  ;;  %7950 = vmatprep.mubr.bf16.mxu1 %v13651_v0  ;;  %v6521_v6 = vpop.f32.mrf.mxu0  ;;  %v396_v46 = vld [vmem:[#allocation2 + $0xa80] sm:$0xff]  ;;  %v4392_v18 = vsel %vm3910_vm0, %v11208_v11, 0 }
 0x201   :  { %v6562_v21 = vpop.f32.mrf.mxu1  ;;  %7890 = vmatpush1.bf16.msra.mxu0 %v10948_v38  ;;  %v4398_v22 = vsel %vm3910_vm0, %v11210_v29, 0  ;;  %v10953_v23 = vcombine.high %v396_v46, %v524_v13  ;;  %v140_v38 = vld [vmem:[#allocation2 + $0x280] sm:$0xff]  ;;  %v10952_v6 = vcombine.low %v396_v46, %v524_v13 }
 0x202   :  { %7931 = vmatpush1.bf16.msra.mxu1 %v10950_v9  ;;  %v6522_v24 = vpop.f32.mrf.mxu0  ;;  %7891 = vmatprep.subr.bf16.mxu0 %v10693_v8  ;;  %v268_v9 = vld [vmem:[#allocation2 + $0x680] sm:$0xff]  ;;  %v141_v8 = vld [vmem:[#allocation2 + $0x288] sm:$0xff]  ;;  %v10954_v21 = vcombine.low %v397_v7, %v525_v28 }
 0x203   :  { %v6563_v12 = vpop.f32.mrf.mxu1  ;;  %7932 = vmatprep.subr.bf16.mxu1 %v10695_v16  ;;  %v269_v16 = vld [vmem:[#allocation2 + $0x688] sm:$0xff]  ;;  %v10696_v13 = vcombine.low %v140_v38, %v268_v9 }
 0x204   :  { %v10699_v24 = vcombine.high %v141_v8, %v269_v16  ;;  %v654_v12 = vld [vmem:[#allocation2 + $0x1290] sm:$0x33]  ;;  %v10698_v28 = vcombine.low %v141_v8, %v269_v16 }
 0x205   :  { %7892 = vmatpush1.bf16.msra.mxu0 %v10692_v60  ;;  %v11213_v7 = vcombine.high %v654_v12, %v654_v12 }
 0x206   :  { %7933 = vmatpush1.bf16.msra.mxu1 %v10694_v25  ;;  %11464 = vmatprep.subr.msk.bf16.mxu0 %vm3910_vm0, %v11209_v20  ;;  %v10697_v20 = vcombine.high %v140_v38, %v268_v9 }
 0x207   :  { %11466 = vmatprep.subr.msk.bf16.mxu1 %vm3910_vm0, %v11211_v52  ;;  %v655_v52 = vld [vmem:[#allocation2 + $0x1298] sm:$0x33] }
 0x208   :  { %v12570_v54 = vpop.f32.mrf.mxu0  ;;  %11461 = vmatmul.mubr.msk.bf16.vlgmr.msra.gmra.mxu0 %vm3906_vm1, %v12518_v10 }
 0x209   :  { %13712 = vst [vmem:[#allocation71_spill] sm:$0xff] %v12570_v54  ;;  %v12572_v17 = vpop.f32.mrf.mxu1  ;;  %11463 = vmatmul.mubr.msk.bf16.vlgmr.msra.gmra.mxu1 %vm3906_vm1, %v12518_v10  ;;  %7970 = vmatpush1.bf16.msra.mxu0 %v4392_v18  ;;  %v527_v54 = vld [vmem:[#allocation2 + $0xe98] sm:$0xff] }
 0x20a   :  { %13713 = vst [vmem:[#allocation72_spill] sm:$0xff] %v12572_v17  ;;  %8011 = vmatpush1.bf16.msra.mxu1 %v4398_v22  ;;  %v12578_v60 = vpop.f32.mrf.mxu0  ;;  %7971 = vmatprep.subr.bf16.mxu0 %v10953_v23  ;;  %v11215_v22 = vcombine.high %v655_v52, %v655_v52  ;;  %v11212_v23 = vcombine.low %v654_v12, %v654_v12  ;;  %v399_v17 = vld [vmem:[#allocation2 + $0xa98] sm:$0xff] }
 0x20b   :  { %13714 = vst [vmem:[#allocation73_spill] sm:$0xff] %v12578_v60  ;;  %v12580_v25 = vpop.f32.mrf.mxu1  ;;  %8012 = vmatprep.subr.bf16.mxu1 %v10955_v53  ;;  %7991 = vmatprep.mubr.bf16.mxu0 %v13651_v0  ;;  %v11214_v53 = vcombine.low %v655_v52, %v655_v52  ;;  %v526_v60 = vld [vmem:[#allocation2 + $0xe90] sm:$0xff]  ;;  %v10959_v16 = vcombine.high %v399_v17, %v527_v54 }
 0x20c   :  { %13715 = vst [vmem:[#allocation74_spill] sm:$0xff] %v12580_v25  ;;  %8032 = vmatprep.mubr.bf16.mxu1 %v13651_v0  ;;  %v6603_v11 = vpop.f32.mrf.mxu0  ;;  %v398_v25 = vld [vmem:[#allocation2 + $0xa90] sm:$0xff]  ;;  %v4404_v38 = vsel %vm3910_vm0, %v11212_v23, 0 }
 0x20d   :  { %v6644_v29 = vpop.f32.mrf.mxu1  ;;  %7972 = vmatpush1.bf16.msra.mxu0 %v10952_v6  ;;  %v4410_v9 = vsel %vm3910_vm0, %v11214_v53, 0  ;;  %v10957_v8 = vcombine.high %v398_v25, %v526_v60  ;;  %v142_v6 = vld [vmem:[#allocation2 + $0x290] sm:$0xff]  ;;  %v10956_v11 = vcombine.low %v398_v25, %v526_v60 }
 0x20e   :  { %8013 = vmatpush1.bf16.msra.mxu1 %v10954_v21  ;;  %v6604_v46 = vpop.f32.mrf.mxu0  ;;  %7973 = vmatprep.subr.bf16.mxu0 %v10697_v20  ;;  %v270_v21 = vld [vmem:[#allocation2 + $0x690] sm:$0xff]  ;;  %v143_v20 = vld [vmem:[#allocation2 + $0x298] sm:$0xff]  ;;  %v10958_v29 = vcombine.low %v399_v17, %v527_v54 }
 0x20f   :  { %v6645_v18 = vpop.f32.mrf.mxu1  ;;  %8014 = vmatprep.subr.bf16.mxu1 %v10699_v24  ;;  %v271_v24 = vld [vmem:[#allocation2 + $0x698] sm:$0xff]  ;;  %v10700_v60 = vcombine.low %v142_v6, %v270_v21 }
 0x210   :  { %v10703_v46 = vcombine.high %v143_v20, %v271_v24  ;;  %v656_v18 = vld [vmem:[#allocation2 + $0x12a0] sm:$0x33]  ;;  %v10702_v54 = vcombine.low %v143_v20, %v271_v24 }
 0x211   :  { %7974 = vmatpush1.bf16.msra.mxu0 %v10696_v13  ;;  %v11217_v17 = vcombine.high %v656_v18, %v656_v18 }
 0x212   :  { %8015 = vmatpush1.bf16.msra.mxu1 %v10698_v28  ;;  %11468 = vmatprep.subr.msk.bf16.mxu0 %vm3910_vm0, %v11213_v7  ;;  %v10701_v7 = vcombine.high %v142_v6, %v270_v21 }
 0x213   :  { %11470 = vmatprep.subr.msk.bf16.mxu1 %vm3910_vm0, %v11215_v22  ;;  %v657_v22 = vld [vmem:[#allocation2 + $0x12a8] sm:$0x33] }
 0x214   :  { %v12588_v12 = vpop.f32.mrf.mxu0  ;;  %11465 = vmatmul.mubr.msk.bf16.vlgmr.msra.gmra.mxu0 %vm3906_vm1, %v12518_v10 }
 0x215   :  { %13716 = vst [vmem:[#allocation75_spill] sm:$0xff] %v12588_v12  ;;  %v12590_v52 = vpop.f32.mrf.mxu1  ;;  %11467 = vmatmul.mubr.msk.bf16.vlgmr.msra.gmra.mxu1 %vm3906_vm1, %v12518_v10  ;;  %8052 = vmatpush1.bf16.msra.mxu0 %v4404_v38  ;;  %v529_v12 = vld [vmem:[#allocation2 + $0xea8] sm:$0xff] }
 0x216   :  { %13717 = vst [vmem:[#allocation76_spill] sm:$0xff] %v12590_v52  ;;  %8093 = vmatpush1.bf16.msra.mxu1 %v4410_v9  ;;  %v12596_v13 = vpop.f32.mrf.mxu0  ;;  %8053 = vmatprep.subr.bf16.mxu0 %v10957_v8  ;;  %v11219_v9 = vcombine.high %v657_v22, %v657_v22  ;;  %v11216_v8 = vcombine.low %v656_v18, %v656_v18  ;;  %v401_v52 = vld [vmem:[#allocation2 + $0xaa8] sm:$0xff] }
 0x217   :  { %13718 = vst [vmem:[#allocation77_spill] sm:$0xff] %v12596_v13  ;;  %v12598_v28 = vpop.f32.mrf.mxu1  ;;  %8094 = vmatprep.subr.bf16.mxu1 %v10959_v16  ;;  %8073 = vmatprep.mubr.bf16.mxu0 %v13651_v0  ;;  %v11218_v16 = vcombine.low %v657_v22, %v657_v22  ;;  %v528_v13 = vld [vmem:[#allocation2 + $0xea0] sm:$0xff]  ;;  %v10963_v24 = vcombine.high %v401_v52, %v529_v12 }
 0x218   :  { %13719 = vst [vmem:[#allocation78_spill] sm:$0xff] %v12598_v28  ;;  %8114 = vmatprep.mubr.bf16.mxu1 %v13651_v0  ;;  %v6685_v23 = vpop.f32.mrf.mxu0  ;;  %v400_v28 = vld [vmem:[#allocation2 + $0xaa0] sm:$0xff]  ;;  %v4416_v6 = vsel %vm3910_vm0, %v11216_v8, 0 }
 0x219   :  { %v6726_v53 = vpop.f32.mrf.mxu1  ;;  %8054 = vmatpush1.bf16.msra.mxu0 %v10956_v11  ;;  %v4422_v21 = vsel %vm3910_vm0, %v11218_v16, 0  ;;  %v10961_v20 = vcombine.high %v400_v28, %v528_v13  ;;  %v144_v11 = vld [vmem:[#allocation2 + $0x2a0] sm:$0xff]  ;;  %v10960_v23 = vcombine.low %v400_v28, %v528_v13 }
 0x21a   :  { %8095 = vmatpush1.bf16.msra.mxu1 %v10958_v29  ;;  %v6686_v25 = vpop.f32.mrf.mxu0  ;;  %8055 = vmatprep.subr.bf16.mxu0 %v10701_v7  ;;  %v272_v29 = vld [vmem:[#allocation2 + $0x6a0] sm:$0xff]  ;;  %v145_v7 = vld [vmem:[#allocation2 + $0x2a8] sm:$0xff]  ;;  %v10962_v53 = vcombine.low %v401_v52, %v529_v12 }
 0x21b   :  { %v6727_v38 = vpop.f32.mrf.mxu1  ;;  %8096 = vmatprep.subr.bf16.mxu1 %v10703_v46  ;;  %v273_v46 = vld [vmem:[#allocation2 + $0x6a8] sm:$0xff]  ;;  %v10704_v13 = vcombine.low %v144_v11, %v272_v29 }
 0x21c   :  { %v10707_v25 = vcombine.high %v145_v7, %v273_v46  ;;  %v658_v38 = vld [vmem:[#allocation2 + $0x12b0] sm:$0x33]  ;;  %v10706_v12 = vcombine.low %v145_v7, %v273_v46 }
 0x21d   :  { %8056 = vmatpush1.bf16.msra.mxu0 %v10700_v60  ;;  %v11221_v52 = vcombine.high %v658_v38, %v658_v38 }
 0x21e   :  { %8097 = vmatpush1.bf16.msra.mxu1 %v10702_v54  ;;  %11472 = vmatprep.subr.msk.bf16.mxu0 %vm3910_vm0, %v11217_v17  ;;  %v10705_v17 = vcombine.high %v144_v11, %v272_v29 }
 0x21f   :  { %11474 = vmatprep.subr.msk.bf16.mxu1 %vm3910_vm0, %v11219_v9  ;;  %v659_v9 = vld [vmem:[#allocation2 + $0x12b8] sm:$0x33] }
 0x220   :  { %v12606_v18 = vpop.f32.mrf.mxu0  ;;  %11469 = vmatmul.mubr.msk.bf16.vlgmr.msra.gmra.mxu0 %vm3906_vm1, %v12518_v10 }
 0x221   :  { %13720 = vst [vmem:[#allocation79_spill] sm:$0xff] %v12606_v18  ;;  %v12608_v22 = vpop.f32.mrf.mxu1  ;;  %11471 = vmatmul.mubr.msk.bf16.vlgmr.msra.gmra.mxu1 %vm3906_vm1, %v12518_v10  ;;  %8134 = vmatpush1.bf16.msra.mxu0 %v4416_v6  ;;  %v531_v18 = vld [vmem:[#allocation2 + $0xeb8] sm:$0xff] }
 0x222   :  { %13721 = vst [vmem:[#allocation80_spill] sm:$0xff] %v12608_v22  ;;  %8175 = vmatpush1.bf16.msra.mxu1 %v4422_v21  ;;  %v12614_v60 = vpop.f32.mrf.mxu0  ;;  %8135 = vmatprep.subr.bf16.mxu0 %v10961_v20  ;;  %v11223_v21 = vcombine.high %v659_v9, %v659_v9  ;;  %v11220_v20 = vcombine.low %v658_v38, %v658_v38  ;;  %v403_v22 = vld [vmem:[#allocation2 + $0xab8] sm:$0xff] }
 0x223   :  { %13722 = vst [vmem:[#allocation81_spill] sm:$0xff] %v12614_v60  ;;  %v12616_v54 = vpop.f32.mrf.mxu1  ;;  %8176 = vmatprep.subr.bf16.mxu1 %v10963_v24  ;;  %8155 = vmatprep.mubr.bf16.mxu0 %v13651_v0  ;;  %v11222_v24 = vcombine.low %v659_v9, %v659_v9  ;;  %v530_v60 = vld [vmem:[#allocation2 + $0xeb0] sm:$0xff]  ;;  %v10967_v46 = vcombine.high %v403_v22, %v531_v18 }
 0x224   :  { %13723 = vst [vmem:[#allocation82_spill] sm:$0xff] %v12616_v54  ;;  %8196 = vmatprep.mubr.bf16.mxu1 %v13651_v0  ;;  %v6767_v8 = vpop.f32.mrf.mxu0  ;;  %v402_v54 = vld [vmem:[#allocation2 + $0xab0] sm:$0xff]  ;;  %v4428_v11 = vsel %vm3910_vm0, %v11220_v20, 0 }
 0x225   :  { %v6808_v16 = vpop.f32.mrf.mxu1  ;;  %8136 = vmatpush1.bf16.msra.mxu0 %v10960_v23  ;;  %v4434_v29 = vsel %vm3910_vm0, %v11222_v24, 0  ;;  %v10965_v7 = vcombine.high %v402_v54, %v530_v60  ;;  %v146_v23 = vld [vmem:[#allocation2 + $0x2b0] sm:$0xff]  ;;  %v10964_v8 = vcombine.low %v402_v54, %v530_v60 }
 0x226   :  { %8177 = vmatpush1.bf16.msra.mxu1 %v10962_v53  ;;  %v6768_v28 = vpop.f32.mrf.mxu0  ;;  %8137 = vmatprep.subr.bf16.mxu0 %v10705_v17  ;;  %v274_v53 = vld [vmem:[#allocation2 + $0x6b0] sm:$0xff]  ;;  %v147_v17 = vld [vmem:[#allocation2 + $0x2b8] sm:$0xff]  ;;  %v10966_v16 = vcombine.low %v403_v22, %v531_v18 }
 0x227   :  { %v6809_v6 = vpop.f32.mrf.mxu1  ;;  %8178 = vmatprep.subr.bf16.mxu1 %v10707_v25  ;;  %v275_v25 = vld [vmem:[#allocation2 + $0x6b8] sm:$0xff]  ;;  %v10708_v60 = vcombine.low %v146_v23, %v274_v53 }
 0x228   :  { %v10711_v28 = vcombine.high %v147_v17, %v275_v25  ;;  %v660_v6 = vld [vmem:[#allocation2 + $0x12c0] sm:$0x33]  ;;  %v10710_v18 = vcombine.low %v147_v17, %v275_v25 }
 0x229   :  { %8138 = vmatpush1.bf16.msra.mxu0 %v10704_v13  ;;  %v11225_v22 = vcombine.high %v660_v6, %v660_v6 }
 0x22a   :  { %8179 = vmatpush1.bf16.msra.mxu1 %v10706_v12  ;;  %11476 = vmatprep.subr.msk.bf16.mxu0 %vm3910_vm0, %v11221_v52  ;;  %v10709_v52 = vcombine.high %v146_v23, %v274_v53 }
 0x22b   :  { %11478 = vmatprep.subr.msk.bf16.mxu1 %vm3910_vm0, %v11223_v21  ;;  %v661_v21 = vld [vmem:[#allocation2 + $0x12c8] sm:$0x33] }
 0x22c   :  { %v12624_v38 = vpop.f32.mrf.mxu0  ;;  %11473 = vmatmul.mubr.msk.bf16.vlgmr.msra.gmra.mxu0 %vm3906_vm1, %v12518_v10 }
 0x22d   :  { %13724 = vst [vmem:[#allocation83_spill] sm:$0xff] %v12624_v38  ;;  %v12626_v9 = vpop.f32.mrf.mxu1  ;;  %11475 = vmatmul.mubr.msk.bf16.vlgmr.msra.gmra.mxu1 %vm3906_vm1, %v12518_v10  ;;  %8216 = vmatpush1.bf16.msra.mxu0 %v4428_v11  ;;  %v533_v38 = vld [vmem:[#allocation2 + $0xec8] sm:$0xff] }
 0x22e   :  { %13725 = vst [vmem:[#allocation84_spill] sm:$0xff] %v12626_v9  ;;  %8257 = vmatpush1.bf16.msra.mxu1 %v4434_v29  ;;  %v12632_v13 = vpop.f32.mrf.mxu0  ;;  %8217 = vmatprep.subr.bf16.mxu0 %v10965_v7  ;;  %v11227_v29 = vcombine.high %v661_v21, %v661_v21  ;;  %v11224_v7 = vcombine.low %v660_v6, %v660_v6  ;;  %v405_v9 = vld [vmem:[#allocation2 + $0xac8] sm:$0xff] }
 0x22f   :  { %13726 = vst [vmem:[#allocation85_spill] sm:$0xff] %v12632_v13  ;;  %v12634_v12 = vpop.f32.mrf.mxu1  ;;  %8258 = vmatprep.subr.bf16.mxu1 %v10967_v46  ;;  %8237 = vmatprep.mubr.bf16.mxu0 %v13651_v0  ;;  %v11226_v46 = vcombine.low %v661_v21, %v661_v21  ;;  %v532_v13 = vld [vmem:[#allocation2 + $0xec0] sm:$0xff]  ;;  %v10971_v25 = vcombine.high %v405_v9, %v533_v38 }
 0x230   :  { %13727 = vst [vmem:[#allocation86_spill] sm:$0xff] %v12634_v12  ;;  %8278 = vmatprep.mubr.bf16.mxu1 %v13651_v0  ;;  %v6849_v20 = vpop.f32.mrf.mxu0  ;;  %v404_v12 = vld [vmem:[#allocation2 + $0xac0] sm:$0xff]  ;;  %v4440_v23 = vsel %vm3910_vm0, %v11224_v7, 0 }
 0x231   :  { %v6890_v24 = vpop.f32.mrf.mxu1  ;;  %8218 = vmatpush1.bf16.msra.mxu0 %v10964_v8  ;;  %v4446_v53 = vsel %vm3910_vm0, %v11226_v46, 0  ;;  %v10969_v17 = vcombine.high %v404_v12, %v532_v13  ;;  %v148_v8 = vld [vmem:[#allocation2 + $0x2c0] sm:$0xff]  ;;  %v10968_v20 = vcombine.low %v404_v12, %v532_v13 }
 0x232   :  { %8259 = vmatpush1.bf16.msra.mxu1 %v10966_v16  ;;  %v6850_v54 = vpop.f32.mrf.mxu0  ;;  %8219 = vmatprep.subr.bf16.mxu0 %v10709_v52  ;;  %v276_v16 = vld [vmem:[#allocation2 + $0x6c0] sm:$0xff]  ;;  %v149_v52 = vld [vmem:[#allocation2 + $0x2c8] sm:$0xff]  ;;  %v10970_v24 = vcombine.low %v405_v9, %v533_v38 }
 0x233   :  { %v6891_v11 = vpop.f32.mrf.mxu1  ;;  %8260 = vmatprep.subr.bf16.mxu1 %v10711_v28  ;;  %v277_v28 = vld [vmem:[#allocation2 + $0x6c8] sm:$0xff]  ;;  %v10712_v13 = vcombine.low %v148_v8, %v276_v16 }
 0x234   :  { %v10715_v54 = vcombine.high %v149_v52, %v277_v28  ;;  %v662_v11 = vld [vmem:[#allocation2 + $0x12d0] sm:$0x33]  ;;  %v10714_v38 = vcombine.low %v149_v52, %v277_v28 }
 0x235   :  { %8220 = vmatpush1.bf16.msra.mxu0 %v10708_v60  ;;  %v11229_v9 = vcombine.high %v662_v11, %v662_v11 }
 0x236   :  { %8261 = vmatpush1.bf16.msra.mxu1 %v10710_v18  ;;  %11480 = vmatprep.subr.msk.bf16.mxu0 %vm3910_vm0, %v11225_v22  ;;  %v10713_v22 = vcombine.high %v148_v8, %v276_v16 }
 0x237   :  { %11482 = vmatprep.subr.msk.bf16.mxu1 %vm3910_vm0, %v11227_v29  ;;  %v663_v29 = vld [vmem:[#allocation2 + $0x12d8] sm:$0x33] }
 0x238   :  { %v12642_v6 = vpop.f32.mrf.mxu0  ;;  %11477 = vmatmul.mubr.msk.bf16.vlgmr.msra.gmra.mxu0 %vm3906_vm1, %v12518_v10 }
 0x239   :  { %13728 = vst [vmem:[#allocation87_spill] sm:$0xff] %v12642_v6  ;;  %v12644_v21 = vpop.f32.mrf.mxu1  ;;  %11479 = vmatmul.mubr.msk.bf16.vlgmr.msra.gmra.mxu1 %vm3906_vm1, %v12518_v10  ;;  %8298 = vmatpush1.bf16.msra.mxu0 %v4440_v23  ;;  %v535_v6 = vld [vmem:[#allocation2 + $0xed8] sm:$0xff] }
 0x23a   :  { %13729 = vst [vmem:[#allocation88_spill] sm:$0xff] %v12644_v21  ;;  %8339 = vmatpush1.bf16.msra.mxu1 %v4446_v53  ;;  %v12650_v60 = vpop.f32.mrf.mxu0  ;;  %8299 = vmatprep.subr.bf16.mxu0 %v10969_v17  ;;  %v11231_v53 = vcombine.high %v663_v29, %v663_v29  ;;  %v11228_v17 = vcombine.low %v662_v11, %v662_v11  ;;  %v407_v21 = vld [vmem:[#allocation2 + $0xad8] sm:$0xff] }
 0x23b   :  { %13730 = vst [vmem:[#allocation89_spill] sm:$0xff] %v12650_v60  ;;  %v12652_v18 = vpop.f32.mrf.mxu1  ;;  %8340 = vmatprep.subr.bf16.mxu1 %v10971_v25  ;;  %8319 = vmatprep.mubr.bf16.mxu0 %v13651_v0  ;;  %v11230_v25 = vcombine.low %v663_v29, %v663_v29  ;;  %v534_v60 = vld [vmem:[#allocation2 + $0xed0] sm:$0xff]  ;;  %v10975_v28 = vcombine.high %v407_v21, %v535_v6 }
 0x23c   :  { %13731 = vst [vmem:[#allocation90_spill] sm:$0xff] %v12652_v18  ;;  %8360 = vmatprep.mubr.bf16.mxu1 %v13651_v0  ;;  %v6931_v7 = vpop.f32.mrf.mxu0  ;;  %v406_v18 = vld [vmem:[#allocation2 + $0xad0] sm:$0xff]  ;;  %v4452_v8 = vsel %vm3910_vm0, %v11228_v17, 0 }
 0x23d   :  { %v6972_v46 = vpop.f32.mrf.mxu1  ;;  %8300 = vmatpush1.bf16.msra.mxu0 %v10968_v20  ;;  %v4458_v16 = vsel %vm3910_vm0, %v11230_v25, 0  ;;  %v10973_v52 = vcombine.high %v406_v18, %v534_v60  ;;  %v150_v20 = vld [vmem:[#allocation2 + $0x2d0] sm:$0xff]  ;;  %v10972_v7 = vcombine.low %v406_v18, %v534_v60 }
 0x23e   :  { %8341 = vmatpush1.bf16.msra.mxu1 %v10970_v24  ;;  %v6932_v12 = vpop.f32.mrf.mxu0  ;;  %8301 = vmatprep.subr.bf16.mxu0 %v10713_v22  ;;  %v278_v24 = vld [vmem:[#allocation2 + $0x6d0] sm:$0xff]  ;;  %v151_v22 = vld [vmem:[#allocation2 + $0x2d8] sm:$0xff]  ;;  %v10974_v46 = vcombine.low %v407_v21, %v535_v6 }
 0x23f   :  { %v6973_v23 = vpop.f32.mrf.mxu1  ;;  %8342 = vmatprep.subr.bf16.mxu1 %v10715_v54  ;;  %v279_v54 = vld [vmem:[#allocation2 + $0x6d8] sm:$0xff]  ;;  %v10716_v60 = vcombine.low %v150_v20, %v278_v24 }
 0x240   :  { %v10719_v12 = vcombine.high %v151_v22, %v279_v54  ;;  %v664_v23 = vld [vmem:[#allocation2 + $0x12e0] sm:$0x33]  ;;  %v10718_v6 = vcombine.low %v151_v22, %v279_v54 }
 0x241   :  { %8302 = vmatpush1.bf16.msra.mxu0 %v10712_v13  ;;  %v11233_v21 = vcombine.high %v664_v23, %v664_v23 }
 0x242   :  { %8343 = vmatpush1.bf16.msra.mxu1 %v10714_v38  ;;  %11484 = vmatprep.subr.msk.bf16.mxu0 %vm3910_vm0, %v11229_v9  ;;  %v10717_v9 = vcombine.high %v150_v20, %v278_v24 }
 0x243   :  { %11486 = vmatprep.subr.msk.bf16.mxu1 %vm3910_vm0, %v11231_v53  ;;  %v665_v53 = vld [vmem:[#allocation2 + $0x12e8] sm:$0x33] }
 0x244   :  { %v12660_v11 = vpop.f32.mrf.mxu0  ;;  %11481 = vmatmul.mubr.msk.bf16.vlgmr.msra.gmra.mxu0 %vm3906_vm1, %v12518_v10 }
 0x245   :  { %13732 = vst [vmem:[#allocation91_spill] sm:$0xff] %v12660_v11  ;;  %v12662_v29 = vpop.f32.mrf.mxu1  ;;  %11483 = vmatmul.mubr.msk.bf16.vlgmr.msra.gmra.mxu1 %vm3906_vm1, %v12518_v10  ;;  %8380 = vmatpush1.bf16.msra.mxu0 %v4452_v8  ;;  %v537_v11 = vld [vmem:[#allocation2 + $0xee8] sm:$0xff] }
 0x246   :  { %13733 = vst [vmem:[#allocation92_spill] sm:$0xff] %v12662_v29  ;;  %8421 = vmatpush1.bf16.msra.mxu1 %v4458_v16  ;;  %v12668_v13 = vpop.f32.mrf.mxu0  ;;  %8381 = vmatprep.subr.bf16.mxu0 %v10973_v52  ;;  %v11235_v16 = vcombine.high %v665_v53, %v665_v53  ;;  %v11232_v52 = vcombine.low %v664_v23, %v664_v23  ;;  %v409_v29 = vld [vmem:[#allocation2 + $0xae8] sm:$0xff] }
 0x247   :  { %13734 = vst [vmem:[#allocation93_spill] sm:$0xff] %v12668_v13  ;;  %v12670_v38 = vpop.f32.mrf.mxu1  ;;  %8422 = vmatprep.subr.bf16.mxu1 %v10975_v28  ;;  %8401 = vmatprep.mubr.bf16.mxu0 %v13651_v0  ;;  %v11234_v28 = vcombine.low %v665_v53, %v665_v53  ;;  %v536_v13 = vld [vmem:[#allocation2 + $0xee0] sm:$0xff]  ;;  %v10979_v54 = vcombine.high %v409_v29, %v537_v11 }
 0x248   :  { %13735 = vst [vmem:[#allocation94_spill] sm:$0xff] %v12670_v38  ;;  %8442 = vmatprep.mubr.bf16.mxu1 %v13651_v0  ;;  %v7013_v17 = vpop.f32.mrf.mxu0  ;;  %v408_v38 = vld [vmem:[#allocation2 + $0xae0] sm:$0xff]  ;;  %v4464_v20 = vsel %vm3910_vm0, %v11232_v52, 0 }
 0x249   :  { %v7054_v25 = vpop.f32.mrf.mxu1  ;;  %8382 = vmatpush1.bf16.msra.mxu0 %v10972_v7  ;;  %v4470_v24 = vsel %vm3910_vm0, %v11234_v28, 0  ;;  %v10977_v22 = vcombine.high %v408_v38, %v536_v13  ;;  %v152_v7 = vld [vmem:[#allocation2 + $0x2e0] sm:$0xff]  ;;  %v10976_v17 = vcombine.low %v408_v38, %v536_v13 }
 0x24a   :  { %8423 = vmatpush1.bf16.msra.mxu1 %v10974_v46  ;;  %v7014_v18 = vpop.f32.mrf.mxu0  ;;  %8383 = vmatprep.subr.bf16.mxu0 %v10717_v9  ;;  %v280_v46 = vld [vmem:[#allocation2 + $0x6e0] sm:$0xff]  ;;  %v153_v9 = vld [vmem:[#allocation2 + $0x2e8] sm:$0xff]  ;;  %v10978_v25 = vcombine.low %v409_v29, %v537_v11 }
 0x24b   :  { %v7055_v8 = vpop.f32.mrf.mxu1  ;;  %8424 = vmatprep.subr.bf16.mxu1 %v10719_v12  ;;  %v281_v12 = vld [vmem:[#allocation2 + $0x6e8] sm:$0xff]  ;;  %v10720_v13 = vcombine.low %v152_v7, %v280_v46 }
 0x24c   :  { %v10723_v18 = vcombine.high %v153_v9, %v281_v12  ;;  %v666_v8 = vld [vmem:[#allocation2 + $0x12f0] sm:$0x33]  ;;  %v10722_v11 = vcombine.low %v153_v9, %v281_v12 }
 0x24d   :  { %8384 = vmatpush1.bf16.msra.mxu0 %v10716_v60  ;;  %v11237_v29 = vcombine.high %v666_v8, %v666_v8 }
 0x24e   :  { %8425 = vmatpush1.bf16.msra.mxu1 %v10718_v6  ;;  %11488 = vmatprep.subr.msk.bf16.mxu0 %vm3910_vm0, %v11233_v21  ;;  %v10721_v21 = vcombine.high %v152_v7, %v280_v46 }
 0x24f   :  { %11490 = vmatprep.subr.msk.bf16.mxu1 %vm3910_vm0, %v11235_v16  ;;  %v667_v16 = vld [vmem:[#allocation2 + $0x12f8] sm:$0x33] }
 0x250   :  { %v12678_v23 = vpop.f32.mrf.mxu0  ;;  %11485 = vmatmul.mubr.msk.bf16.vlgmr.msra.gmra.mxu0 %vm3906_vm1, %v12518_v10 }
 0x251   :  { %13736 = vst [vmem:[#allocation95_spill] sm:$0xff] %v12678_v23  ;;  %v12680_v53 = vpop.f32.mrf.mxu1  ;;  %11487 = vmatmul.mubr.msk.bf16.vlgmr.msra.gmra.mxu1 %vm3906_vm1, %v12518_v10  ;;  %8462 = vmatpush1.bf16.msra.mxu0 %v4464_v20  ;;  %v539_v23 = vld [vmem:[#allocation2 + $0xef8] sm:$0xff] }
 0x252   :  { %13737 = vst [vmem:[#allocation96_spill] sm:$0xff] %v12680_v53  ;;  %8503 = vmatpush1.bf16.msra.mxu1 %v4470_v24  ;;  %v12686_v60 = vpop.f32.mrf.mxu0  ;;  %8463 = vmatprep.subr.bf16.mxu0 %v10977_v22  ;;  %v11239_v24 = vcombine.high %v667_v16, %v667_v16  ;;  %v11236_v22 = vcombine.low %v666_v8, %v666_v8  ;;  %v411_v53 = vld [vmem:[#allocation2 + $0xaf8] sm:$0xff] }
 0x253   :  { %13738 = vst [vmem:[#allocation97_spill] sm:$0xff] %v12686_v60  ;;  %v12688_v6 = vpop.f32.mrf.mxu1  ;;  %8504 = vmatprep.subr.bf16.mxu1 %v10979_v54  ;;  %8483 = vmatprep.mubr.bf16.mxu0 %v13651_v0  ;;  %v11238_v54 = vcombine.low %v667_v16, %v667_v16  ;;  %v538_v60 = vld [vmem:[#allocation2 + $0xef0] sm:$0xff]  ;;  %v10983_v12 = vcombine.high %v411_v53, %v539_v23 }
 0x254   :  { %13739 = vst [vmem:[#allocation98_spill] sm:$0xff] %v12688_v6  ;;  %8524 = vmatprep.mubr.bf16.mxu1 %v13651_v0  ;;  %v7095_v52 = vpop.f32.mrf.mxu0  ;;  %v410_v6 = vld [vmem:[#allocation2 + $0xaf0] sm:$0xff]  ;;  %v4476_v7 = vsel %vm3910_vm0, %v11236_v22, 0 }
 0x255   :  { %v7136_v28 = vpop.f32.mrf.mxu1  ;;  %8464 = vmatpush1.bf16.msra.mxu0 %v10976_v17  ;;  %v4482_v46 = vsel %vm3910_vm0, %v11238_v54, 0  ;;  %v10981_v9 = vcombine.high %v410_v6, %v538_v60  ;;  %v154_v17 = vld [vmem:[#allocation2 + $0x2f0] sm:$0xff]  ;;  %v10980_v52 = vcombine.low %v410_v6, %v538_v60 }
 0x256   :  { %8505 = vmatpush1.bf16.msra.mxu1 %v10978_v25  ;;  %v7096_v38 = vpop.f32.mrf.mxu0  ;;  %8465 = vmatprep.subr.bf16.mxu0 %v10721_v21  ;;  %v282_v25 = vld [vmem:[#allocation2 + $0x6f0] sm:$0xff]  ;;  %v155_v21 = vld [vmem:[#allocation2 + $0x2f8] sm:$0xff]  ;;  %v10982_v28 = vcombine.low %v411_v53, %v539_v23 }
 0x257   :  { %v7137_v20 = vpop.f32.mrf.mxu1  ;;  %8506 = vmatprep.subr.bf16.mxu1 %v10723_v18  ;;  %v283_v18 = vld [vmem:[#allocation2 + $0x6f8] sm:$0xff]  ;;  %v10724_v60 = vcombine.low %v154_v17, %v282_v25 }
 0x258   :  { %v10727_v38 = vcombine.high %v155_v21, %v283_v18  ;;  %v668_v20 = vld [vmem:[#allocation2 + $0x1300] sm:$0x33]  ;;  %v10726_v23 = vcombine.low %v155_v21, %v283_v18 }
 0x259   :  { %8466 = vmatpush1.bf16.msra.mxu0 %v10720_v13  ;;  %v11241_v53 = vcombine.high %v668_v20, %v668_v20 }
 0x25a   :  { %8507 = vmatpush1.bf16.msra.mxu1 %v10722_v11  ;;  %11492 = vmatprep.subr.msk.bf16.mxu0 %vm3910_vm0, %v11237_v29  ;;  %v10725_v29 = vcombine.high %v154_v17, %v282_v25 }
 0x25b   :  { %11494 = vmatprep.subr.msk.bf16.mxu1 %vm3910_vm0, %v11239_v24  ;;  %v669_v24 = vld [vmem:[#allocation2 + $0x1308] sm:$0x33] }
 0x25c   :  { %v12696_v8 = vpop.f32.mrf.mxu0  ;;  %11489 = vmatmul.mubr.msk.bf16.vlgmr.msra.gmra.mxu0 %vm3906_vm1, %v12518_v10 }
 0x25d   :  { %13740 = vst [vmem:[#allocation99_spill] sm:$0xff] %v12696_v8  ;;  %v12698_v16 = vpop.f32.mrf.mxu1  ;;  %11491 = vmatmul.mubr.msk.bf16.vlgmr.msra.gmra.mxu1 %vm3906_vm1, %v12518_v10  ;;  %8544 = vmatpush1.bf16.msra.mxu0 %v4476_v7  ;;  %v11243_v7 = vcombine.high %v669_v24, %v669_v24  ;;  %v543_v8 = vld [vmem:[#allocation2 + $0xf18] sm:$0xff] }
 0x25e   :  { %13741 = vst [vmem:[#allocation100_spill] sm:$0xff] %v12698_v16  ;;  %8585 = vmatpush1.bf16.msra.mxu1 %v4482_v46  ;;  %v12704_v13 = vpop.f32.mrf.mxu0  ;;  %8545 = vmatprep.subr.bf16.mxu0 %v10981_v9  ;;  %v11240_v46 = vcombine.low %v668_v20, %v668_v20  ;;  %v11242_v9 = vcombine.low %v669_v24, %v669_v24  ;;  %v541_v16 = vld [vmem:[#allocation2 + $0xf08] sm:$0xff] }
 0x25f   :  { %13742 = vst [vmem:[#allocation101_spill] sm:$0xff] %v12704_v13  ;;  %v12706_v11 = vpop.f32.mrf.mxu1  ;;  %8586 = vmatprep.subr.bf16.mxu1 %v10983_v12  ;;  %8565 = vmatprep.mubr.bf16.mxu0 %v13651_v0  ;;  %v412_v12 = vld [vmem:[#allocation2 + $0xb00] sm:$0xff]  ;;  %v413_v13 = vld [vmem:[#allocation2 + $0xb08] sm:$0xff] }
 0x260   :  { %13743 = vst [vmem:[#allocation102_spill] sm:$0xff] %v12706_v11  ;;  %8606 = vmatprep.mubr.bf16.mxu1 %v13651_v0  ;;  %v7177_v22 = vpop.f32.mrf.mxu0  ;;  %v540_v11 = vld [vmem:[#allocation2 + $0xf00] sm:$0xff]  ;;  %v4488_v17 = vsel %vm3910_vm0, %v11240_v46, 0  ;;  %v4494_v25 = vsel %vm3910_vm0, %v11242_v9, 0  ;;  %v10987_v18 = vcombine.high %v413_v13, %v541_v16  ;;  %v671_v46 = vld [vmem:[#allocation2 + $0x1318] sm:$0x33] }
 0x261   :  { %v7218_v10 = vpop.f32.mrf.mxu1  ;;  %8546 = vmatpush1.bf16.msra.mxu0 %v10980_v52  ;;  %v10985_v21 = vcombine.high %v412_v12, %v540_v11  ;;  %v156_v52 = vld [vmem:[#allocation2 + $0x300] sm:$0xff] }
 0x262   :  { %8587 = vmatpush1.bf16.msra.mxu1 %v10982_v28  ;;  %v7178_v6 = vpop.f32.mrf.mxu0  ;;  %8547 = vmatprep.subr.bf16.mxu0 %v10725_v29  ;;  %v284_v28 = vld [vmem:[#allocation2 + $0x700] sm:$0xff]  ;;  %v157_v29 = vld [vmem:[#allocation2 + $0x308] sm:$0xff]  ;;  %v10984_v10 = vcombine.low %v412_v12, %v540_v11 }
 0x263   :  { %v7219_v54 = vpop.f32.mrf.mxu1  ;;  %8588 = vmatprep.subr.bf16.mxu1 %v10727_v38  ;;  %v285_v38 = vld [vmem:[#allocation2 + $0x708] sm:$0xff]  ;;  %v12718_v22 = vld [vmem:[#allocation5] sm:$0xf]  ;;  %v10729_v6 = vcombine.high %v156_v52, %v284_v28 }
 0x264   :  { %v10731_v54 = vcombine.high %v157_v29, %v285_v38 }
 0x265   :  { %8548 = vmatpush1.bf16.msra.mxu0 %v10724_v60  ;;  %v10986_v60 = vcombine.low %v413_v13, %v541_v16  ;;  %v10728_v16 = vcombine.low %v156_v52, %v284_v28  ;;  %v10730_v13 = vcombine.low %v157_v29, %v285_v38 }
 0x266   :  { %8589 = vmatpush1.bf16.msra.mxu1 %v10726_v23  ;;  %11496 = vmatprep.subr.msk.bf16.mxu0 %vm3910_vm0, %v11241_v53 }
 0x267   :  { %11498 = vmatprep.subr.msk.bf16.mxu1 %vm3910_vm0, %v11243_v7  ;;  %v670_v7 = vld [vmem:[#allocation2 + $0x1310] sm:$0x33] }
 0x268   :  { %v12714_v20 = vpop.f32.mrf.mxu0  ;;  %11493 = vmatmul.mubr.msk.bf16.vlgmr.msra.gmra.mxu0 %vm3906_vm1, %v12718_v22  ;;  %v11245_v11 = vcombine.high %v670_v7, %v670_v7 }
 0x269   :  { %13744 = vst [vmem:[#allocation103_spill] sm:$0xff] %v12714_v20  ;;  %v12716_v24 = vpop.f32.mrf.mxu1  ;;  %11495 = vmatmul.mubr.msk.bf16.vlgmr.msra.gmra.mxu1 %vm3906_vm1, %v12718_v22  ;;  %8626 = vmatpush1.bf16.msra.mxu0 %v4488_v17  ;;  %v12730_v17 = vpop.permute.xlu0 %703  ;;  %v542_v20 = vld [vmem:[#allocation2 + $0xf10] sm:$0xff] }
 0x26a   :  { %13745 = vst [vmem:[#allocation104_spill] sm:$0xff] %v12716_v24  ;;  %8667 = vmatpush1.bf16.msra.mxu1 %v4494_v25  ;;  %v12724_v23 = vpop.f32.mrf.mxu0  ;;  %8627 = vmatprep.subr.bf16.mxu0 %v10985_v21  ;;  %v11247_v21 = vcombine.high %v671_v46, %v671_v46  ;;  %v4714_v52 = vadd.f32 %v12152_v57, %v12730_v17 }
 0x26b   :  { %13746 = vst [vmem:[#allocation105_spill] sm:$0xff] %v12724_v23  ;;  %v12726_v53 = vpop.f32.mrf.mxu1  ;;  %8668 = vmatprep.subr.bf16.mxu1 %v10987_v18  ;;  %8647 = vmatprep.mubr.bf16.mxu0 %v13651_v0  ;;  %v11244_v18 = vcombine.low %v670_v7, %v670_v7  ;;  %v414_v23 = vld [vmem:[#allocation2 + $0xb10] sm:$0xff]  ;;  %v4755_v28 = vadd.f32 %v12154_v58, %v12730_v17  ;;  %v287_v7 = vld [vmem:[#allocation2 + $0x718] sm:$0xff] }
 0x26c   :  { %13747 = vst [vmem:[#allocation106_spill] sm:$0xff] %v12726_v53  ;;  %8688 = vmatprep.mubr.bf16.mxu1 %v13651_v0  ;;  %v7259_v9 = vpop.f32.mrf.mxu0  ;;  %v11246_v53 = vcombine.low %v671_v46, %v671_v46  ;;  %v415_v0 = vld [vmem:[#allocation2 + $0xb18] sm:$0xff]  ;;  %v4757_v57 = vadd.f32 %v12162_v62, %v12730_v17  ;;  %v10988_v58 = vcombine.low %v414_v23, %v542_v20 }
 0x26d   :  { %v7300_v24 = vpop.f32.mrf.mxu1  ;;  %8628 = vmatpush1.bf16.msra.mxu0 %v10984_v10  ;;  %v4500_v29 = vsel %vm3910_vm0, %v11244_v18, 0  ;;  %v10989_v10 = vcombine.high %v414_v23, %v542_v20 }
 0x26e   :  { %8669 = vmatpush1.bf16.msra.mxu1 %v10986_v60  ;;  %v7260_v12 = vpop.f32.mrf.mxu0  ;;  %8629 = vmatprep.subr.bf16.mxu0 %v10729_v6  ;;  %v12734_v24 = vadd.f32 %v12160_v61, %v12730_v17  ;;  %v4506_v38 = vsel %vm3910_vm0, %v11246_v53, 0  ;;  %v10991_v60 = vcombine.high %v415_v0, %v543_v8  ;;  %v158_v61 = vld [vmem:[#allocation2 + $0x310] sm:$0xff] }
 0x26f   :  { %v7301_v25 = vpop.f32.mrf.mxu1  ;;  %8670 = vmatprep.subr.bf16.mxu1 %v10731_v54  ;;  %v286_v6 = vld [vmem:[#allocation2 + $0x710] sm:$0xff]  ;;  %v159_v54 = vld [vmem:[#allocation2 + $0x318] sm:$0xff]  ;;  %v672_v12 = vld [vmem:[#allocation2 + $0x1320] sm:$0x33] }
 0x270   :  { %v9928_v62 = vmax.f32 %v12734_v24, 0.0  ;;  %v9929_v25 = vmax.f32 %v4755_v28, 0.0  ;;  %v10733_v59 = vcombine.high %v158_v61, %v286_v6  ;;  %v10735_v51 = vcombine.high %v159_v54, %v287_v7 }
 0x271   :  { %8630 = vmatpush1.bf16.msra.mxu0 %v10728_v16  ;;  %v9927_v16 = vmax.f32 %v4714_v52, 0.0  ;;  %v11248_v47 = vcombine.low %v672_v12, %v672_v12 }
 0x272   :  { %8671 = vmatpush1.bf16.msra.mxu1 %v10730_v13  ;;  %11500 = vmatprep.subr.msk.bf16.mxu0 %vm3910_vm0, %v11245_v11  ;;  %v10990_v11 = vcombine.low %v415_v0, %v543_v8  ;;  %v673_v0 = vld [vmem:[#allocation2 + $0x1328] sm:$0x33]  ;;  %v9930_v8 = vmax.f32 %v4757_v57, 0.0 }
 0x273   :  { %11502 = vmatprep.subr.msk.bf16.mxu1 %vm3910_vm0, %v11247_v21  ;;  %v11251_v48 = vcombine.high %v673_v0, %v673_v0  ;;  %v11250_v57 = vcombine.low %v673_v0, %v673_v0 }
 0x274   :  { %v7337_v46 = vpop.f32.mrf.mxu0  ;;  %11497 = vmatmul.mubr.msk.bf16.vlgmr.msra.gmra.mxu0 %vm3906_vm1, %v12718_v22 }
 0x275   :  { %v7378_v9 = vpop.f32.mrf.mxu1  ;;  %11499 = vmatmul.mubr.msk.bf16.vlgmr.msra.gmra.mxu1 %vm3906_vm1, %v12718_v22  ;;  %v7338_v53 = vadd.f32 %v7337_v46, %v12730_v17  ;;  %8708 = vmatpush1.bf16.msra.mxu0 %v4500_v29  ;;  %v13748_v46 = vmov 0   ;;  %v10732_v29 = vcombine.low %v158_v61, %v286_v6  ;;  %v417_v6 = vld [vmem:[#allocation2 + $0xb28] sm:$0xff] }
 0x276   :  { %v7379_v13 = vadd.f32 %v7378_v9, %v12730_v17  ;;  %8749 = vmatpush1.bf16.msra.mxu1 %v4506_v38  ;;  %v7339_v21 = vpop.f32.mrf.mxu0  ;;  %8709 = vmatprep.subr.bf16.mxu0 %v10989_v10  ;;  %v10734_v38 = vcombine.low %v159_v54, %v287_v7  ;;  %v11249_v10 = vcombine.high %v672_v12, %v672_v12  ;;  %v545_v54 = vld [vmem:[#allocation2 + $0xf28] sm:$0xff] }
 0x277   :  { %v7380_v18 = vpop.f32.mrf.mxu1  ;;  %8750 = vmatprep.subr.bf16.mxu1 %v10991_v60  ;;  %v10055_v39 = vmax.f32 %v7338_v53, 0.0  ;;  %v7340_v23 = vadd.f32 %v7339_v21, %v12730_v17  ;;  %8729 = vmatprep.mubr.bf16.mxu0 %v13748_v46  ;;  %v4796_v7 = vadd.f32 %v12170_v26, %v12730_v17  ;;  %v10995_v12 = vcombine.high %v417_v6, %v545_v54  ;;  %v288_v26 = vld [vmem:[#allocation2 + $0x720] sm:$0xff] }
 0x278   :  { %v10057_v20 = vmax.f32 %v7379_v13, 0.0  ;;  %v7381_v52 = vadd.f32 %v7380_v18, %v12730_v17  ;;  %8770 = vmatprep.mubr.bf16.mxu1 %v13748_v46  ;;  %v7341_v24 = vpop.f32.mrf.mxu0 }
 0x279   :  { %v7382_v28 = vpop.f32.mrf.mxu1  ;;  %v12757_v60 = vadd.f32 %v10055_v39, %v9927_v16  ;;  %v10056_v53 = vmax.f32 %v7340_v23, 0.0  ;;  %8710 = vmatpush1.bf16.msra.mxu0 %v10988_v58  ;;  %v416_v24 = vld [vmem:[#allocation2 + $0xb20] sm:$0xff]  ;;  %v4837_v58 = vadd.f32 %v12172_v27, %v12730_v17  ;;  %v4518_v16 = vsel %vm3910_vm0, %v11250_v57, 0 }
 0x27a   :  { %v12759_v9 = vadd.f32 %v10057_v20, %v9929_v25  ;;  %v10058_v13 = vmax.f32 %v7381_v52, 0.0  ;;  %8751 = vmatpush1.bf16.msra.mxu1 %v10990_v11  ;;  %v7342_v21 = vpop.f32.mrf.mxu0  ;;  %8711 = vmatprep.subr.bf16.mxu0 %v10733_v59  ;;  %v544_v39 = vld [vmem:[#allocation2 + $0xf20] sm:$0xff]  ;;  %v4512_v59 = vsel %vm3910_vm0, %v11248_v47, 0  ;;  %v161_v25 = vld [vmem:[#allocation2 + $0x328] sm:$0xff]  ;;  %v4839_v27 = vadd.f32 %v12180_v35, %v12730_v17 }
 0x27b   :  { %v7383_v18 = vpop.f32.mrf.mxu1  ;;  %8752 = vmatprep.subr.bf16.mxu1 %v10735_v51  ;;  %v12761_v28 = vadd.f32 %v10056_v53, %v9928_v62  ;;  %v4798_v51 = vadd.f32 %v12178_v30, %v12730_v17  ;;  %v10993_v11 = vcombine.high %v416_v24, %v544_v39  ;;  %v160_v62 = vld [vmem:[#allocation2 + $0x320] sm:$0xff]  ;;  %v289_v20 = vld [vmem:[#allocation2 + $0x728] sm:$0xff]  ;;  %v10992_v47 = vcombine.low %v416_v24, %v544_v39 }
 0x27c   :  { %v12763_v61 = vadd.f32 %v10058_v13, %v9930_v8  ;;  %v10994_v8 = vcombine.low %v417_v6, %v545_v54  ;;  %v10737_v13 = vcombine.high %v160_v62, %v288_v26  ;;  %v10739_v21 = vcombine.high %v161_v25, %v289_v20  ;;  %v675_v6 = vld [vmem:[#allocation2 + $0x1338] sm:$0x33] }
 0x27d   :  { %8712 = vmatpush1.bf16.msra.mxu0 %v10732_v29  ;;  %v674_v29 = vld [vmem:[#allocation2 + $0x1330] sm:$0x33]  ;;  %v9932_v35 = vmax.f32 %v4798_v51, 0.0  ;;  %v9934_v54 = vmax.f32 %v4839_v27, 0.0  ;;  %v10736_v51 = vcombine.low %v160_v62, %v288_v26  ;;  %v11254_v27 = vcombine.low %v675_v6, %v675_v6 }
 0x27e   :  { %8753 = vmatpush1.bf16.msra.mxu1 %v10734_v38  ;;  %11504 = vmatprep.subr.msk.bf16.mxu0 %vm3910_vm0, %v11249_v10  ;;  %v9933_v38 = vmax.f32 %v4837_v58, 0.0  ;;  %v546_v26 = vld [vmem:[#allocation2 + $0xf30] sm:$0xff] }
 0x27f   :  { %11506 = vmatprep.subr.msk.bf16.mxu1 %vm3910_vm0, %v11251_v48  ;;  %v9931_v48 = vmax.f32 %v4796_v7, 0.0 }
 0x280   :  { %v7419_v30 = vpop.f32.mrf.mxu0  ;;  %11501 = vmatmul.mubr.msk.bf16.vlgmr.msra.gmra.mxu0 %vm3906_vm1, %v12718_v22 }
 0x281   :  { %v7460_v23 = vpop.f32.mrf.mxu1  ;;  %11503 = vmatmul.mubr.msk.bf16.vlgmr.msra.gmra.mxu1 %vm3906_vm1, %v12718_v22  ;;  %v7420_v52 = vadd.f32 %v7419_v30, %v12730_v17  ;;  %8790 = vmatpush1.bf16.msra.mxu0 %v4512_v59  ;;  %v10738_v59 = vcombine.low %v161_v25, %v289_v20  ;;  %v419_v25 = vld [vmem:[#allocation2 + $0xb38] sm:$0xff] }
 0x282   :  { %v7461_v0 = vadd.f32 %v7460_v23, %v12730_v17  ;;  %8831 = vmatpush1.bf16.msra.mxu1 %v4518_v16  ;;  %v7421_v10 = vpop.f32.mrf.mxu0  ;;  %8791 = vmatprep.subr.bf16.mxu0 %v10993_v11  ;;  %v11253_v16 = vcombine.high %v674_v29, %v674_v29  ;;  %v547_v20 = vld [vmem:[#allocation2 + $0xf38] sm:$0xff] }
 0x283   :  { %v7462_v53 = vpop.f32.mrf.mxu1  ;;  %8832 = vmatprep.subr.bf16.mxu1 %v10995_v12  ;;  %v10059_v18 = vmax.f32 %v7420_v52, 0.0  ;;  %v7422_v24 = vadd.f32 %v7421_v10, %v12730_v17  ;;  %8811 = vmatprep.mubr.bf16.mxu0 %v13748_v46  ;;  %v11255_v10 = vcombine.high %v675_v6, %v675_v6 }
 0x284   :  { %v10061_v57 = vmax.f32 %v7461_v0, 0.0  ;;  %v7463_v39 = vadd.f32 %v7462_v53, %v12730_v17  ;;  %8852 = vmatprep.mubr.bf16.mxu1 %v13748_v46  ;;  %v7423_v7 = vpop.f32.mrf.mxu0  ;;  %v11252_v53 = vcombine.low %v674_v29, %v674_v29 }
 0x285   :  { %v7464_v58 = vpop.f32.mrf.mxu1  ;;  %v12787_v11 = vadd.f32 %v10059_v18, %v9931_v48  ;;  %v10060_v30 = vmax.f32 %v7422_v24, 0.0  ;;  %8792 = vmatpush1.bf16.msra.mxu0 %v10992_v47  ;;  %v418_v7 = vld [vmem:[#allocation2 + $0xb30] sm:$0xff]  ;;  %v4878_v48 = vadd.f32 %v12188_v63, %v12730_v17  ;;  %v4919_v47 = vadd.f32 %v12190_v1, %v12730_v17  ;;  %v163_v18 = vld [vmem:[#allocation2 + $0x338] sm:$0xff] }
 0x286   :  { %v12789_v12 = vadd.f32 %v10061_v57, %v9933_v38  ;;  %v10062_v23 = vmax.f32 %v7463_v39, 0.0  ;;  %8833 = vmatpush1.bf16.msra.mxu1 %v10994_v8  ;;  %v7424_v52 = vpop.f32.mrf.mxu0  ;;  %8793 = vmatprep.subr.bf16.mxu0 %v10737_v13  ;;  %v4880_v8 = vadd.f32 %v12196_v4, %v12730_v17  ;;  %v4524_v29 = vsel %vm3910_vm0, %v11252_v53, 0  ;;  %v290_v63 = vld [vmem:[#allocation2 + $0x730] sm:$0xff]  ;;  %v291_v57 = vld [vmem:[#allocation2 + $0x738] sm:$0xff] }
 0x287   :  { %v7465_v0 = vpop.f32.mrf.mxu1  ;;  %8834 = vmatprep.subr.bf16.mxu1 %v10739_v21  ;;  %v12791_v58 = vadd.f32 %v10060_v30, %v9932_v35  ;;  %v4530_v38 = vsel %vm3910_vm0, %v11254_v27, 0  ;;  %v10997_v35 = vcombine.high %v418_v7, %v546_v26  ;;  %v10999_v13 = vcombine.high %v419_v25, %v547_v20  ;;  %v162_v21 = vld [vmem:[#allocation2 + $0x330] sm:$0xff] }
 0x288   :  { %v12793_v62 = vadd.f32 %v10062_v23, %v9934_v54  ;;  %v4921_v1 = vadd.f32 %v12198_v5, %v12730_v17  ;;  %v10996_v39 = vcombine.low %v418_v7, %v546_v26  ;;  %v9935_v6 = vmax.f32 %v4878_v48, 0.0 }
 0x289   :  { %8794 = vmatpush1.bf16.msra.mxu0 %v10736_v51  ;;  %v9937_v30 = vmax.f32 %v4919_v47, 0.0  ;;  %v9936_v5 = vmax.f32 %v4880_v8, 0.0  ;;  %v10741_v0 = vcombine.high %v162_v21, %v290_v63  ;;  %v10740_v8 = vcombine.low %v162_v21, %v290_v63  ;;  %v548_v63 = vld [vmem:[#allocation2 + $0xf40] sm:$0xff] }
 0x28a   :  { %8835 = vmatpush1.bf16.msra.mxu1 %v10738_v59  ;;  %11508 = vmatprep.subr.msk.bf16.mxu0 %vm3910_vm0, %v11253_v16  ;;  %v10998_v59 = vcombine.low %v419_v25, %v547_v20  ;;  %v676_v16 = vld [vmem:[#allocation2 + $0x1340] sm:$0x33]  ;;  %v677_v25 = vld [vmem:[#allocation2 + $0x1348] sm:$0x33]  ;;  %v9938_v20 = vmax.f32 %v4921_v1, 0.0 }
 0x28b   :  { %11510 = vmatprep.subr.msk.bf16.mxu1 %vm3910_vm0, %v11255_v10  ;;  %v10743_v10 = vcombine.high %v163_v18, %v291_v57  ;;  %v11258_v1 = vcombine.low %v677_v25, %v677_v25 }
 0x28c   :  { %v7501_v4 = vpop.f32.mrf.mxu0  ;;  %11505 = vmatmul.mubr.msk.bf16.vlgmr.msra.gmra.mxu0 %vm3906_vm1, %v12718_v22 }
 0x28d   :  { %v7542_v24 = vpop.f32.mrf.mxu1  ;;  %11507 = vmatmul.mubr.msk.bf16.vlgmr.msra.gmra.mxu1 %vm3906_vm1, %v12718_v22  ;;  %v7502_v54 = vadd.f32 %v7501_v4, %v12730_v17  ;;  %8872 = vmatpush1.bf16.msra.mxu0 %v4524_v29  ;;  %v10742_v29 = vcombine.low %v163_v18, %v291_v57  ;;  %v421_v18 = vld [vmem:[#allocation2 + $0xb48] sm:$0xff] }
 0x28e   :  { %v7543_v51 = vadd.f32 %v7542_v24, %v12730_v17  ;;  %8913 = vmatpush1.bf16.msra.mxu1 %v4530_v38  ;;  %v7503_v23 = vpop.f32.mrf.mxu0  ;;  %8873 = vmatprep.subr.bf16.mxu0 %v10997_v35  ;;  %v11257_v38 = vcombine.high %v676_v16, %v676_v16  ;;  %v549_v57 = vld [vmem:[#allocation2 + $0xf48] sm:$0xff] }
 0x28f   :  { %v7544_v52 = vpop.f32.mrf.mxu1  ;;  %8914 = vmatprep.subr.bf16.mxu1 %v10999_v13  ;;  %v10063_v53 = vmax.f32 %v7502_v54, 0.0  ;;  %v7504_v7 = vadd.f32 %v7503_v23, %v12730_v17  ;;  %8893 = vmatprep.mubr.bf16.mxu0 %v13748_v46  ;;  %v11259_v23 = vcombine.high %v677_v25, %v677_v25 }
 0x290   :  { %v10065_v27 = vmax.f32 %v7543_v51, 0.0  ;;  %v7545_v26 = vadd.f32 %v7544_v52, %v12730_v17  ;;  %8934 = vmatprep.mubr.bf16.mxu1 %v13748_v46  ;;  %v7505_v48 = vpop.f32.mrf.mxu0  ;;  %v11256_v52 = vcombine.low %v676_v16, %v676_v16 }
 0x291   :  { %v7546_v47 = vpop.f32.mrf.mxu1  ;;  %v12817_v35 = vadd.f32 %v10063_v53, %v9935_v6  ;;  %v10064_v4 = vmax.f32 %v7504_v7, 0.0  ;;  %8874 = vmatpush1.bf16.msra.mxu0 %v10996_v39  ;;  %v420_v48 = vld [vmem:[#allocation2 + $0xb40] sm:$0xff]  ;;  %v4960_v6 = vadd.f32 %v12206_v36, %v12730_v17  ;;  %v5001_v39 = vadd.f32 %v12208_v37, %v12730_v17  ;;  %v165_v53 = vld [vmem:[#allocation2 + $0x348] sm:$0xff] }
 0x292   :  { %v12819_v13 = vadd.f32 %v10065_v27, %v9937_v30  ;;  %v10066_v24 = vmax.f32 %v7545_v26, 0.0  ;;  %8915 = vmatpush1.bf16.msra.mxu1 %v10998_v59  ;;  %v7506_v54 = vpop.f32.mrf.mxu0  ;;  %8875 = vmatprep.subr.bf16.mxu0 %v10741_v0  ;;  %v4962_v59 = vadd.f32 %v12214_v40, %v12730_v17  ;;  %v4536_v16 = vsel %vm3910_vm0, %v11256_v52, 0  ;;  %v292_v36 = vld [vmem:[#allocation2 + $0x740] sm:$0xff]  ;;  %v293_v27 = vld [vmem:[#allocation2 + $0x748] sm:$0xff] }
 0x293   :  { %v7547_v51 = vpop.f32.mrf.mxu1  ;;  %8916 = vmatprep.subr.bf16.mxu1 %v10743_v10  ;;  %v12821_v47 = vadd.f32 %v10064_v4, %v9936_v5  ;;  %v4542_v30 = vsel %vm3910_vm0, %v11258_v1, 0  ;;  %v11001_v5 = vcombine.high %v420_v48, %v548_v63  ;;  %v11003_v0 = vcombine.high %v421_v18, %v549_v57  ;;  %v164_v10 = vld [vmem:[#allocation2 + $0x340] sm:$0xff] }
 0x294   :  { %v12823_v21 = vadd.f32 %v10066_v24, %v9938_v20  ;;  %v5003_v37 = vadd.f32 %v12216_v41, %v12730_v17  ;;  %v11000_v26 = vcombine.low %v420_v48, %v548_v63  ;;  %v9939_v25 = vmax.f32 %v4960_v6, 0.0 }
 0x295   :  { %8876 = vmatpush1.bf16.msra.mxu0 %v10740_v8  ;;  %v9941_v4 = vmax.f32 %v5001_v39, 0.0  ;;  %v9940_v41 = vmax.f32 %v4962_v59, 0.0  ;;  %v10745_v51 = vcombine.high %v164_v10, %v292_v36  ;;  %v10744_v59 = vcombine.low %v164_v10, %v292_v36  ;;  %v550_v36 = vld [vmem:[#allocation2 + $0xf50] sm:$0xff] }
 0x296   :  { %8917 = vmatpush1.bf16.msra.mxu1 %v10742_v29  ;;  %11512 = vmatprep.subr.msk.bf16.mxu0 %vm3910_vm0, %v11257_v38  ;;  %v11002_v29 = vcombine.low %v421_v18, %v549_v57  ;;  %v678_v38 = vld [vmem:[#allocation2 + $0x1350] sm:$0x33]  ;;  %v679_v18 = vld [vmem:[#allocation2 + $0x1358] sm:$0x33]  ;;  %v9942_v57 = vmax.f32 %v5003_v37, 0.0 }
 0x297   :  { %11514 = vmatprep.subr.msk.bf16.mxu1 %vm3910_vm0, %v11259_v23  ;;  %v10747_v23 = vcombine.high %v165_v53, %v293_v27  ;;  %v11262_v37 = vcombine.low %v679_v18, %v679_v18 }
 0x298   :  { %v7583_v40 = vpop.f32.mrf.mxu0  ;;  %11509 = vmatmul.mubr.msk.bf16.vlgmr.msra.gmra.mxu0 %vm3906_vm1, %v12718_v22 }
 0x299   :  { %v7624_v7 = vpop.f32.mrf.mxu1  ;;  %11511 = vmatmul.mubr.msk.bf16.vlgmr.msra.gmra.mxu1 %vm3906_vm1, %v12718_v22  ;;  %v7584_v20 = vadd.f32 %v7583_v40, %v12730_v17  ;;  %8954 = vmatpush1.bf16.msra.mxu0 %v4536_v16  ;;  %v10746_v16 = vcombine.low %v165_v53, %v293_v27  ;;  %v423_v53 = vld [vmem:[#allocation2 + $0xb58] sm:$0xff] }
 0x29a   :  { %v7625_v8 = vadd.f32 %v7624_v7, %v12730_v17  ;;  %8995 = vmatpush1.bf16.msra.mxu1 %v4542_v30  ;;  %v7585_v24 = vpop.f32.mrf.mxu0  ;;  %8955 = vmatprep.subr.bf16.mxu0 %v11001_v5  ;;  %v11261_v30 = vcombine.high %v678_v38, %v678_v38  ;;  %v551_v27 = vld [vmem:[#allocation2 + $0xf58] sm:$0xff] }
 0x29b   :  { %v7626_v54 = vpop.f32.mrf.mxu1  ;;  %8996 = vmatprep.subr.bf16.mxu1 %v11003_v0  ;;  %v10067_v52 = vmax.f32 %v7584_v20, 0.0  ;;  %v7586_v48 = vadd.f32 %v7585_v24, %v12730_v17  ;;  %8975 = vmatprep.mubr.bf16.mxu0 %v13748_v46  ;;  %v11263_v24 = vcombine.high %v679_v18, %v679_v18 }
 0x29c   :  { %v10069_v1 = vmax.f32 %v7625_v8, 0.0  ;;  %v7627_v63 = vadd.f32 %v7626_v54, %v12730_v17  ;;  %9016 = vmatprep.mubr.bf16.mxu1 %v13748_v46  ;;  %v7587_v6 = vpop.f32.mrf.mxu0  ;;  %v11260_v54 = vcombine.low %v678_v38, %v678_v38 }
 0x29d   :  { %v7628_v39 = vpop.f32.mrf.mxu1  ;;  %v12847_v5 = vadd.f32 %v10067_v52, %v9939_v25  ;;  %v10068_v40 = vmax.f32 %v7586_v48, 0.0  ;;  %8956 = vmatpush1.bf16.msra.mxu0 %v11000_v26  ;;  %v422_v6 = vld [vmem:[#allocation2 + $0xb50] sm:$0xff]  ;;  %v5042_v25 = vadd.f32 %v12224_v14, %v12730_v17  ;;  %v167_v52 = vld [vmem:[#allocation2 + $0x358] sm:$0xff]  ;;  %v5085_v14 = vadd.f32 %v12234_v19, %v12730_v17 }
 0x29e   :  { %v12849_v0 = vadd.f32 %v10069_v1, %v9941_v4  ;;  %v10070_v7 = vmax.f32 %v7627_v63, 0.0  ;;  %8997 = vmatpush1.bf16.msra.mxu1 %v11002_v29  ;;  %v7588_v20 = vpop.f32.mrf.mxu0  ;;  %8957 = vmatprep.subr.bf16.mxu0 %v10745_v51  ;;  %v4548_v26 = vsel %vm3910_vm0, %v11260_v54, 0  ;;  %v4554_v29 = vsel %vm3910_vm0, %v11262_v37, 0  ;;  %v295_v1 = vld [vmem:[#allocation2 + $0x758] sm:$0xff] }
 0x29f   :  { %v7629_v8 = vpop.f32.mrf.mxu1  ;;  %8998 = vmatprep.subr.bf16.mxu1 %v10747_v23  ;;  %v12851_v39 = vadd.f32 %v10068_v40, %v9940_v41  ;;  %v11005_v38 = vcombine.high %v422_v6, %v550_v36  ;;  %v11007_v4 = vcombine.high %v423_v53, %v551_v27  ;;  %v166_v41 = vld [vmem:[#allocation2 + $0x350] sm:$0xff]  ;;  %v5083_v51 = vadd.f32 %v12226_v15, %v12730_v17  ;;  %v680_v20 = vld [vmem:[#allocation2 + $0x1360] sm:$0x33] }
 0x2a0   :  { %v12853_v10 = vadd.f32 %v10070_v7, %v9942_v57  ;;  %v294_v23 = vld [vmem:[#allocation2 + $0x750] sm:$0xff]  ;;  %v11004_v18 = vcombine.low %v422_v6, %v550_v36  ;;  %v11006_v15 = vcombine.low %v423_v53, %v551_v27  ;;  %v10751_v7 = vcombine.high %v167_v52, %v295_v1  ;;  %v681_v6 = vld [vmem:[#allocation2 + $0x1368] sm:$0x33] }
 0x2a1   :  { %8958 = vmatpush1.bf16.msra.mxu0 %v10744_v59  ;;  %v10749_v40 = vcombine.high %v166_v41, %v294_v23  ;;  %v9945_v8 = vmax.f32 %v5083_v51, 0.0  ;;  %v9946_v36 = vmax.f32 %v5085_v14, 0.0  ;;  %v11265_v51 = vcombine.high %v680_v20, %v680_v20  ;;  %v424_v14 = vld [vmem:[#allocation2 + $0xb60] sm:$0xff] }
 0x2a2   :  { %8999 = vmatpush1.bf16.msra.mxu1 %v10746_v16  ;;  %11516 = vmatprep.subr.msk.bf16.mxu0 %vm3910_vm0, %v11261_v30  ;;  %v9943_v16 = vmax.f32 %v5042_v25, 0.0  ;;  %v10748_v25 = vcombine.low %v166_v41, %v294_v23  ;;  %v552_v41 = vld [vmem:[#allocation2 + $0xf60] sm:$0xff]  ;;  %v425_v23 = vld [vmem:[#allocation2 + $0xb68] sm:$0xff] }
 0x2a3   :  { %11518 = vmatprep.subr.msk.bf16.mxu1 %vm3910_vm0, %v11263_v24 }
 0x2a4   :  { %v7665_v48 = vpop.f32.mrf.mxu0  ;;  %11513 = vmatmul.mubr.msk.bf16.vlgmr.msra.gmra.mxu0 %vm3906_vm1, %v12718_v22 }
 0x2a5   :  { %v7706_v63 = vpop.f32.mrf.mxu1  ;;  %11515 = vmatmul.mubr.msk.bf16.vlgmr.msra.gmra.mxu1 %vm3906_vm1, %v12718_v22  ;;  %v7666_v57 = vadd.f32 %v7665_v48, %v12730_v17  ;;  %9036 = vmatpush1.bf16.msra.mxu0 %v4548_v26  ;;  %v10750_v26 = vcombine.low %v167_v52, %v295_v1  ;;  %v553_v52 = vld [vmem:[#allocation2 + $0xf68] sm:$0xff]  ;;  %v5124_v1 = vadd.f32 %v12242_v55, %v12730_v17  ;;  %v296_v55 = vld [vmem:[#allocation2 + $0x760] sm:$0xff] }
 0x2a6   :  { %v7707_v59 = vadd.f32 %v7706_v63, %v12730_v17  ;;  %9077 = vmatpush1.bf16.msra.mxu1 %v4554_v29  ;;  %v12871_v30 = vpop.f32.mrf.mxu0  ;;  %9037 = vmatprep.subr.bf16.mxu0 %v11005_v38 }
 0x2a7   :  { %v7708_v19 = vpop.f32.mrf.mxu1  ;;  %9078 = vmatprep.subr.bf16.mxu1 %v11007_v4  ;;  %v10071_v24 = vmax.f32 %v7666_v57, 0.0  ;;  %9057 = vmatprep.mubr.bf16.mxu0 %v13748_v46  ;;  %v11267_v57 = vcombine.high %v681_v6, %v681_v6 }
 0x2a8   :  { %v10073_v54 = vmax.f32 %v7707_v59, 0.0  ;;  %v7709_v37 = vadd.f32 %v7708_v19, %v12730_v17  ;;  %9098 = vmatprep.mubr.bf16.mxu1 %v13748_v46  ;;  %v7669_v53 = vpop.f32.mrf.mxu0  ;;  %v11264_v59 = vcombine.low %v680_v20, %v680_v20  ;;  %v11266_v19 = vcombine.low %v681_v6, %v681_v6 }
 0x2a9   :  { %v7710_v27 = vpop.f32.mrf.mxu1  ;;  %v12876_v29 = vadd.f32 %v10071_v24, %v9943_v16  ;;  %9038 = vmatpush1.bf16.msra.mxu0 %v11004_v18  ;;  %v5165_v18 = vadd.f32 %v12244_v56, %v12730_v17  ;;  %v11011_v20 = vcombine.high %v425_v23, %v553_v52  ;;  %v169_v24 = vld [vmem:[#allocation2 + $0x368] sm:$0xff]  ;;  %v5167_v56 = vadd.f32 %v12252_v3, %v12730_v17 }
 0x2aa   :  { %v12878_v38 = vadd.f32 %v10073_v54, %v9945_v8  ;;  %v10074_v4 = vmax.f32 %v7709_v37, 0.0  ;;  %9079 = vmatpush1.bf16.msra.mxu1 %v11006_v15  ;;  %v7670_v48 = vpop.f32.mrf.mxu0  ;;  %9039 = vmatprep.subr.bf16.mxu0 %v10749_v40  ;;  %v5126_v15 = vadd.f32 %v12250_v2, %v12730_v17  ;;  %v4560_v16 = vsel %vm3910_vm0, %v11264_v59, 0  ;;  %v168_v8 = vld [vmem:[#allocation2 + $0x360] sm:$0xff]  ;;  %v297_v54 = vld [vmem:[#allocation2 + $0x768] sm:$0xff] }
 0x2ab   :  { %v7711_v63 = vpop.f32.mrf.mxu1  ;;  %9080 = vmatprep.subr.bf16.mxu1 %v10751_v7  ;;  %v4566_v40 = vsel %vm3910_vm0, %v11266_v19, 0  ;;  %v11009_v7 = vcombine.high %v424_v14, %v552_v41  ;;  %v11008_v6 = vcombine.low %v424_v14, %v552_v41  ;;  %v10755_v59 = vcombine.high %v169_v24, %v297_v54 }
 0x2ac   :  { %v12880_v53 = vadd.f32 %v10074_v4, %v9946_v36  ;;  %v9947_v36 = vmax.f32 %v5124_v1, 0.0  ;;  %v682_v4 = vld [vmem:[#allocation2 + $0x1370] sm:$0x33]  ;;  %v9948_v3 = vmax.f32 %v5126_v15, 0.0  ;;  %v10752_v15 = vcombine.low %v168_v8, %v296_v55 }
 0x2ad   :  { %9040 = vmatpush1.bf16.msra.mxu0 %v10748_v25 }
 0x2ae   :  { %13749 = vst [vmem:[#allocation107_spill] sm:$0xff] %v12880_v53  ;;  %9081 = vmatpush1.bf16.msra.mxu1 %v10750_v26  ;;  %11520 = vmatprep.subr.msk.bf16.mxu0 %vm3910_vm0, %v11265_v51  ;;  %v11010_v26 = vcombine.low %v425_v23, %v553_v52  ;;  %v9949_v51 = vmax.f32 %v5165_v18, 0.0  ;;  %v683_v23 = vld [vmem:[#allocation2 + $0x1378] sm:$0x33]  ;;  %v9950_v52 = vmax.f32 %v5167_v56, 0.0 }
 0x2af   :  { %11522 = vmatprep.subr.msk.bf16.mxu1 %vm3910_vm0, %v11267_v57  ;;  %v10753_v57 = vcombine.high %v168_v8, %v296_v55  ;;  %v11270_v56 = vcombine.low %v683_v23, %v683_v23  ;;  %v554_v55 = vld [vmem:[#allocation2 + $0xf70] sm:$0xff] }
 0x2b0   :  { %v7747_v2 = vpop.f32.mrf.mxu0  ;;  %11517 = vmatmul.mubr.msk.bf16.vlgmr.msra.gmra.mxu0 %vm3906_vm1, %v12718_v22 }
 0x2b1   :  { %v7788_v37 = vpop.f32.mrf.mxu1  ;;  %11519 = vmatmul.mubr.msk.bf16.vlgmr.msra.gmra.mxu1 %vm3906_vm1, %v12718_v22  ;;  %v7748_v27 = vadd.f32 %v7747_v2, %v12730_v17  ;;  %9118 = vmatpush1.bf16.msra.mxu0 %v4560_v16  ;;  %v10754_v16 = vcombine.low %v169_v24, %v297_v54  ;;  %v427_v24 = vld [vmem:[#allocation2 + $0xb78] sm:$0xff]  ;;  %v5206_v54 = vadd.f32 %v12260_v44, %v12730_v17  ;;  %v298_v44 = vld [vmem:[#allocation2 + $0x770] sm:$0xff] }
 0x2b2   :  { %v7789_v25 = vadd.f32 %v7788_v37, %v12730_v17  ;;  %9159 = vmatpush1.bf16.msra.mxu1 %v4566_v40  ;;  %v7749_v48 = vpop.f32.mrf.mxu0  ;;  %9119 = vmatprep.subr.bf16.mxu0 %v11009_v7  ;;  %v11269_v40 = vcombine.high %v682_v4, %v682_v4 }
 0x2b3   :  { %v7790_v63 = vpop.f32.mrf.mxu1  ;;  %9160 = vmatprep.subr.bf16.mxu1 %v11011_v20  ;;  %v10075_v19 = vmax.f32 %v7748_v27, 0.0  ;;  %v7750_v14 = vadd.f32 %v7749_v48, %v12730_v17  ;;  %9139 = vmatprep.mubr.bf16.mxu0 %v13748_v46  ;;  %v11271_v48 = vcombine.high %v683_v23, %v683_v23  ;;  %v9951_v23 = vmax.f32 %v5206_v54, 0.0 }
 0x2b4   :  { %v10077_v53 = vmax.f32 %v7789_v25, 0.0  ;;  %v7791_v41 = vadd.f32 %v7790_v63, %v12730_v17  ;;  %9180 = vmatprep.mubr.bf16.mxu1 %v13748_v46  ;;  %v7751_v1 = vpop.f32.mrf.mxu0  ;;  %v11268_v63 = vcombine.low %v682_v4, %v682_v4  ;;  %v4578_v4 = vsel %vm3910_vm0, %v11270_v56, 0 }
 0x2b5   :  { %v7792_v18 = vpop.f32.mrf.mxu1  ;;  %v12904_v7 = vadd.f32 %v10075_v19, %v9947_v36  ;;  %v10076_v2 = vmax.f32 %v7750_v14, 0.0  ;;  %9120 = vmatpush1.bf16.msra.mxu0 %v11008_v6  ;;  %v426_v1 = vld [vmem:[#allocation2 + $0xb70] sm:$0xff]  ;;  %v5247_v6 = vadd.f32 %v12262_v45, %v12730_v17  ;;  %v5208_v36 = vadd.f32 %v12268_v49, %v12730_v17  ;;  %v299_v19 = vld [vmem:[#allocation2 + $0x778] sm:$0xff] }
 0x2b6   :  { %v12906_v20 = vadd.f32 %v10077_v53, %v9949_v51  ;;  %v10078_v37 = vmax.f32 %v7791_v41, 0.0  ;;  %9161 = vmatpush1.bf16.msra.mxu1 %v11010_v26  ;;  %v7752_v27 = vpop.f32.mrf.mxu0  ;;  %9121 = vmatprep.subr.bf16.mxu0 %v10753_v57  ;;  %v555_v53 = vld [vmem:[#allocation2 + $0xf78] sm:$0xff]  ;;  %v4572_v26 = vsel %vm3910_vm0, %v11268_v63, 0  ;;  %v11013_v51 = vcombine.high %v426_v1, %v554_v55  ;;  %v170_v57 = vld [vmem:[#allocation2 + $0x370] sm:$0xff] }
 0x2b7   :  { %v7793_v25 = vpop.f32.mrf.mxu1  ;;  %9162 = vmatprep.subr.bf16.mxu1 %v10755_v59  ;;  %v12908_v18 = vadd.f32 %v10076_v2, %v9948_v3  ;;  %v11015_v3 = vcombine.high %v427_v24, %v555_v53  ;;  %v171_v59 = vld [vmem:[#allocation2 + $0x378] sm:$0xff]  ;;  %v5249_v45 = vadd.f32 %v12270_v50, %v12730_v17  ;;  %v11012_v41 = vcombine.low %v426_v1, %v554_v55  ;;  %v685_v55 = vld [vmem:[#allocation2 + $0x1388] sm:$0x33] }
 0x2b8   :  { %v12910_v8 = vadd.f32 %v10078_v37, %v9950_v52  ;;  %v9953_v2 = vmax.f32 %v5247_v6, 0.0  ;;  %v9952_v50 = vmax.f32 %v5208_v36, 0.0  ;;  %v10757_v25 = vcombine.high %v170_v57, %v298_v44 }
 0x2b9   :  { %9122 = vmatpush1.bf16.msra.mxu0 %v10752_v15  ;;  %v10756_v6 = vcombine.low %v170_v57, %v298_v44  ;;  %v10758_v36 = vcombine.low %v171_v59, %v299_v19  ;;  %v556_v44 = vld [vmem:[#allocation2 + $0xf80] sm:$0xff] }
 0x2ba   :  { %9163 = vmatpush1.bf16.msra.mxu1 %v10754_v16  ;;  %11524 = vmatprep.subr.msk.bf16.mxu0 %vm3910_vm0, %v11269_v40  ;;  %v11014_v16 = vcombine.low %v427_v24, %v555_v53  ;;  %v684_v40 = vld [vmem:[#allocation2 + $0x1380] sm:$0x33]  ;;  %v9954_v24 = vmax.f32 %v5249_v45, 0.0  ;;  %v11274_v45 = vcombine.low %v685_v55, %v685_v55 }
 0x2bb   :  { %11526 = vmatprep.subr.msk.bf16.mxu1 %vm3910_vm0, %v11271_v48  ;;  %v10759_v48 = vcombine.high %v171_v59, %v299_v19  ;;  %v429_v59 = vld [vmem:[#allocation2 + $0xb88] sm:$0xff] }
 0x2bc   :  { %v7829_v49 = vpop.f32.mrf.mxu0  ;;  %11521 = vmatmul.mubr.msk.bf16.vlgmr.msra.gmra.mxu0 %vm3906_vm1, %v12718_v22  ;;  %v557_v19 = vld [vmem:[#allocation2 + $0xf88] sm:$0xff] }
 0x2bd   :  { %v7870_v14 = vpop.f32.mrf.mxu1  ;;  %11523 = vmatmul.mubr.msk.bf16.vlgmr.msra.gmra.mxu1 %vm3906_vm1, %v12718_v22  ;;  %v7830_v52 = vadd.f32 %v7829_v49, %v12730_v17  ;;  %9200 = vmatpush1.bf16.msra.mxu0 %v4572_v26  ;;  %v11273_v26 = vcombine.high %v684_v40, %v684_v40 }
 0x2be   :  { %v7871_v15 = vadd.f32 %v7870_v14, %v12730_v17  ;;  %9241 = vmatpush1.bf16.msra.mxu1 %v4578_v4  ;;  %v7831_v37 = vpop.f32.mrf.mxu0  ;;  %9201 = vmatprep.subr.bf16.mxu0 %v11013_v51 }
 0x2bf   :  { %v7872_v27 = vpop.f32.mrf.mxu1  ;;  %9242 = vmatprep.subr.bf16.mxu1 %v11015_v3  ;;  %v10079_v63 = vmax.f32 %v7830_v52, 0.0  ;;  %v7832_v56 = vadd.f32 %v7831_v37, %v12730_v17  ;;  %9221 = vmatprep.mubr.bf16.mxu0 %v13748_v46  ;;  %v11272_v37 = vcombine.low %v684_v40, %v684_v40 }
 0x2c0   :  { %v10081_v22 = vmax.f32 %v7871_v15, 0.0  ;;  %v7873_v1 = vadd.f32 %v7872_v27, %v12730_v17  ;;  %9262 = vmatprep.mubr.bf16.mxu1 %v13748_v46  ;;  %v7833_v53 = vpop.f32.mrf.mxu0  ;;  %v11275_v15 = vcombine.high %v685_v55, %v685_v55  ;;  %v428_v27 = vld [vmem:[#allocation2 + $0xb80] sm:$0xff] }
 0x2c1   :  { %v7874_v54 = vpop.f32.mrf.mxu1  ;;  %v12934_v4 = vadd.f32 %v10079_v63, %v9951_v23  ;;  %v10080_v3 = vmax.f32 %v7832_v56, 0.0  ;;  %9202 = vmatpush1.bf16.msra.mxu0 %v11012_v41  ;;  %v5288_v23 = vadd.f32 %v12278_v33, %v12730_v17  ;;  %v5329_v41 = vadd.f32 %v12280_v34, %v12730_v17  ;;  %v172_v33 = vld [vmem:[#allocation2 + $0x380] sm:$0xff]  ;;  %v173_v63 = vld [vmem:[#allocation2 + $0x388] sm:$0xff] }
 0x2c2   :  { %v12936_v51 = vadd.f32 %v10081_v22, %v9953_v2  ;;  %v10082_v49 = vmax.f32 %v7873_v1, 0.0  ;;  %9243 = vmatpush1.bf16.msra.mxu1 %v11014_v16  ;;  %v7834_v14 = vpop.f32.mrf.mxu0  ;;  %9203 = vmatprep.subr.bf16.mxu0 %v10757_v25  ;;  %v12948_v16 = vadd.f32 %v12286_v42, %v12730_v17  ;;  %v4584_v40 = vsel %vm3910_vm0, %v11272_v37, 0  ;;  %v301_v34 = vld [vmem:[#allocation2 + $0x788] sm:$0xff]  ;;  %v12956_v1 = vld [vmem:[#allocation5] sm:$0xf] }
 0x2c3   :  { %v7875_v52 = vpop.f32.mrf.mxu1  ;;  %9244 = vmatprep.subr.bf16.mxu1 %v10759_v48  ;;  %v12938_v53 = vadd.f32 %v10080_v3, %v9952_v50  ;;  %v4590_v2 = vsel %vm3910_vm0, %v11274_v45, 0  ;;  %v11017_v50 = vcombine.high %v428_v27, %v556_v44  ;;  %v11019_v25 = vcombine.high %v429_v59, %v557_v19  ;;  %v300_v48 = vld [vmem:[#allocation2 + $0x780] sm:$0xff] }
 0x2c4   :  { %v12940_v57 = vadd.f32 %v10082_v49, %v9954_v24  ;;  %v5331_v42 = vadd.f32 %v12288_v43, %v12730_v17  ;;  %v11016_v55 = vcombine.low %v428_v27, %v556_v44  ;;  %v9955_v24 = vmax.f32 %v5288_v23, 0.0  ;;  %v686_v43 = vld [vmem:[#allocation2 + $0x1390] sm:$0x33] }
 0x2c5   :  { %9204 = vmatpush1.bf16.msra.mxu0 %v10756_v6  ;;  %v9956_v3 = vmax.f32 %v12948_v16, 0.0  ;;  %v10761_v52 = vcombine.high %v172_v33, %v300_v48  ;;  %v10760_v16 = vcombine.low %v172_v33, %v300_v48  ;;  %v558_v48 = vld [vmem:[#allocation2 + $0xf90] sm:$0xff] }
 0x2c6   :  { %9245 = vmatpush1.bf16.msra.mxu1 %v10758_v36  ;;  %11528 = vmatprep.subr.msk.bf16.mxu0 %vm3910_vm0, %v11273_v26  ;;  %v11018_v36 = vcombine.low %v429_v59, %v557_v19  ;;  %v9957_v26 = vmax.f32 %v5329_v41, 0.0  ;;  %v687_v59 = vld [vmem:[#allocation2 + $0x1398] sm:$0x33]  ;;  %v9958_v19 = vmax.f32 %v5331_v42, 0.0 }
 0x2c7   :  { %11530 = vmatprep.subr.msk.bf16.mxu1 %vm3910_vm0, %v11275_v15  ;;  %v10763_v15 = vcombine.high %v173_v63, %v301_v34  ;;  %v11278_v42 = vcombine.low %v687_v59, %v687_v59 }
 0x2c8   :  { %v7911_v22 = vpop.f32.mrf.mxu0  ;;  %11525 = vmatmul.mubr.msk.bf16.vlgmr.msra.gmra.mxu0 %vm3906_vm1, %v12956_v1 }
 0x2c9   :  { %v7952_v56 = vpop.f32.mrf.mxu1  ;;  %11527 = vmatmul.mubr.msk.bf16.vlgmr.msra.gmra.mxu1 %vm3906_vm1, %v12956_v1  ;;  %v7912_v54 = vadd.f32 %v7911_v22, %v12730_v17  ;;  %9282 = vmatpush1.bf16.msra.mxu0 %v4584_v40  ;;  %v10762_v40 = vcombine.low %v173_v63, %v301_v34  ;;  %v431_v63 = vld [vmem:[#allocation2 + $0xb98] sm:$0xff] }
 0x2ca   :  { %v7953_v6 = vadd.f32 %v7952_v56, %v12730_v17  ;;  %9323 = vmatpush1.bf16.msra.mxu1 %v4590_v2  ;;  %v7913_v49 = vpop.f32.mrf.mxu0  ;;  %9283 = vmatprep.subr.bf16.mxu0 %v11017_v50  ;;  %v11277_v2 = vcombine.high %v686_v43, %v686_v43  ;;  %v559_v34 = vld [vmem:[#allocation2 + $0xf98] sm:$0xff] }
 0x2cb   :  { %v7954_v14 = vpop.f32.mrf.mxu1  ;;  %9324 = vmatprep.subr.bf16.mxu1 %v11019_v25  ;;  %v10083_v37 = vmax.f32 %v7912_v54, 0.0  ;;  %v7914_v27 = vadd.f32 %v7913_v49, %v12730_v17  ;;  %9303 = vmatprep.mubr.bf16.mxu0 %v13748_v46  ;;  %v11279_v49 = vcombine.high %v687_v59, %v687_v59 }
 0x2cc   :  { %v10085_v45 = vmax.f32 %v7953_v6, 0.0  ;;  %v7955_v44 = vadd.f32 %v7954_v14, %v12730_v17  ;;  %9344 = vmatprep.mubr.bf16.mxu1 %v13748_v46  ;;  %v7915_v23 = vpop.f32.mrf.mxu0  ;;  %v11276_v14 = vcombine.low %v686_v43, %v686_v43 }
 0x2cd   :  { %v7956_v41 = vpop.f32.mrf.mxu1  ;;  %v12969_v50 = vadd.f32 %v10083_v37, %v9955_v24  ;;  %v10084_v22 = vmax.f32 %v7914_v27, 0.0  ;;  %9284 = vmatpush1.bf16.msra.mxu0 %v11016_v55  ;;  %v430_v23 = vld [vmem:[#allocation2 + $0xb90] sm:$0xff]  ;;  %v5370_v24 = vadd.f32 %v12296_v31, %v12730_v17  ;;  %v5411_v55 = vadd.f32 %v12298_v32, %v12730_v17  ;;  %v303_v27 = vld [vmem:[#allocation2 + $0x798] sm:$0xff]  ;;  %v13753_v32 = vld [vmem:[#allocation14_spill] sm:$0xff] }
 0x2ce   :  { %v12971_v25 = vadd.f32 %v10085_v45, %v9957_v26  ;;  %v10086_v56 = vmax.f32 %v7955_v44, 0.0  ;;  %9325 = vmatpush1.bf16.msra.mxu1 %v11018_v36  ;;  %v7916_v54 = vpop.f32.mrf.mxu0  ;;  %9285 = vmatprep.subr.bf16.mxu0 %v10761_v52  ;;  %v13752_v36 = vld [vmem:[#allocation13_spill] sm:$0xff]  ;;  %v4596_v43 = vsel %vm3910_vm0, %v11276_v14, 0  ;;  %v11021_v52 = vcombine.high %v430_v23, %v558_v48  ;;  %v174_v37 = vld [vmem:[#allocation2 + $0x390] sm:$0xff] }
 0x2cf   :  { %v7957_v6 = vpop.f32.mrf.mxu1  ;;  %9326 = vmatprep.subr.bf16.mxu1 %v10763_v15  ;;  %v12973_v41 = vadd.f32 %v10084_v22, %v9956_v3  ;;  %v5372_v26 = vadd.f32 %v13752_v36, %v12730_v17  ;;  %v4602_v3 = vsel %vm3910_vm0, %v11278_v42, 0  ;;  %v11023_v15 = vcombine.high %v431_v63, %v559_v34  ;;  %v302_v31 = vld [vmem:[#allocation2 + $0x790] sm:$0xff]  ;;  %v175_v45 = vld [vmem:[#allocation2 + $0x398] sm:$0xff]  ;;  %v688_v54 = vld [vmem:[#allocation2 + $0x13a0] sm:$0x33] }
 0x2d0   :  { %v12975_v33 = vadd.f32 %v10086_v56, %v9958_v19  ;;  %v5413_v44 = vadd.f32 %v13753_v32, %v12730_v17  ;;  %v11022_v56 = vcombine.low %v431_v63, %v559_v34  ;;  %v9961_v6 = vmax.f32 %v5411_v55, 0.0  ;;  %v689_v63 = vld [vmem:[#allocation2 + $0x13a8] sm:$0x33] }
 0x2d1   :  { %13750 = vst [vmem:[#allocation108_spill] sm:$0xff] %v12973_v41  ;;  %9286 = vmatpush1.bf16.msra.mxu0 %v10760_v16  ;;  %v11020_v16 = vcombine.low %v430_v23, %v558_v48  ;;  %v10765_v36 = vcombine.high %v174_v37, %v302_v31  ;;  %v10767_v32 = vcombine.high %v175_v45, %v303_v27 }
 0x2d2   :  { %13751 = vst [vmem:[#allocation109_spill] sm:$0xff] %v12975_v33  ;;  %9327 = vmatpush1.bf16.msra.mxu1 %v10762_v40  ;;  %11532 = vmatprep.subr.msk.bf16.mxu0 %vm3910_vm0, %v11277_v2  ;;  %v9959_v40 = vmax.f32 %v5370_v24, 0.0  ;;  %v9962_v34 = vmax.f32 %v5413_v44, 0.0  ;;  %v11282_v44 = vcombine.low %v689_v63, %v689_v63 }
 0x2d3   :  { %11534 = vmatprep.subr.msk.bf16.mxu1 %vm3910_vm0, %v11279_v49  ;;  %v9960_v49 = vmax.f32 %v5372_v26, 0.0  ;;  %v10764_v26 = vcombine.low %v174_v37, %v302_v31  ;;  %v433_v31 = vld [vmem:[#allocation2 + $0xba8] sm:$0xff] }
 0x2d4   :  { %v7993_v59 = vpop.f32.mrf.mxu0  ;;  %11529 = vmatmul.mubr.msk.bf16.vlgmr.msra.gmra.mxu0 %vm3906_vm1, %v12956_v1 }
 0x2d5   :  { %v8034_v19 = vpop.f32.mrf.mxu1  ;;  %11531 = vmatmul.mubr.msk.bf16.vlgmr.msra.gmra.mxu1 %vm3906_vm1, %v12956_v1  ;;  %v7994_v2 = vadd.f32 %v7993_v59, %v12730_v17  ;;  %9364 = vmatpush1.bf16.msra.mxu0 %v4596_v43  ;;  %v10766_v43 = vcombine.low %v175_v45, %v303_v27  ;;  %v13758_v45 = vld [vmem:[#allocation15_spill] sm:$0xff] }
 0x2d6   :  { %v8035_v22 = vadd.f32 %v8034_v19, %v12730_v17  ;;  %9405 = vmatpush1.bf16.msra.mxu1 %v4602_v3  ;;  %v7995_v14 = vpop.f32.mrf.mxu0  ;;  %9365 = vmatprep.subr.bf16.mxu0 %v11021_v52  ;;  %v11281_v3 = vcombine.high %v688_v54, %v688_v54  ;;  %v5452_v27 = vadd.f32 %v13758_v45, %v12730_v17 }
 0x2d7   :  { %v8036_v42 = vpop.f32.mrf.mxu1  ;;  %9406 = vmatprep.subr.bf16.mxu1 %v11023_v15  ;;  %v10087_v33 = vmax.f32 %v7994_v2, 0.0  ;;  %v7996_v23 = vadd.f32 %v7995_v14, %v12730_v17  ;;  %9385 = vmatprep.mubr.bf16.mxu0 %v13748_v46  ;;  %v11283_v14 = vcombine.high %v689_v63, %v689_v63  ;;  %v177_v63 = vld [vmem:[#allocation2 + $0x3a8] sm:$0xff] }
 0x2d8   :  { %v10089_v41 = vmax.f32 %v8035_v22, 0.0  ;;  %v8037_v48 = vadd.f32 %v8036_v42, %v12730_v17  ;;  %9426 = vmatprep.mubr.bf16.mxu1 %v13748_v46  ;;  %v7997_v24 = vpop.f32.mrf.mxu0  ;;  %v11280_v42 = vcombine.low %v688_v54, %v688_v54 }
 0x2d9   :  { %v8038_v55 = vpop.f32.mrf.mxu1  ;;  %v12999_v52 = vadd.f32 %v10087_v33, %v9959_v40  ;;  %v10088_v59 = vmax.f32 %v7996_v23, 0.0  ;;  %9366 = vmatpush1.bf16.msra.mxu0 %v11020_v16  ;;  %v432_v24 = vld [vmem:[#allocation2 + $0xba0] sm:$0xff]  ;;  %v13759_v16 = vld [vmem:[#allocation16_spill] sm:$0xff] }
 0x2da   :  { %v13001_v15 = vadd.f32 %v10089_v41, %v9961_v6  ;;  %v10090_v19 = vmax.f32 %v8037_v48, 0.0  ;;  %9407 = vmatpush1.bf16.msra.mxu1 %v11022_v56  ;;  %v7998_v2 = vpop.f32.mrf.mxu0  ;;  %9367 = vmatprep.subr.bf16.mxu0 %v10765_v36  ;;  %v560_v33 = vld [vmem:[#allocation2 + $0xfa0] sm:$0xff]  ;;  %v561_v41 = vld [vmem:[#allocation2 + $0xfa8] sm:$0xff]  ;;  %v5493_v40 = vadd.f32 %v13759_v16, %v12730_v17  ;;  %v4608_v54 = vsel %vm3910_vm0, %v11280_v42, 0 }
 0x2db   :  { %13754 = vst [vmem:[#allocation13_spill] sm:$0xff] %v12999_v52  ;;  %v8039_v22 = vpop.f32.mrf.mxu1  ;;  %9408 = vmatprep.subr.bf16.mxu1 %v10767_v32  ;;  %v13003_v55 = vadd.f32 %v10088_v59, %v9960_v49  ;;  %v13760_v56 = vld [vmem:[#allocation17_spill] sm:$0xff]  ;;  %v4614_v49 = vsel %vm3910_vm0, %v11282_v44, 0  ;;  %v11025_v36 = vcombine.high %v432_v24, %v560_v33  ;;  %v11027_v32 = vcombine.high %v433_v31, %v561_v41  ;;  %v13761_v59 = vld [vmem:[#allocation18_spill] sm:$0xff]  ;;  %v690_v44 = vld [vmem:[#allocation2 + $0x13b0] sm:$0x33] }
 0x2dc   :  { %13755 = vst [vmem:[#allocation14_spill] sm:$0xff] %v13001_v15  ;;  %v13005_v37 = vadd.f32 %v10090_v19, %v9962_v34  ;;  %v5454_v6 = vadd.f32 %v13760_v56, %v12730_v17  ;;  %v176_v23 = vld [vmem:[#allocation2 + $0x3a0] sm:$0xff]  ;;  %v305_v34 = vld [vmem:[#allocation2 + $0x7a8] sm:$0xff]  ;;  %v5495_v19 = vadd.f32 %v13761_v59, %v12730_v17  ;;  %v11026_v42 = vcombine.low %v433_v31, %v561_v41  ;;  %v691_v31 = vld [vmem:[#allocation2 + $0x13b8] sm:$0x33] }
 0x2dd   :  { %13756 = vst [vmem:[#allocation110_spill] sm:$0xff] %v13003_v55  ;;  %9368 = vmatpush1.bf16.msra.mxu0 %v10764_v26  ;;  %v304_v48 = vld [vmem:[#allocation2 + $0x7a0] sm:$0xff]  ;;  %v9965_v45 = vmax.f32 %v5493_v40, 0.0  ;;  %v10771_v55 = vcombine.high %v177_v63, %v305_v34 }
 0x2de   :  { %13757 = vst [vmem:[#allocation111_spill] sm:$0xff] %v13005_v37  ;;  %9409 = vmatpush1.bf16.msra.mxu1 %v10766_v43  ;;  %11536 = vmatprep.subr.msk.bf16.mxu0 %vm3910_vm0, %v11281_v3  ;;  %v11024_v43 = vcombine.low %v432_v24, %v560_v33  ;;  %v9963_v3 = vmax.f32 %v5452_v27, 0.0  ;;  %v9964_v16 = vmax.f32 %v5454_v6, 0.0  ;;  %v10769_v37 = vcombine.high %v176_v23, %v304_v48 }
 0x2df   :  { %11538 = vmatprep.subr.msk.bf16.mxu1 %vm3910_vm0, %v11283_v14  ;;  %v9966_v41 = vmax.f32 %v5495_v19, 0.0  ;;  %v10768_v6 = vcombine.low %v176_v23, %v304_v48  ;;  %v11286_v19 = vcombine.low %v691_v31, %v691_v31  ;;  %v435_v48 = vld [vmem:[#allocation2 + $0xbb8] sm:$0xff] }
 0x2e0   :  { %v8075_v2 = vpop.f32.mrf.mxu0  ;;  %11533 = vmatmul.mubr.msk.bf16.vlgmr.msra.gmra.mxu0 %vm3906_vm1, %v12956_v1 }
 0x2e1   :  { %v8116_v26 = vpop.f32.mrf.mxu1  ;;  %11535 = vmatmul.mubr.msk.bf16.vlgmr.msra.gmra.mxu1 %vm3906_vm1, %v12956_v1  ;;  %v8076_v22 = vadd.f32 %v8075_v2, %v12730_v17  ;;  %9446 = vmatpush1.bf16.msra.mxu0 %v4608_v54  ;;  %v10770_v54 = vcombine.low %v177_v63, %v305_v34  ;;  %v13766_v63 = vld [vmem:[#allocation19_spill] sm:$0xff] }
 0x2e2   :  { %v8117_v14 = vadd.f32 %v8116_v26, %v12730_v17  ;;  %9487 = vmatpush1.bf16.msra.mxu1 %v4614_v49  ;;  %v8077_v56 = vpop.f32.mrf.mxu0  ;;  %9447 = vmatprep.subr.bf16.mxu0 %v11025_v36  ;;  %v11285_v49 = vcombine.high %v690_v44, %v690_v44  ;;  %v5534_v34 = vadd.f32 %v13766_v63, %v12730_v17  ;;  %v10439_v63 = vld [vmem:[%s13649_s4] sm:$0xff]  ;;  %s11934_s4 = smov [#allocation8]  }
 0x2e3   :  { %v8118_v59 = vpop.f32.mrf.mxu1  ;;  %9488 = vmatprep.subr.bf16.mxu1 %v11027_v32  ;;  %v10091_v15 = vmax.f32 %v8076_v22, 0.0  ;;  %v8078_v24 = vadd.f32 %v8077_v56, %v12730_v17  ;;  %9467 = vmatprep.mubr.bf16.mxu0 %v13748_v46  ;;  %v11287_v56 = vcombine.high %v691_v31, %v691_v31  ;;  %v179_v31 = vld [vmem:[#allocation2 + $0x3b8] sm:$0xff]  ;;  %s10526_s10 = sshll.u32 %s11934_s4, 4  ;;  %s10527_s10 = int_to_ptr.vmem [resolvable:$true] %s10526_s10 }
 0x2e4   :  { %v10093_v52 = vmax.f32 %v8117_v14, 0.0  ;;  %v8119_v33 = vadd.f32 %v8118_v59, %v12730_v17  ;;  %9508 = vmatprep.mubr.bf16.mxu1 %v13748_v46  ;;  %v8079_v27 = vpop.f32.mrf.mxu0  ;;  %v11284_v59 = vcombine.low %v690_v44, %v690_v44  ;;  %v4626_v44 = vsel %vm3910_vm0, %v11286_v19, 0  ;;  %v692_v19 = vld [vmem:[#allocation2 + $0x13c0] sm:$0x33]  ;;  %10442 = vperm.xlu0 %11577, %v10439_v63   ;;  %v13774_v63 = vld [vmem:[#allocation23_spill] sm:$0xff]  ;;  %s11900_s11 = scalar_lea.vmem %s10527_s10, 128  ;;  %p11905_p2 = scmp.lt.s32.totalorder %s10527_s10, %s10527_s10 }
 0x2e5   :  { %v8120_v40 = vpop.f32.mrf.mxu1  ;;  %v13029_v36 = vadd.f32 %v10091_v15, %v9963_v3  ;;  %v10092_v2 = vmax.f32 %v8078_v24, 0.0  ;;  %9448 = vmatpush1.bf16.msra.mxu0 %v11024_v43  ;;  %v434_v27 = vld [vmem:[#allocation2 + $0xbb0] sm:$0xff]  ;;  %p11901_p1 = scmp.ne.s32.totalorder %s10527_s10, %s11900_s11  ;;  %p11906_p3 = scmp.lt.s32.totalorder %s11900_s11, %s11900_s11 }
 0x2e6   :  { %v13031_v32 = vadd.f32 %v10093_v52, %v9965_v45  ;;  %v10094_v26 = vmax.f32 %v8119_v33, 0.0  ;;  %9489 = vmatpush1.bf16.msra.mxu1 %v11026_v42  ;;  %v8080_v22 = vpop.f32.mrf.mxu0  ;;  %9449 = vmatprep.subr.bf16.mxu0 %v10769_v37  ;;  %v562_v15 = vld [vmem:[#allocation2 + $0xfb0] sm:$0xff]  ;;  %v563_v52 = vld [vmem:[#allocation2 + $0xfb8] sm:$0xff]  ;;  %v4620_v42 = vsel %vm3910_vm0, %v11284_v59, 0 }
 0x2e7   :  { %13762 = vst [vmem:[#allocation15_spill] sm:$0xff] %v13029_v36  ;;  %v8121_v14 = vpop.f32.mrf.mxu1  ;;  %9490 = vmatprep.subr.bf16.mxu1 %v10771_v55  ;;  %v13033_v40 = vadd.f32 %v10092_v2, %v9964_v16  ;;  %v13767_v43 = vld [vmem:[#allocation20_spill] sm:$0xff]  ;;  %v13768_v37 = vld [vmem:[#allocation21_spill] sm:$0xff]  ;;  %v11029_v45 = vcombine.high %v434_v27, %v562_v15  ;;  %v11031_v16 = vcombine.high %v435_v48, %v563_v52  ;;  %v13769_v2 = vld [vmem:[#allocation22_spill] sm:$0xff]  ;;  %p11907_p4 = por %p11906_p3, %p11905_p2 }
 0x2e8   :  { %13763 = vst [vmem:[#allocation16_spill] sm:$0xff] %v13031_v32  ;;  %v13035_v23 = vadd.f32 %v10094_v26, %v9966_v41  ;;  %v5575_v3 = vadd.f32 %v13767_v43, %v12730_v17  ;;  %v13043_v55 = vadd.f32 %v13768_v37, %v12730_v17  ;;  %v178_v24 = vld [vmem:[#allocation2 + $0x3b0] sm:$0xff]  ;;  %v307_v41 = vld [vmem:[#allocation2 + $0x7b8] sm:$0xff]  ;;  %v5577_v26 = vadd.f32 %v13769_v2, %v12730_v17 }
 0x2e9   :  { %13764 = vst [vmem:[#allocation17_spill] sm:$0xff] %v13033_v40  ;;  %9450 = vmatpush1.bf16.msra.mxu0 %v10768_v6  ;;  %v306_v33 = vld [vmem:[#allocation2 + $0x7b0] sm:$0xff]  ;;  %v11030_v59 = vcombine.low %v435_v48, %v563_v52  ;;  %v693_v52 = vld [vmem:[#allocation2 + $0x13c8] sm:$0x33]  ;;  %v10774_v40 = vcombine.low %v179_v31, %v307_v41  ;;  %p11908_p5 = pnand %p11907_p4, %p11901_p1 }
 0x2ea   :  { %13765 = vst [vmem:[#allocation18_spill] sm:$0xff] %v13035_v23  ;;  %9491 = vmatpush1.bf16.msra.mxu1 %v10770_v54  ;;  %11540 = vmatprep.subr.msk.bf16.mxu0 %vm3910_vm0, %v11285_v49  ;;  %v11028_v54 = vcombine.low %v434_v27, %v562_v15  ;;  %v9967_v49 = vmax.f32 %v5534_v34, 0.0  ;;  %v9969_v43 = vmax.f32 %v5575_v3, 0.0  ;;  %v9968_v37 = vmax.f32 %v13043_v55, 0.0 }
 0x2eb   :  { %11542 = vmatprep.subr.msk.bf16.mxu1 %vm3910_vm0, %v11287_v56  ;;  %v10773_v27 = vcombine.high %v178_v24, %v306_v33  ;;  %v10775_v15 = vcombine.high %v179_v31, %v307_v41  ;;  %v9970_v3 = vmax.f32 %v5577_v26, 0.0  ;;  %v11291_v36 = vcombine.high %v693_v52, %v693_v52  ;;  %v564_v31 = vld [vmem:[#allocation2 + $0xfc0] sm:$0xff]  ;;  %v437_v41 = vld [vmem:[#allocation2 + $0xbc8] sm:$0xff] }
 0x2ec   :  { %v8157_v22 = vpop.f32.mrf.mxu0  ;;  %11537 = vmatmul.mubr.msk.bf16.vlgmr.msra.gmra.mxu0 %vm3906_vm1, %v12956_v1  ;;  %v11288_v26 = vcombine.low %v692_v19, %v692_v19 }
 0x2ed   :  { %v8198_v6 = vpop.f32.mrf.mxu1  ;;  %11539 = vmatmul.mubr.msk.bf16.vlgmr.msra.gmra.mxu1 %vm3906_vm1, %v12956_v1  ;;  %v8158_v14 = vadd.f32 %v8157_v22, %v12730_v17  ;;  %9528 = vmatpush1.bf16.msra.mxu0 %v4620_v42 }
 0x2ee   :  { %v8199_v56 = vadd.f32 %v8198_v6, %v12730_v17  ;;  %9569 = vmatpush1.bf16.msra.mxu1 %v4626_v44  ;;  %v8159_v2 = vpop.f32.mrf.mxu0  ;;  %9529 = vmatprep.subr.bf16.mxu0 %v11029_v45  ;;  %v10772_v6 = vcombine.low %v178_v24, %v306_v33  ;;  %v11289_v45 = vcombine.high %v692_v19, %v692_v19  ;;  %v4632_v19 = vsel %vm3910_vm0, %v11288_v26, 0 }
 0x2ef   :  { %v8200_v23 = vpop.f32.mrf.mxu1  ;;  %9570 = vmatprep.subr.bf16.mxu1 %v11031_v16  ;;  %v10095_v34 = vmax.f32 %v8158_v14, 0.0  ;;  %v8160_v42 = vadd.f32 %v8159_v2, %v12730_v17  ;;  %9549 = vmatprep.mubr.bf16.mxu0 %v13748_v46 }
 0x2f0   :  { %v10097_v22 = vmax.f32 %v8199_v56, 0.0  ;;  %v8201_v48 = vadd.f32 %v8200_v23, %v12730_v17  ;;  %9590 = vmatprep.mubr.bf16.mxu1 %v13748_v46  ;;  %v8161_v44 = vpop.f32.mrf.mxu0 }
 0x2f1   :  { %v8202_v55 = vpop.f32.mrf.mxu1  ;;  %v13065_v16 = vadd.f32 %v10095_v34, %v9967_v49  ;;  %v10096_v56 = vmax.f32 %v8160_v42, 0.0  ;;  %9530 = vmatpush1.bf16.msra.mxu0 %v11028_v54  ;;  %v11290_v44 = vcombine.low %v693_v52, %v693_v52  ;;  %v565_v49 = vld [vmem:[#allocation2 + $0xfc8] sm:$0xff]  ;;  %v13775_v54 = vld [vmem:[#allocation24_spill] sm:$0xff]  ;;  %v308_v42 = vld [vmem:[#allocation2 + $0x7c0] sm:$0xff] }
 0x2f2   :  { %v13067_v14 = vadd.f32 %v10097_v22, %v9969_v43  ;;  %v10098_v2 = vmax.f32 %v8201_v48, 0.0  ;;  %9571 = vmatpush1.bf16.msra.mxu1 %v11030_v59  ;;  %v8162_v23 = vpop.f32.mrf.mxu0  ;;  %9531 = vmatprep.subr.bf16.mxu0 %v10773_v27  ;;  %v436_v55 = vld [vmem:[#allocation2 + $0xbc0] sm:$0xff]  ;;  %v5616_v43 = vadd.f32 %v13774_v63, %v12730_v17  ;;  %v5657_v59 = vadd.f32 %v13775_v54, %v12730_v17  ;;  %v181_v48 = vld [vmem:[#allocation2 + $0x3c8] sm:$0xff] }
 0x2f3   :  { %13770 = vst [vmem:[#allocation19_spill] sm:$0xff] %v13065_v16  ;;  %v8203_v32 = vpop.f32.mrf.mxu1  ;;  %9572 = vmatprep.subr.bf16.mxu1 %v10775_v15  ;;  %v13069_v24 = vadd.f32 %v10096_v56, %v9968_v37  ;;  %v4638_v37 = vsel %vm3910_vm0, %v11290_v44, 0  ;;  %v11033_v15 = vcombine.high %v436_v55, %v564_v31  ;;  %v11035_v34 = vcombine.high %v437_v41, %v565_v49  ;;  %v180_v22 = vld [vmem:[#allocation2 + $0x3c0] sm:$0xff]  ;;  %v309_v52 = vld [vmem:[#allocation2 + $0x7c8] sm:$0xff]  ;;  %v694_v44 = vld [vmem:[#allocation2 + $0x13d0] sm:$0x33] }
 0x2f4   :  { %13771 = vst [vmem:[#allocation20_spill] sm:$0xff] %v13067_v14  ;;  %v13071_v33 = vadd.f32 %v10098_v2, %v9970_v3  ;;  %v13776_v32 = vld [vmem:[#allocation25_spill] sm:$0xff]  ;;  %v13777_v3 = vld [vmem:[#allocation26_spill] sm:$0xff]  ;;  %v11034_v26 = vcombine.low %v437_v41, %v565_v49  ;;  %v9973_v63 = vmax.f32 %v5657_v59, 0.0 }
 0x2f5   :  { %13772 = vst [vmem:[#allocation21_spill] sm:$0xff] %v13069_v24  ;;  %v5618_v27 = vadd.f32 %v13776_v32, %v12730_v17  ;;  %9532 = vmatpush1.bf16.msra.mxu0 %v10772_v6  ;;  %v5659_v56 = vadd.f32 %v13777_v3, %v12730_v17  ;;  %v10779_v24 = vcombine.high %v181_v48, %v309_v52  ;;  %v695_v41 = vld [vmem:[#allocation2 + $0x13d8] sm:$0x33] }
 0x2f6   :  { %13773 = vst [vmem:[#allocation22_spill] sm:$0xff] %v13071_v33  ;;  %9573 = vmatpush1.bf16.msra.mxu1 %v10774_v40  ;;  %11544 = vmatprep.subr.msk.bf16.mxu0 %vm3910_vm0, %v11289_v45  ;;  %v9971_v40 = vmax.f32 %v5616_v43, 0.0  ;;  %v10777_v33 = vcombine.high %v180_v22, %v308_v42 }
 0x2f7   :  { %11546 = vmatprep.subr.msk.bf16.mxu1 %vm3910_vm0, %v11291_v36  ;;  %v11032_v36 = vcombine.low %v436_v55, %v564_v31  ;;  %v9972_v54 = vmax.f32 %v5618_v27, 0.0  ;;  %v9974_v49 = vmax.f32 %v5659_v56, 0.0  ;;  %v10776_v27 = vcombine.low %v180_v22, %v308_v42  ;;  %v439_v42 = vld [vmem:[#allocation2 + $0xbd8] sm:$0xff] }
 0x2f8   :  { %v8239_v2 = vpop.f32.mrf.mxu0  ;;  %11541 = vmatmul.mubr.msk.bf16.vlgmr.msra.gmra.mxu0 %vm3906_vm1, %v12956_v1  ;;  %v11294_v56 = vcombine.low %v695_v41, %v695_v41 }
 0x2f9   :  { %v8280_v6 = vpop.f32.mrf.mxu1  ;;  %11543 = vmatmul.mubr.msk.bf16.vlgmr.msra.gmra.mxu1 %vm3906_vm1, %v12956_v1  ;;  %v8240_v45 = vadd.f32 %v8239_v2, %v12730_v17  ;;  %9610 = vmatpush1.bf16.msra.mxu0 %v4632_v19  ;;  %v10778_v19 = vcombine.low %v181_v48, %v309_v52  ;;  %v13782_v48 = vld [vmem:[#allocation27_spill] sm:$0xff] }
 0x2fa   :  { %v8281_v23 = vadd.f32 %v8280_v6, %v12730_v17  ;;  %9651 = vmatpush1.bf16.msra.mxu1 %v4638_v37  ;;  %v8241_v32 = vpop.f32.mrf.mxu0  ;;  %9611 = vmatprep.subr.bf16.mxu0 %v11033_v15  ;;  %v11293_v37 = vcombine.high %v694_v44, %v694_v44  ;;  %v5698_v52 = vadd.f32 %v13782_v48, %v12730_v17 }
 0x2fb   :  { %v8282_v3 = vpop.f32.mrf.mxu1  ;;  %9652 = vmatprep.subr.bf16.mxu1 %v11035_v34  ;;  %v10099_v14 = vmax.f32 %v8240_v45, 0.0  ;;  %v8242_v55 = vadd.f32 %v8241_v32, %v12730_v17  ;;  %9631 = vmatprep.mubr.bf16.mxu0 %v13748_v46  ;;  %v11295_v32 = vcombine.high %v695_v41, %v695_v41  ;;  %v183_v41 = vld [vmem:[#allocation2 + $0x3d8] sm:$0xff] }
 0x2fc   :  { %v10101_v16 = vmax.f32 %v8281_v23, 0.0  ;;  %v8283_v31 = vadd.f32 %v8282_v3, %v12730_v17  ;;  %9672 = vmatprep.mubr.bf16.mxu1 %v13748_v46  ;;  %v8243_v43 = vpop.f32.mrf.mxu0  ;;  %v11292_v3 = vcombine.low %v694_v44, %v694_v44  ;;  %v4650_v44 = vsel %vm3910_vm0, %v11294_v56, 0  ;;  %v696_v56 = vld [vmem:[#allocation2 + $0x13e0] sm:$0x33] }
 0x2fd   :  { %v8284_v59 = vpop.f32.mrf.mxu1  ;;  %v13095_v15 = vadd.f32 %v10099_v14, %v9971_v40  ;;  %v10100_v2 = vmax.f32 %v8242_v55, 0.0  ;;  %9612 = vmatpush1.bf16.msra.mxu0 %v11032_v36  ;;  %v438_v43 = vld [vmem:[#allocation2 + $0xbd0] sm:$0xff] }
 0x2fe   :  { %v13097_v34 = vadd.f32 %v10101_v16, %v9973_v63  ;;  %v10102_v6 = vmax.f32 %v8283_v31, 0.0  ;;  %9653 = vmatpush1.bf16.msra.mxu1 %v11034_v26  ;;  %v8244_v45 = vpop.f32.mrf.mxu0  ;;  %9613 = vmatprep.subr.bf16.mxu0 %v10777_v33  ;;  %v566_v14 = vld [vmem:[#allocation2 + $0xfd0] sm:$0xff]  ;;  %v567_v16 = vld [vmem:[#allocation2 + $0xfd8] sm:$0xff]  ;;  %v4644_v26 = vsel %vm3910_vm0, %v11292_v3, 0 }
 0x2ff   :  { %13778 = vst [vmem:[#allocation23_spill] sm:$0xff] %v13095_v15  ;;  %v8285_v23 = vpop.f32.mrf.mxu1  ;;  %9654 = vmatprep.subr.bf16.mxu1 %v10779_v24  ;;  %v13099_v59 = vadd.f32 %v10100_v2, %v9972_v54  ;;  %v13783_v36 = vld [vmem:[#allocation28_spill] sm:$0xff]  ;;  %v13784_v33 = vld [vmem:[#allocation29_spill] sm:$0xff]  ;;  %v11037_v63 = vcombine.high %v438_v43, %v566_v14  ;;  %v11039_v54 = vcombine.high %v439_v42, %v567_v16  ;;  %v13785_v2 = vld [vmem:[#allocation30_spill] sm:$0xff] }
 0x300   :  { %13779 = vst [vmem:[#allocation24_spill] sm:$0xff] %v13097_v34  ;;  %v13101_v22 = vadd.f32 %v10102_v6, %v9974_v49  ;;  %v5739_v40 = vadd.f32 %v13783_v36, %v12730_v17  ;;  %v5700_v24 = vadd.f32 %v13784_v33, %v12730_v17  ;;  %v182_v55 = vld [vmem:[#allocation2 + $0x3d0] sm:$0xff]  ;;  %v311_v49 = vld [vmem:[#allocation2 + $0x7d8] sm:$0xff]  ;;  %v5741_v6 = vadd.f32 %v13785_v2, %v12730_v17 }
 0x301   :  { %13780 = vst [vmem:[#allocation25_spill] sm:$0xff] %v13099_v59  ;;  %9614 = vmatpush1.bf16.msra.mxu0 %v10776_v27  ;;  %v310_v31 = vld [vmem:[#allocation2 + $0x7d0] sm:$0xff]  ;;  %v11038_v3 = vcombine.low %v439_v42, %v567_v16  ;;  %v10783_v59 = vcombine.high %v183_v41, %v311_v49  ;;  %v697_v42 = vld [vmem:[#allocation2 + $0x13e8] sm:$0x33] }
 0x302   :  { %13781 = vst [vmem:[#allocation26_spill] sm:$0xff] %v13101_v22  ;;  %9655 = vmatpush1.bf16.msra.mxu1 %v10778_v19  ;;  %11548 = vmatprep.subr.msk.bf16.mxu0 %vm3910_vm0, %v11293_v37  ;;  %v11036_v19 = vcombine.low %v438_v43, %v566_v14  ;;  %v9975_v37 = vmax.f32 %v5698_v52, 0.0  ;;  %v9977_v48 = vmax.f32 %v5739_v40, 0.0  ;;  %v9976_v36 = vmax.f32 %v5700_v24, 0.0 }
 0x303   :  { %11550 = vmatprep.subr.msk.bf16.mxu1 %vm3910_vm0, %v11295_v32  ;;  %v10781_v22 = vcombine.high %v182_v55, %v310_v31  ;;  %v9978_v16 = vmax.f32 %v5741_v6, 0.0  ;;  %v10780_v24 = vcombine.low %v182_v55, %v310_v31  ;;  %v11298_v6 = vcombine.low %v697_v42, %v697_v42  ;;  %v441_v31 = vld [vmem:[#allocation2 + $0xbe8] sm:$0xff] }
 0x304   :  { %v8321_v45 = vpop.f32.mrf.mxu0  ;;  %11545 = vmatmul.mubr.msk.bf16.vlgmr.msra.gmra.mxu0 %vm3906_vm1, %v12956_v1 }
 0x305   :  { %v8362_v27 = vpop.f32.mrf.mxu1  ;;  %11547 = vmatmul.mubr.msk.bf16.vlgmr.msra.gmra.mxu1 %vm3906_vm1, %v12956_v1  ;;  %v8322_v23 = vadd.f32 %v8321_v45, %v12730_v17  ;;  %9692 = vmatpush1.bf16.msra.mxu0 %v4644_v26  ;;  %v10782_v26 = vcombine.low %v183_v41, %v311_v49  ;;  %v13790_v41 = vld [vmem:[#allocation31_spill] sm:$0xff] }
 0x306   :  { %v8363_v32 = vadd.f32 %v8362_v27, %v12730_v17  ;;  %9733 = vmatpush1.bf16.msra.mxu1 %v4650_v44  ;;  %v8323_v33 = vpop.f32.mrf.mxu0  ;;  %9693 = vmatprep.subr.bf16.mxu0 %v11037_v63  ;;  %v11297_v44 = vcombine.high %v696_v56, %v696_v56  ;;  %v5780_v49 = vadd.f32 %v13790_v41, %v12730_v17 }
 0x307   :  { %v8364_v2 = vpop.f32.mrf.mxu1  ;;  %9734 = vmatprep.subr.bf16.mxu1 %v11039_v54  ;;  %v10103_v34 = vmax.f32 %v8322_v23, 0.0  ;;  %v8324_v43 = vadd.f32 %v8323_v33, %v12730_v17  ;;  %9713 = vmatprep.mubr.bf16.mxu0 %v13748_v46  ;;  %v11299_v33 = vcombine.high %v697_v42, %v697_v42  ;;  %v185_v42 = vld [vmem:[#allocation2 + $0x3e8] sm:$0xff] }
 0x308   :  { %v10105_v15 = vmax.f32 %v8363_v32, 0.0  ;;  %v8365_v14 = vadd.f32 %v8364_v2, %v12730_v17  ;;  %9754 = vmatprep.mubr.bf16.mxu1 %v13748_v46  ;;  %v8325_v52 = vpop.f32.mrf.mxu0  ;;  %v11296_v2 = vcombine.low %v696_v56, %v696_v56  ;;  %v4662_v56 = vsel %vm3910_vm0, %v11298_v6, 0  ;;  %v698_v6 = vld [vmem:[#allocation2 + $0x13f0] sm:$0x33] }
 0x309   :  { %v8366_v40 = vpop.f32.mrf.mxu1  ;;  %v13125_v63 = vadd.f32 %v10103_v34, %v9975_v37  ;;  %v10104_v45 = vmax.f32 %v8324_v43, 0.0  ;;  %9694 = vmatpush1.bf16.msra.mxu0 %v11036_v19  ;;  %v440_v52 = vld [vmem:[#allocation2 + $0xbe0] sm:$0xff]  ;;  %v13791_v19 = vld [vmem:[#allocation32_spill] sm:$0xff] }
 0x30a   :  { %v13127_v54 = vadd.f32 %v10105_v15, %v9977_v48  ;;  %v10106_v27 = vmax.f32 %v8365_v14, 0.0  ;;  %9735 = vmatpush1.bf16.msra.mxu1 %v11038_v3  ;;  %v8326_v23 = vpop.f32.mrf.mxu0  ;;  %9695 = vmatprep.subr.bf16.mxu0 %v10781_v22  ;;  %v568_v34 = vld [vmem:[#allocation2 + $0xfe0] sm:$0xff]  ;;  %v569_v15 = vld [vmem:[#allocation2 + $0xfe8] sm:$0xff]  ;;  %v5821_v37 = vadd.f32 %v13791_v19, %v12730_v17  ;;  %v4656_v3 = vsel %vm3910_vm0, %v11296_v2, 0 }
 0x30b   :  { %13786 = vst [vmem:[#allocation27_spill] sm:$0xff] %v13125_v63  ;;  %v8367_v32 = vpop.f32.mrf.mxu1  ;;  %9736 = vmatprep.subr.bf16.mxu1 %v10783_v59  ;;  %v13129_v40 = vadd.f32 %v10104_v45, %v9976_v36  ;;  %v13792_v22 = vld [vmem:[#allocation33_spill] sm:$0xff]  ;;  %v11041_v48 = vcombine.high %v440_v52, %v568_v34  ;;  %v11043_v36 = vcombine.high %v441_v31, %v569_v15  ;;  %v13793_v45 = vld [vmem:[#allocation34_spill] sm:$0xff] }
 0x30c   :  { %13787 = vst [vmem:[#allocation28_spill] sm:$0xff] %v13127_v54  ;;  %v13131_v55 = vadd.f32 %v10106_v27, %v9978_v16  ;;  %v5782_v59 = vadd.f32 %v13792_v22, %v12730_v17  ;;  %v184_v43 = vld [vmem:[#allocation2 + $0x3e0] sm:$0xff]  ;;  %v313_v16 = vld [vmem:[#allocation2 + $0x7e8] sm:$0xff]  ;;  %v5823_v27 = vadd.f32 %v13793_v45, %v12730_v17  ;;  %v11042_v2 = vcombine.low %v441_v31, %v569_v15  ;;  %v699_v31 = vld [vmem:[#allocation2 + $0x13f8] sm:$0x33] }
 0x30d   :  { %13788 = vst [vmem:[#allocation29_spill] sm:$0xff] %v13129_v40  ;;  %9696 = vmatpush1.bf16.msra.mxu0 %v10780_v24  ;;  %v312_v14 = vld [vmem:[#allocation2 + $0x7e0] sm:$0xff]  ;;  %v9981_v41 = vmax.f32 %v5821_v37, 0.0  ;;  %v10787_v40 = vcombine.high %v185_v42, %v313_v16 }
 0x30e   :  { %13789 = vst [vmem:[#allocation30_spill] sm:$0xff] %v13131_v55  ;;  %9737 = vmatpush1.bf16.msra.mxu1 %v10782_v26  ;;  %11552 = vmatprep.subr.msk.bf16.mxu0 %vm3910_vm0, %v11297_v44  ;;  %v11040_v26 = vcombine.low %v440_v52, %v568_v34  ;;  %v9979_v44 = vmax.f32 %v5780_v49, 0.0  ;;  %v9980_v19 = vmax.f32 %v5782_v59, 0.0  ;;  %v10785_v55 = vcombine.high %v184_v43, %v312_v14 }
 0x30f   :  { %11554 = vmatprep.subr.msk.bf16.mxu1 %vm3910_vm0, %v11299_v33  ;;  %v9982_v15 = vmax.f32 %v5823_v27, 0.0  ;;  %v10784_v59 = vcombine.low %v184_v43, %v312_v14  ;;  %v11302_v27 = vcombine.low %v699_v31, %v699_v31  ;;  %v443_v14 = vld [vmem:[#allocation2 + $0xbf8] sm:$0xff] }
 0x310   :  { %v8403_v23 = vpop.f32.mrf.mxu0  ;;  %11549 = vmatmul.mubr.msk.bf16.vlgmr.msra.gmra.mxu0 %vm3906_vm1, %v12956_v1 }
 0x311   :  { %v8444_v24 = vpop.f32.mrf.mxu1  ;;  %11551 = vmatmul.mubr.msk.bf16.vlgmr.msra.gmra.mxu1 %vm3906_vm1, %v12956_v1  ;;  %v8404_v32 = vadd.f32 %v8403_v23, %v12730_v17  ;;  %9774 = vmatpush1.bf16.msra.mxu0 %v4656_v3  ;;  %v10786_v3 = vcombine.low %v185_v42, %v313_v16  ;;  %v13796_v42 = vld [vmem:[#allocation35_spill] sm:$0xff] }
 0x312   :  { %v8445_v33 = vadd.f32 %v8444_v24, %v12730_v17  ;;  %9815 = vmatpush1.bf16.msra.mxu1 %v4662_v56  ;;  %v8405_v22 = vpop.f32.mrf.mxu0  ;;  %9775 = vmatprep.subr.bf16.mxu0 %v11041_v48  ;;  %v11301_v56 = vcombine.high %v698_v6, %v698_v6  ;;  %v5862_v16 = vadd.f32 %v13796_v42, %v12730_v17 }
 0x313   :  { %v8446_v45 = vpop.f32.mrf.mxu1  ;;  %9816 = vmatprep.subr.bf16.mxu1 %v11043_v36  ;;  %v10107_v54 = vmax.f32 %v8404_v32, 0.0  ;;  %v8406_v52 = vadd.f32 %v8405_v22, %v12730_v17  ;;  %9795 = vmatprep.mubr.bf16.mxu0 %v13748_v46  ;;  %v11303_v22 = vcombine.high %v699_v31, %v699_v31  ;;  %v13798_v31 = vld [vmem:[#allocation37_spill] sm:$0xff] }
 0x314   :  { %v10109_v63 = vmax.f32 %v8445_v33, 0.0  ;;  %v8447_v34 = vadd.f32 %v8446_v45, %v12730_v17  ;;  %9836 = vmatprep.mubr.bf16.mxu1 %v13748_v46  ;;  %v8407_v49 = vpop.f32.mrf.mxu0  ;;  %v11300_v45 = vcombine.low %v698_v6, %v698_v6 }
 0x315   :  { %v8448_v37 = vpop.f32.mrf.mxu1  ;;  %v13155_v48 = vadd.f32 %v10107_v54, %v9979_v44  ;;  %v10108_v23 = vmax.f32 %v8406_v52, 0.0  ;;  %9776 = vmatpush1.bf16.msra.mxu0 %v11040_v26  ;;  %v442_v49 = vld [vmem:[#allocation2 + $0xbf0] sm:$0xff]  ;;  %v187_v52 = vld [vmem:[#allocation2 + $0x3f8] sm:$0xff] }
 0x316   :  { %v13157_v36 = vadd.f32 %v10109_v63, %v9981_v41  ;;  %v10110_v24 = vmax.f32 %v8447_v34, 0.0  ;;  %9817 = vmatpush1.bf16.msra.mxu1 %v11042_v2  ;;  %v8408_v32 = vpop.f32.mrf.mxu0  ;;  %9777 = vmatprep.subr.bf16.mxu0 %v10785_v55  ;;  %v570_v54 = vld [vmem:[#allocation2 + $0xff0] sm:$0xff]  ;;  %v571_v63 = vld [vmem:[#allocation2 + $0xff8] sm:$0xff]  ;;  %v4674_v55 = vsel %vm3910_vm0, %v11302_v27, 0 }
 0x317   :  { %v8449_v33 = vpop.f32.mrf.mxu1  ;;  %9818 = vmatprep.subr.bf16.mxu1 %v10787_v40  ;;  %v13159_v37 = vadd.f32 %v10108_v23, %v9980_v19  ;;  %v13797_v26 = vld [vmem:[#allocation36_spill] sm:$0xff]  ;;  %v4668_v40 = vsel %vm3910_vm0, %v11300_v45, 0  ;;  %v11045_v2 = vcombine.high %v442_v49, %v570_v54  ;;  %v11047_v6 = vcombine.high %v443_v14, %v571_v63 }
 0x318   :  { %v13161_v43 = vadd.f32 %v10110_v24, %v9982_v15  ;;  %v5903_v44 = vadd.f32 %v13797_v26, %v12730_v17  ;;  %v186_v41 = vld [vmem:[#allocation2 + $0x3f0] sm:$0xff]  ;;  %v315_v34 = vld [vmem:[#allocation2 + $0x7f8] sm:$0xff]  ;;  %v5864_v15 = vadd.f32 %v13798_v31, %v12730_v17  ;;  %v11044_v24 = vcombine.low %v442_v49, %v570_v54 }
 0x319   :  { %13794 = vst [vmem:[#allocation31_spill] sm:$0xff] %v13159_v37  ;;  %9778 = vmatpush1.bf16.msra.mxu0 %v10784_v59  ;;  %v314_v19 = vld [vmem:[#allocation2 + $0x7f0] sm:$0xff]  ;;  %v13799_v59 = vld [vmem:[#allocation38_spill] sm:$0xff]  ;;  %v9983_v45 = vmax.f32 %v5862_v16, 0.0 }
 0x31a   :  { %13795 = vst [vmem:[#allocation32_spill] sm:$0xff] %v13161_v43  ;;  %9819 = vmatpush1.bf16.msra.mxu1 %v10786_v3  ;;  %11556 = vmatprep.subr.msk.bf16.mxu0 %vm3910_vm0, %v11301_v56  ;;  %v5905_v3 = vadd.f32 %v13799_v59, %v12730_v17  ;;  %v9985_v27 = vmax.f32 %v5903_v44, 0.0  ;;  %v10789_v31 = vcombine.high %v186_v41, %v314_v19  ;;  %v9984_v54 = vmax.f32 %v5864_v15, 0.0  ;;  %v13803_v15 = vld [vmem:[#allocation42_spill] sm:$0xff] }
 0x31b   :  { %11558 = vmatprep.subr.msk.bf16.mxu1 %vm3910_vm0, %v11303_v22  ;;  %v11046_v22 = vcombine.low %v443_v14, %v571_v63  ;;  %v10791_v59 = vcombine.high %v187_v52, %v315_v34  ;;  %v10788_v44 = vcombine.low %v186_v41, %v314_v19  ;;  %v13800_v41 = vld [vmem:[#allocation39_spill] sm:$0xff] }
 0x31c   :  { %v8485_v23 = vpop.f32.mrf.mxu0  ;;  %11553 = vmatmul.mubr.msk.bf16.vlgmr.msra.gmra.mxu0 %vm3906_vm1, %v12956_v1  ;;  %v9986_v14 = vmax.f32 %v5905_v3, 0.0  ;;  %v5987_v3 = vadd.f32 %v13803_v15, %v12730_v17  ;;  %v13806_v15 = vld [vmem:[#allocation43_spill] sm:$0xff] }
 0x31d   :  { %v8526_v56 = vpop.f32.mrf.mxu1  ;;  %11555 = vmatmul.mubr.msk.bf16.vlgmr.msra.gmra.mxu1 %vm3906_vm1, %v12956_v1  ;;  %v8486_v32 = vadd.f32 %v8485_v23, %v12730_v17  ;;  %9856 = vmatpush1.bf16.msra.mxu0 %v4668_v40  ;;  %v10790_v40 = vcombine.low %v187_v52, %v315_v34  ;;  %v13802_v52 = vld [vmem:[#allocation41_spill] sm:$0xff] }
 0x31e   :  { %v8527_v33 = vadd.f32 %v8526_v56, %v12730_v17  ;;  %9897 = vmatpush1.bf16.msra.mxu1 %v4674_v55  ;;  %v8487_v42 = vpop.f32.mrf.mxu0  ;;  %9857 = vmatprep.subr.bf16.mxu0 %v11045_v2  ;;  %v5946_v34 = vadd.f32 %v13802_v52, %v12730_v17 }
 0x31f   :  { %v8528_v26 = vpop.f32.mrf.mxu1  ;;  %9898 = vmatprep.subr.bf16.mxu1 %v11047_v6  ;;  %v10111_v43 = vmax.f32 %v8486_v32, 0.0  ;;  %v8488_v1 = vadd.f32 %v8487_v42, %v12730_v17  ;;  %9877 = vmatprep.mubr.bf16.mxu0 %v13748_v46 }
 0x320   :  { %v10113_v37 = vmax.f32 %v8527_v33, 0.0  ;;  %v8529_v49 = vadd.f32 %v8528_v26, %v12730_v17  ;;  %9918 = vmatprep.mubr.bf16.mxu1 %v13748_v46  ;;  %v8489_v63 = vpop.f32.mrf.mxu0 }
 0x321   :  { %v8530_v16 = vpop.f32.mrf.mxu1  ;;  %v13185_v55 = vadd.f32 %v10111_v43, %v9983_v45  ;;  %v10112_v6 = vmax.f32 %v8488_v1, 0.0  ;;  %9858 = vmatpush1.bf16.msra.mxu0 %v11044_v24  ;;  %v5944_v43 = vadd.f32 %v13800_v41, %v12730_v17  ;;  %v11839_v45 = vld [vmem:[#allocation5] sm:$0xf] }
 0x322   :  { %v13187_v2 = vadd.f32 %v10113_v37, %v9985_v27  ;;  %v10114_v23 = vmax.f32 %v8529_v49, 0.0  ;;  %9899 = vmatpush1.bf16.msra.mxu1 %v11046_v22  ;;  %v8490_v56 = vpop.f32.mrf.mxu0  ;;  %9859 = vmatprep.subr.bf16.mxu0 %v10789_v31  ;;  %v13801_v37 = vld [vmem:[#allocation40_spill] sm:$0xff]  ;;  %v9988_v16 = vmax.f32 %v5946_v34, 0.0 }
 0x323   :  { %v8531_v32 = vpop.f32.mrf.mxu1  ;;  %9900 = vmatprep.subr.bf16.mxu1 %v10791_v59  ;;  %v13189_v33 = vadd.f32 %v10112_v6, %v9984_v54  ;;  %v5985_v19 = vadd.f32 %v13801_v37, %v12730_v17  ;;  %v9987_v26 = vmax.f32 %v5944_v43, 0.0  ;;  %v13807_v34 = vld [vmem:[#allocation44_spill] sm:$0xff] }
 0x324   :  { %v13191_v46 = vadd.f32 %v10114_v23, %v9986_v14 }
 0x325   :  { %9860 = vmatpush1.bf16.msra.mxu0 %v10788_v44  ;;  %v9989_v31 = vmax.f32 %v5985_v19, 0.0  ;;  %v9990_v44 = vmax.f32 %v5987_v3, 0.0  ;;  %v6067_v3 = vadd.f32 %v13807_v34, %v12730_v17 }
 0x326   :  { %9901 = vmatpush1.bf16.msra.mxu1 %v10790_v40 }
 0x328   :  { %v8567_v24 = vpop.f32.mrf.mxu0  ;;  %11557 = vmatmul.mubr.msk.bf16.vlgmr.msra.gmra.mxu0 %vm3906_vm1, %v11839_v45 }
 0x329   :  { %v8608_v22 = vpop.f32.mrf.mxu1  ;;  %11559 = vmatmul.mubr.msk.bf16.vlgmr.msra.gmra.mxu1 %vm3906_vm1, %v11839_v45  ;;  %v8568_v27 = vadd.f32 %v8567_v24, %v12730_v17  ;;  %v6026_v24 = vadd.f32 %v13806_v15, %v12730_v17 }
 0x32a   :  { %v8609_v42 = vadd.f32 %v8608_v22, %v12730_v17  ;;  %v8569_v59 = vpop.f32.mrf.mxu0  ;;  %v13808_v22 = vld [vmem:[#allocation45_spill] sm:$0xff] }
 0x32b   :  { %v8610_v1 = vpop.f32.mrf.mxu1  ;;  %v10115_v49 = vmax.f32 %v8568_v27, 0.0  ;;  %v8570_v14 = vadd.f32 %v8569_v59, %v12730_v17  ;;  %v6028_v45 = vadd.f32 %v13808_v22, %v12730_v17  ;;  %v13809_v27 = vld [vmem:[#allocation46_spill] sm:$0xff] }
 0x32c   :  { %v10117_v54 = vmax.f32 %v8609_v42, 0.0  ;;  %v8611_v63 = vadd.f32 %v8610_v1, %v12730_v17  ;;  %v8571_v40 = vpop.f32.mrf.mxu0  ;;  %v6069_v42 = vadd.f32 %v13809_v27, %v12730_v17 }
 0x32d   :  { %v8612_v6 = vpop.f32.mrf.mxu1  ;;  %v13207_v23 = vadd.f32 %v10115_v49, %v9987_v26  ;;  %v10116_v32 = vmax.f32 %v8570_v14, 0.0  ;;  %v9991_v49 = vmax.f32 %v6026_v24, 0.0 }
 0x32e   :  { %v13209_v56 = vadd.f32 %v10117_v54, %v9989_v31  ;;  %v10118_v41 = vmax.f32 %v8611_v63, 0.0  ;;  %v8572_v43 = vpop.f32.mrf.mxu0  ;;  %v9993_v54 = vmax.f32 %v6067_v3, 0.0 }
 0x32f   :  { %v8613_v37 = vpop.f32.mrf.mxu1  ;;  %v13211_v19 = vadd.f32 %v10116_v32, %v9988_v16  ;;  %v9992_v32 = vmax.f32 %v6028_v45, 0.0 }
 0x330   :  { %v13213_v52 = vadd.f32 %v10118_v41, %v9990_v44  ;;  %v9994_v41 = vmax.f32 %v6069_v42, 0.0  ;;  %v13810_v42 = vld [vmem:[#allocation47_spill] sm:$0xff] }
 0x331   :  { %13804 = vst [vmem:[#allocation33_spill] sm:$0xff] %v13211_v19 }
 0x332   :  { %13805 = vst [vmem:[#allocation34_spill] sm:$0xff] %v13213_v52 }
 0x334   :  { %v8649_v26 = vpop.f32.mrf.mxu0 }
 0x335   :  { %v8690_v31 = vpop.f32.mrf.mxu1  ;;  %v8650_v59 = vadd.f32 %v8649_v26, %v12730_v17 }
 0x336   :  { %v8691_v1 = vadd.f32 %v8690_v31, %v12730_v17  ;;  %v8651_v14 = vpop.f32.mrf.mxu0 }
 0x337   :  { %v8692_v63 = vpop.f32.mrf.mxu1  ;;  %v10119_v16 = vmax.f32 %v8650_v59, 0.0  ;;  %v8652_v40 = vadd.f32 %v8651_v14, %v12730_v17 }
 0x338   :  { %v10121_v44 = vmax.f32 %v8691_v1, 0.0  ;;  %v8693_v6 = vadd.f32 %v8692_v63, %v12730_v17  ;;  %v8653_v43 = vpop.f32.mrf.mxu0 }
 0x339   :  { %v8694_v37 = vpop.f32.mrf.mxu1  ;;  %v10247_v15 = vadd.f32 %v10119_v16, %v9991_v49  ;;  %v10120_v22 = vmax.f32 %v8652_v40, 0.0  ;;  %v6108_v49 = vadd.f32 %v13810_v42, %v12730_v17 }
 0x33a   :  { %v10249_v34 = vadd.f32 %v10121_v44, %v9993_v54  ;;  %v10122_v27 = vmax.f32 %v8693_v6, 0.0  ;;  %v8654_v26 = vpop.f32.mrf.mxu0  ;;  %v13811_v54 = vld [vmem:[#allocation48_spill] sm:$0xff] }
 0x33b   :  { %v8695_v31 = vpop.f32.mrf.mxu1  ;;  %v13228_v24 = vadd.f32 %v10247_v15, %v12757_v60  ;;  %v10248_v59 = vadd.f32 %v10120_v22, %v9992_v32  ;;  %v6149_v63 = vadd.f32 %v13811_v54, %v12730_v17  ;;  %v13812_v60 = vld [vmem:[#allocation49_spill] sm:$0xff] }
 0x33c   :  { %v13231_v3 = vadd.f32 %v10249_v34, %v12759_v9  ;;  %v10250_v1 = vadd.f32 %v10122_v27, %v9994_v41  ;;  %v6110_v16 = vadd.f32 %v13812_v60, %v12730_v17  ;;  %v13813_v9 = vld [vmem:[#allocation50_spill] sm:$0xff] }
 0x33d   :  { %v13234_v14 = vadd.f32 %v10248_v59, %v12761_v28  ;;  %v6151_v44 = vadd.f32 %v13813_v9, %v12730_v17  ;;  %v9997_v41 = vmax.f32 %v6149_v63, 0.0 }
 0x33e   :  { %v13237_v45 = vadd.f32 %v10250_v1, %v12763_v61  ;;  %v9995_v61 = vmax.f32 %v6108_v49, 0.0  ;;  %v9996_v26 = vmax.f32 %v6110_v16, 0.0 }
 0x33f   :  { %v9998_v31 = vmax.f32 %v6151_v44, 0.0  ;;  %v13814_v44 = vld [vmem:[#allocation51_spill] sm:$0xff] }
 0x340   :  { %v8731_v40 = vpop.f32.mrf.mxu0 }
 0x341   :  { %v8772_v6 = vpop.f32.mrf.mxu1  ;;  %v8732_v28 = vadd.f32 %v8731_v40, %v12730_v17 }
 0x342   :  { %v8773_v32 = vadd.f32 %v8772_v6, %v12730_v17  ;;  %v8733_v43 = vpop.f32.mrf.mxu0 }
 0x343   :  { %v8774_v37 = vpop.f32.mrf.mxu1  ;;  %v10123_v15 = vmax.f32 %v8732_v28, 0.0  ;;  %v8734_v22 = vadd.f32 %v8733_v43, %v12730_v17 }
 0x344   :  { %v10125_v34 = vmax.f32 %v8773_v32, 0.0  ;;  %v8775_v27 = vadd.f32 %v8774_v37, %v12730_v17  ;;  %v8735_v59 = vpop.f32.mrf.mxu0 }
 0x345   :  { %v8776_v1 = vpop.f32.mrf.mxu1  ;;  %v10251_v42 = vadd.f32 %v10123_v15, %v9995_v61  ;;  %v10124_v60 = vmax.f32 %v8734_v22, 0.0  ;;  %v6190_v61 = vadd.f32 %v13814_v44, %v12730_v17 }
 0x346   :  { %v10253_v54 = vadd.f32 %v10125_v34, %v9997_v41  ;;  %v10126_v9 = vmax.f32 %v8775_v27, 0.0  ;;  %v8736_v40 = vpop.f32.mrf.mxu0  ;;  %v13815_v41 = vld [vmem:[#allocation52_spill] sm:$0xff] }
 0x347   :  { %v8777_v6 = vpop.f32.mrf.mxu1  ;;  %v13252_v49 = vadd.f32 %v10251_v42, %v12787_v11  ;;  %v10252_v28 = vadd.f32 %v10124_v60, %v9996_v26  ;;  %v6231_v37 = vadd.f32 %v13815_v41, %v12730_v17  ;;  %v13816_v11 = vld [vmem:[#allocation53_spill] sm:$0xff] }
 0x348   :  { %v13255_v63 = vadd.f32 %v10253_v54, %v12789_v12  ;;  %v10254_v32 = vadd.f32 %v10126_v9, %v9998_v31  ;;  %v6192_v15 = vadd.f32 %v13816_v11, %v12730_v17  ;;  %v13817_v12 = vld [vmem:[#allocation54_spill] sm:$0xff] }
 0x349   :  { %v13258_v43 = vadd.f32 %v10252_v28, %v12791_v58  ;;  %v6233_v34 = vadd.f32 %v13817_v12, %v12730_v17  ;;  %v10001_v31 = vmax.f32 %v6231_v37, 0.0 }
 0x34a   :  { %v13261_v16 = vadd.f32 %v10254_v32, %v12793_v62  ;;  %v9999_v62 = vmax.f32 %v6190_v61, 0.0  ;;  %v10000_v40 = vmax.f32 %v6192_v15, 0.0 }
 0x34b   :  { %v10002_v6 = vmax.f32 %v6233_v34, 0.0  ;;  %v13818_v34 = vld [vmem:[#allocation55_spill] sm:$0xff] }
 0x34c   :  { %v8813_v22 = vpop.f32.mrf.mxu0 }
 0x34d   :  { %v8854_v27 = vpop.f32.mrf.mxu1  ;;  %v8814_v58 = vadd.f32 %v8813_v22, %v12730_v17 }
 0x34e   :  { %v8855_v26 = vadd.f32 %v8854_v27, %v12730_v17  ;;  %v8815_v59 = vpop.f32.mrf.mxu0 }
 0x34f   :  { %v8856_v1 = vpop.f32.mrf.mxu1  ;;  %v10127_v42 = vmax.f32 %v8814_v58, 0.0  ;;  %v8816_v60 = vadd.f32 %v8815_v59, %v12730_v17 }
 0x350   :  { %v10129_v54 = vmax.f32 %v8855_v26, 0.0  ;;  %v8857_v9 = vadd.f32 %v8856_v1, %v12730_v17  ;;  %v8817_v28 = vpop.f32.mrf.mxu0 }
 0x351   :  { %v8858_v32 = vpop.f32.mrf.mxu1  ;;  %v10255_v44 = vadd.f32 %v10127_v42, %v9999_v62  ;;  %v10128_v11 = vmax.f32 %v8816_v60, 0.0  ;;  %v6272_v62 = vadd.f32 %v13818_v34, %v12730_v17 }
 0x352   :  { %v10257_v41 = vadd.f32 %v10129_v54, %v10001_v31  ;;  %v10130_v12 = vmax.f32 %v8857_v9, 0.0  ;;  %v8818_v22 = vpop.f32.mrf.mxu0  ;;  %v13819_v31 = vld [vmem:[#allocation56_spill] sm:$0xff] }
 0x353   :  { %v8859_v27 = vpop.f32.mrf.mxu1  ;;  %v13276_v61 = vadd.f32 %v10255_v44, %v12817_v35  ;;  %v10256_v58 = vadd.f32 %v10128_v11, %v10000_v40  ;;  %v6313_v1 = vadd.f32 %v13819_v31, %v12730_v17  ;;  %v13820_v35 = vld [vmem:[#allocation57_spill] sm:$0xff] }
 0x354   :  { %v13279_v37 = vadd.f32 %v10257_v41, %v12819_v13  ;;  %v10258_v26 = vadd.f32 %v10130_v12, %v10002_v6  ;;  %v6274_v42 = vadd.f32 %v13820_v35, %v12730_v17  ;;  %v13821_v13 = vld [vmem:[#allocation58_spill] sm:$0xff] }
 0x355   :  { %v13282_v59 = vadd.f32 %v10256_v58, %v12821_v47  ;;  %v6315_v54 = vadd.f32 %v13821_v13, %v12730_v17  ;;  %v10005_v6 = vmax.f32 %v6313_v1, 0.0 }
 0x356   :  { %v13285_v15 = vadd.f32 %v10258_v26, %v12823_v21  ;;  %v10003_v21 = vmax.f32 %v6272_v62, 0.0  ;;  %v10004_v22 = vmax.f32 %v6274_v42, 0.0 }
 0x357   :  { %v10006_v27 = vmax.f32 %v6315_v54, 0.0  ;;  %v13822_v54 = vld [vmem:[#allocation59_spill] sm:$0xff] }
 0x358   :  { %v8895_v60 = vpop.f32.mrf.mxu0 }
 0x359   :  { %v8936_v9 = vpop.f32.mrf.mxu1  ;;  %v8896_v47 = vadd.f32 %v8895_v60, %v12730_v17 }
 0x35a   :  { %v8937_v40 = vadd.f32 %v8936_v9, %v12730_v17  ;;  %v8897_v28 = vpop.f32.mrf.mxu0 }
 0x35b   :  { %v8938_v32 = vpop.f32.mrf.mxu1  ;;  %v10131_v44 = vmax.f32 %v8896_v47, 0.0  ;;  %v8898_v11 = vadd.f32 %v8897_v28, %v12730_v17 }
 0x35c   :  { %v10133_v41 = vmax.f32 %v8937_v40, 0.0  ;;  %v8939_v12 = vadd.f32 %v8938_v32, %v12730_v17  ;;  %v8899_v58 = vpop.f32.mrf.mxu0 }
 0x35d   :  { %v8940_v26 = vpop.f32.mrf.mxu1  ;;  %v10259_v34 = vadd.f32 %v10131_v44, %v10003_v21  ;;  %v10132_v35 = vmax.f32 %v8898_v11, 0.0  ;;  %v6354_v21 = vadd.f32 %v13822_v54, %v12730_v17 }
 0x35e   :  { %v10261_v31 = vadd.f32 %v10133_v41, %v10005_v6  ;;  %v10134_v13 = vmax.f32 %v8939_v12, 0.0  ;;  %v8900_v60 = vpop.f32.mrf.mxu0  ;;  %v13823_v6 = vld [vmem:[#allocation60_spill] sm:$0xff]  ;;  %v13825_v41 = vld [vmem:[#allocation61_spill] sm:$0xff] }
 0x35f   :  { %v8941_v9 = vpop.f32.mrf.mxu1  ;;  %v13300_v62 = vadd.f32 %v10259_v34, %v12847_v5  ;;  %v10260_v47 = vadd.f32 %v10132_v35, %v10004_v22  ;;  %v6395_v32 = vadd.f32 %v13823_v6, %v12730_v17  ;;  %v7668_v5 = vadd.f32 %v12871_v30, %v12730_v17 }
 0x360   :  { %v13303_v1 = vadd.f32 %v10261_v31, %v12849_v0  ;;  %v10262_v40 = vadd.f32 %v10134_v13, %v10006_v27  ;;  %v13824_v0 = vld [vmem:[#allocation12_spill] sm:$0xff]  ;;  %v6356_v11 = vadd.f32 %v13825_v41, %v12730_v17  ;;  %v10007_v26 = vmax.f32 %v6354_v21, 0.0 }
 0x361   :  { %v13306_v28 = vadd.f32 %v10260_v47, %v12851_v39  ;;  %v5044_v44 = vadd.f32 %v13824_v0, %v12730_v17  ;;  %v13826_v39 = vld [vmem:[#allocation62_spill] sm:$0xff]  ;;  %v10009_v34 = vmax.f32 %v6395_v32, 0.0  ;;  %v10072_v31 = vmax.f32 %v7668_v5, 0.0 }
 0x362   :  { %v13309_v42 = vadd.f32 %v10262_v40, %v12853_v10  ;;  %v6397_v12 = vadd.f32 %v13826_v39, %v12730_v17  ;;  %v10008_v54 = vmax.f32 %v6356_v11, 0.0  ;;  %v13827_v11 = vld [vmem:[#allocation107_spill] sm:$0xff] }
 0x363   :  { %v9944_v40 = vmax.f32 %v5044_v44, 0.0 }
 0x364   :  { %v8977_v10 = vpop.f32.mrf.mxu0  ;;  %v10010_v6 = vmax.f32 %v6397_v12, 0.0 }
 0x365   :  { %v9018_v22 = vpop.f32.mrf.mxu1  ;;  %v8978_v27 = vadd.f32 %v8977_v10, %v12730_v17  ;;  %v10200_v21 = vadd.f32 %v10072_v31, %v9944_v40  ;;  %v13829_v31 = vld [vmem:[#allocation64_spill] sm:$0xff] }
 0x366   :  { %v9019_v58 = vadd.f32 %v9018_v22, %v12730_v17  ;;  %v8979_v35 = vpop.f32.mrf.mxu0 }
 0x367   :  { %v9020_v30 = vpop.f32.mrf.mxu1  ;;  %v10135_v13 = vmax.f32 %v8978_v27, 0.0  ;;  %v8980_v9 = vadd.f32 %v8979_v35, %v12730_v17 }
 0x368   :  { %v10137_v60 = vmax.f32 %v9019_v58, 0.0  ;;  %v9021_v47 = vadd.f32 %v9020_v30, %v12730_v17  ;;  %v8981_v0 = vpop.f32.mrf.mxu0  ;;  %v6477_v30 = vadd.f32 %v13829_v31, %v12730_v17 }
 0x369   :  { %v9022_v41 = vpop.f32.mrf.mxu1  ;;  %v10263_v39 = vadd.f32 %v10135_v13, %v10007_v26  ;;  %v10136_v52 = vmax.f32 %v8980_v9, 0.0  ;;  %v13828_v26 = vld [vmem:[#allocation63_spill] sm:$0xff]  ;;  %v13830_v13 = vld [vmem:[#allocation65_spill] sm:$0xff] }
 0x36a   :  { %v10265_v10 = vadd.f32 %v10137_v60, %v10009_v34  ;;  %v10138_v22 = vmax.f32 %v9021_v47, 0.0  ;;  %v8982_v32 = vpop.f32.mrf.mxu0  ;;  %v6436_v34 = vadd.f32 %v13828_v26, %v12730_v17  ;;  %v13831_v60 = vld [vmem:[#allocation66_spill] sm:$0xff] }
 0x36b   :  { %v9023_v5 = vpop.f32.mrf.mxu1  ;;  %v13328_v19 = vadd.f32 %v10263_v39, %v12876_v29  ;;  %v10264_v58 = vadd.f32 %v10136_v52, %v10008_v54  ;;  %v6438_v29 = vadd.f32 %v13830_v13, %v12730_v17 }
 0x36c   :  { %v13331_v27 = vadd.f32 %v10265_v10, %v12878_v38  ;;  %v10266_v35 = vadd.f32 %v10138_v22, %v10010_v6  ;;  %v6479_v38 = vadd.f32 %v13831_v60, %v12730_v17  ;;  %v10011_v54 = vmax.f32 %v6436_v34, 0.0 }
 0x36d   :  { %v13333_v44 = vadd.f32 %v10264_v58, %v10200_v21  ;;  %v10013_v6 = vmax.f32 %v6477_v30, 0.0  ;;  %v10012_v32 = vmax.f32 %v6438_v29, 0.0 }
 0x36e   :  { %v13336_v12 = vadd.f32 %v10266_v35, %v13827_v11  ;;  %v10014_v5 = vmax.f32 %v6479_v38, 0.0  ;;  %v11932_v38 = vmov 0.0  }
 0x36f   :  { %11563 = vmatprep.subr.mxu0 %v11932_v38  ;;  %11565 = vmatprep.mubr.msk.f32.mxu0 %vm11933_vm2, %v11932_v38  ;;  %v13837_v38 = vld [vmem:[#allocation72_spill] sm:$0xff] }
 0x370   :  { %v9059_v9 = vpop.f32.mrf.mxu0 }
 0x371   :  { %v9100_v52 = vpop.f32.mrf.mxu1  ;;  %v9060_v47 = vadd.f32 %v9059_v9, %v12730_v17 }
 0x372   :  { %v9101_v40 = vadd.f32 %v9100_v52, %v12730_v17  ;;  %v9061_v0 = vpop.f32.mrf.mxu0 }
 0x373   :  { %v9102_v41 = vpop.f32.mrf.mxu1  ;;  %v10139_v39 = vmax.f32 %v9060_v47, 0.0  ;;  %v9062_v22 = vadd.f32 %v9061_v0, %v12730_v17  ;;  %v13833_v0 = vld [vmem:[#allocation68_spill] sm:$0xff] }
 0x374   :  { %v10141_v10 = vmax.f32 %v9101_v40, 0.0  ;;  %v9103_v21 = vadd.f32 %v9102_v41, %v12730_v17  ;;  %v9063_v58 = vpop.f32.mrf.mxu0  ;;  %v13834_v41 = vld [vmem:[#allocation69_spill] sm:$0xff] }
 0x375   :  { %v9104_v35 = vpop.f32.mrf.mxu1  ;;  %v10267_v11 = vadd.f32 %v10139_v39, %v10011_v54  ;;  %v10140_v31 = vmax.f32 %v9062_v22, 0.0  ;;  %v13832_v54 = vld [vmem:[#allocation67_spill] sm:$0xff]  ;;  %v13835_v39 = vld [vmem:[#allocation70_spill] sm:$0xff] }
 0x376   :  { %v10269_v26 = vadd.f32 %v10141_v10, %v10013_v6  ;;  %v10142_v13 = vmax.f32 %v9103_v21, 0.0  ;;  %v9064_v60 = vpop.f32.mrf.mxu0  ;;  %v6518_v6 = vadd.f32 %v13832_v54, %v12730_v17  ;;  %v6561_v10 = vadd.f32 %v13835_v39, %v12730_v17 }
 0x377   :  { %v9105_v9 = vpop.f32.mrf.mxu1  ;;  %v13351_v34 = vadd.f32 %v10267_v11, %v12904_v7  ;;  %v10268_v52 = vadd.f32 %v10140_v31, %v10012_v32  ;;  %v6559_v7 = vadd.f32 %v13833_v0, %v12730_v17 }
 0x378   :  { %v13354_v30 = vadd.f32 %v10269_v26, %v12906_v20  ;;  %v10270_v47 = vadd.f32 %v10142_v13, %v10014_v5  ;;  %v6520_v20 = vadd.f32 %v13834_v41, %v12730_v17  ;;  %v10015_v32 = vmax.f32 %v6518_v6, 0.0 }
 0x379   :  { %v13357_v40 = vadd.f32 %v10268_v52, %v12908_v18  ;;  %v10017_v5 = vmax.f32 %v6559_v7, 0.0  ;;  %v10018_v9 = vmax.f32 %v6561_v10, 0.0 }
 0x37a   :  { %v13360_v29 = vadd.f32 %v10270_v47, %v12910_v8  ;;  %v10016_v60 = vmax.f32 %v6520_v20, 0.0 }
 0x37c   :  { %v9141_v22 = vpop.f32.mrf.mxu0 }
 0x37d   :  { %v9182_v18 = vpop.f32.mrf.mxu1  ;;  %v9142_v21 = vadd.f32 %v9141_v22, %v12730_v17 }
 0x37e   :  { %v9183_v8 = vadd.f32 %v9182_v18, %v12730_v17  ;;  %v9143_v58 = vpop.f32.mrf.mxu0 }
 0x37f   :  { %v9184_v35 = vpop.f32.mrf.mxu1  ;;  %v10143_v11 = vmax.f32 %v9142_v21, 0.0  ;;  %v9144_v31 = vadd.f32 %v9143_v58, %v12730_v17  ;;  %v6641_v58 = vadd.f32 %v13837_v38, %v12730_v17 }
 0x380   :  { %v10145_v26 = vmax.f32 %v9183_v8, 0.0  ;;  %v9185_v13 = vadd.f32 %v9184_v35, %v12730_v17  ;;  %v9145_v52 = vpop.f32.mrf.mxu0 }
 0x381   :  { %v9186_v47 = vpop.f32.mrf.mxu1  ;;  %v10271_v54 = vadd.f32 %v10143_v11, %v10015_v32  ;;  %v10144_v41 = vmax.f32 %v9144_v31, 0.0  ;;  %v13836_v32 = vld [vmem:[#allocation71_spill] sm:$0xff] }
 0x382   :  { %v10273_v0 = vadd.f32 %v10145_v26, %v10017_v5  ;;  %v10146_v39 = vmax.f32 %v9185_v13, 0.0  ;;  %v9146_v6 = vpop.f32.mrf.mxu0  ;;  %v6600_v5 = vadd.f32 %v13836_v32, %v12730_v17 }
 0x383   :  { %v9187_v7 = vpop.f32.mrf.mxu1  ;;  %v13375_v22 = vadd.f32 %v10271_v54, %v12934_v4  ;;  %v10272_v21 = vadd.f32 %v10144_v41, %v10016_v60  ;;  %v13838_v4 = vld [vmem:[#allocation73_spill] sm:$0xff]  ;;  %v10021_v60 = vmax.f32 %v6641_v58, 0.0 }
 0x384   :  { %v13378_v18 = vadd.f32 %v10273_v0, %v12936_v51  ;;  %v10274_v8 = vadd.f32 %v10146_v39, %v10018_v9  ;;  %v6602_v35 = vadd.f32 %v13838_v4, %v12730_v17  ;;  %v13839_v51 = vld [vmem:[#allocation74_spill] sm:$0xff] }
 0x385   :  { %v13381_v20 = vadd.f32 %v10272_v21, %v12938_v53  ;;  %v6643_v11 = vadd.f32 %v13839_v51, %v12730_v17 }
 0x386   :  { %v13384_v10 = vadd.f32 %v10274_v8, %v12940_v57  ;;  %v10019_v57 = vmax.f32 %v6600_v5, 0.0  ;;  %v10020_v39 = vmax.f32 %v6602_v35, 0.0  ;;  %v13843_v35 = vld [vmem:[#allocation109_spill] sm:$0xff] }
 0x387   :  { %v10022_v6 = vmax.f32 %v6643_v11, 0.0 }
 0x388   :  { %v9223_v26 = vpop.f32.mrf.mxu0 }
 0x389   :  { %v9264_v31 = vpop.f32.mrf.mxu1  ;;  %v9224_v53 = vadd.f32 %v9223_v26, %v12730_v17 }
 0x38a   :  { %v9265_v13 = vadd.f32 %v9264_v31, %v12730_v17  ;;  %v9225_v9 = vpop.f32.mrf.mxu0 }
 0x38b   :  { %v9266_v52 = vpop.f32.mrf.mxu1  ;;  %v10147_v47 = vmax.f32 %v9224_v53, 0.0  ;;  %v9226_v0 = vadd.f32 %v9225_v9, %v12730_v17 }
 0x38c   :  { %v10149_v54 = vmax.f32 %v9265_v13, 0.0  ;;  %v9267_v41 = vadd.f32 %v9266_v52, %v12730_v17  ;;  %v9227_v7 = vpop.f32.mrf.mxu0  ;;  %v13841_v13 = vld [vmem:[#allocation108_spill] sm:$0xff] }
 0x38d   :  { %v9268_v21 = vpop.f32.mrf.mxu1  ;;  %v10275_v8 = vadd.f32 %v10147_v47, %v10019_v57  ;;  %v10148_v38 = vmax.f32 %v9226_v0, 0.0  ;;  %v13845_v57 = vld [vmem:[#allocation75_spill] sm:$0xff]  ;;  %v13846_v52 = vld [vmem:[#allocation76_spill] sm:$0xff] }
 0x38e   :  { %v10277_v32 = vadd.f32 %v10149_v54, %v10021_v60  ;;  %v10150_v4 = vmax.f32 %v9267_v41, 0.0  ;;  %v9228_v51 = vpop.f32.mrf.mxu0  ;;  %v6682_v60 = vadd.f32 %v13845_v57, %v12730_v17  ;;  %v6723_v47 = vadd.f32 %v13846_v52, %v12730_v17 }
 0x38f   :  { %v9269_v26 = vpop.f32.mrf.mxu1  ;;  %v13399_v5 = vadd.f32 %v10275_v8, %v12969_v50  ;;  %v10276_v31 = vadd.f32 %v10148_v38, %v10020_v39  ;;  %v13847_v50 = vld [vmem:[#allocation77_spill] sm:$0xff] }
 0x390   :  { %v13402_v58 = vadd.f32 %v10277_v32, %v12971_v25  ;;  %v10278_v53 = vadd.f32 %v10150_v4, %v10022_v6  ;;  %v6684_v54 = vadd.f32 %v13847_v50, %v12730_v17  ;;  %v13848_v25 = vld [vmem:[#allocation78_spill] sm:$0xff]  ;;  %v10023_v21 = vmax.f32 %v6682_v60, 0.0  ;;  %v13849_v60 = vld [vmem:[#allocation13_spill] sm:$0xff] }
 0x391   :  { %v13405_v9 = vadd.f32 %v10276_v31, %v13841_v13  ;;  %v6725_v0 = vadd.f32 %v13848_v25, %v12730_v17  ;;  %v10025_v8 = vmax.f32 %v6723_v47, 0.0 }
 0x392   :  { %13840 = vst [vmem:[#allocation35_spill] sm:$0xff] %v13402_v58  ;;  %v13408_v11 = vadd.f32 %v10278_v53, %v13843_v35  ;;  %v10024_v53 = vmax.f32 %v6684_v54, 0.0 }
 0x393   :  { %13842 = vst [vmem:[#allocation36_spill] sm:$0xff] %v13405_v9  ;;  %v10026_v13 = vmax.f32 %v6725_v0, 0.0  ;;  %v13850_v9 = vld [vmem:[#allocation14_spill] sm:$0xff] }
 0x394   :  { %13844 = vst [vmem:[#allocation37_spill] sm:$0xff] %v13408_v11  ;;  %v9305_v41 = vpop.f32.mrf.mxu0  ;;  %v13851_v0 = vld [vmem:[#allocation110_spill] sm:$0xff] }
 0x395   :  { %v9346_v39 = vpop.f32.mrf.mxu1  ;;  %v9306_v6 = vadd.f32 %v9305_v41, %v12730_v17 }
 0x396   :  { %v9347_v7 = vadd.f32 %v9346_v39, %v12730_v17  ;;  %v9307_v32 = vpop.f32.mrf.mxu0 }
 0x397   :  { %v9348_v38 = vpop.f32.mrf.mxu1  ;;  %v10151_v4 = vmax.f32 %v9306_v6, 0.0  ;;  %v9308_v26 = vadd.f32 %v9307_v32, %v12730_v17 }
 0x398   :  { %v10153_v51 = vmax.f32 %v9347_v7, 0.0  ;;  %v9349_v31 = vadd.f32 %v9348_v38, %v12730_v17  ;;  %v9309_v35 = vpop.f32.mrf.mxu0 }
 0x399   :  { %v9350_v57 = vpop.f32.mrf.mxu1  ;;  %v10279_v52 = vadd.f32 %v10151_v4, %v10023_v21  ;;  %v10152_v25 = vmax.f32 %v9308_v26, 0.0  ;;  %v13852_v21 = vld [vmem:[#allocation111_spill] sm:$0xff] }
 0x39a   :  { %v10281_v50 = vadd.f32 %v10153_v51, %v10025_v8  ;;  %v10154_v41 = vmax.f32 %v9349_v31, 0.0  ;;  %v9310_v11 = vpop.f32.mrf.mxu0  ;;  %v13853_v4 = vld [vmem:[#allocation79_spill] sm:$0xff]  ;;  %v13854_v51 = vld [vmem:[#allocation80_spill] sm:$0xff] }
 0x39b   :  { %v9351_v39 = vpop.f32.mrf.mxu1  ;;  %v10343_v47 = vadd.f32 %v10279_v52, %v13849_v60  ;;  %v10280_v6 = vadd.f32 %v10152_v25, %v10024_v53  ;;  %v6764_v11 = vadd.f32 %v13853_v4, %v12730_v17  ;;  %v6805_v26 = vadd.f32 %v13854_v51, %v12730_v17 }
 0x39c   :  { %v10345_v58 = vadd.f32 %v10281_v50, %v13850_v9  ;;  %v10282_v7 = vadd.f32 %v10154_v41, %v10026_v13 }
 0x39d   :  { %v13425_v32 = vadd.f32 %v10343_v47, %v13228_v24  ;;  %v10344_v38 = vadd.f32 %v10280_v6, %v13851_v0  ;;  %v13855_v24 = vld [vmem:[#allocation81_spill] sm:$0xff]  ;;  %v10027_v50 = vmax.f32 %v6764_v11, 0.0  ;;  %v10029_v25 = vmax.f32 %v6805_v26, 0.0  ;;  %v13857_v11 = vld [vmem:[#allocation15_spill] sm:$0xff] }
 0x39e   :  { %v13428_v54 = vadd.f32 %v10345_v58, %v13231_v3  ;;  %v10346_v8 = vadd.f32 %v10282_v7, %v13852_v21  ;;  %v6766_v3 = vadd.f32 %v13855_v24, %v12730_v17  ;;  %v13856_v58 = vld [vmem:[#allocation82_spill] sm:$0xff] }
 0x39f   :  { %v13437_v9 = vadd.f32 %v10344_v38, %v13234_v14  ;;  %v6807_v53 = vadd.f32 %v13856_v58, %v12730_v17 }
 0x3a0   :  { %v13440_v31 = vadd.f32 %v10346_v8, %v13237_v45  ;;  %v9387_v13 = vpop.f32.mrf.mxu0  ;;  %v10028_v6 = vmax.f32 %v6766_v3, 0.0 }
 0x3a1   :  { %v9428_v35 = vpop.f32.mrf.mxu1  ;;  %v9388_v57 = vadd.f32 %v9387_v13, %v12730_v17  ;;  %v10030_v7 = vmax.f32 %v6807_v53, 0.0  ;;  %v13858_v13 = vld [vmem:[#allocation16_spill] sm:$0xff]  ;;  %v13859_v53 = vld [vmem:[#allocation17_spill] sm:$0xff] }
 0x3a2   :  { %v9429_v52 = vadd.f32 %v9428_v35, %v12730_v17  ;;  %v9389_v41 = vpop.f32.mrf.mxu0 }
 0x3a3   :  { %v9430_v14 = vpop.f32.mrf.mxu1  ;;  %v10155_v39 = vmax.f32 %v9388_v57, 0.0  ;;  %v9390_v45 = vadd.f32 %v9389_v41, %v12730_v17 }
 0x3a4   :  { %v10157_v60 = vmax.f32 %v9429_v52, 0.0  ;;  %v9431_v47 = vadd.f32 %v9430_v14, %v12730_v17  ;;  %v9391_v0 = vpop.f32.mrf.mxu0 }
 0x3a5   :  { %v9432_v38 = vpop.f32.mrf.mxu1  ;;  %v10283_v21 = vadd.f32 %v10155_v39, %v10027_v50  ;;  %v10156_v4 = vmax.f32 %v9390_v45, 0.0  ;;  %v13860_v50 = vld [vmem:[#allocation18_spill] sm:$0xff]  ;;  %v13861_v39 = vld [vmem:[#allocation83_spill] sm:$0xff]  ;;  %v13862_v45 = vld [vmem:[#allocation84_spill] sm:$0xff] }
 0x3a6   :  { %v10285_v8 = vadd.f32 %v10157_v60, %v10029_v25  ;;  %v10158_v51 = vmax.f32 %v9431_v47, 0.0  ;;  %v9392_v24 = vpop.f32.mrf.mxu0  ;;  %v6846_v60 = vadd.f32 %v13861_v39, %v12730_v17  ;;  %v6887_v47 = vadd.f32 %v13862_v45, %v12730_v17 }
 0x3a7   :  { %v9433_v58 = vpop.f32.mrf.mxu1  ;;  %v10347_v26 = vadd.f32 %v10283_v21, %v13857_v11  ;;  %v10284_v57 = vadd.f32 %v10156_v4, %v10028_v6 }
 0x3a8   :  { %v10349_v35 = vadd.f32 %v10285_v8, %v13858_v13  ;;  %v10286_v52 = vadd.f32 %v10158_v51, %v10030_v7  ;;  %v13864_v7 = vld [vmem:[#allocation86_spill] sm:$0xff]  ;;  %v10031_v24 = vmax.f32 %v6846_v60, 0.0  ;;  %v10033_v58 = vmax.f32 %v6887_v47, 0.0  ;;  %v13865_v60 = vld [vmem:[#allocation19_spill] sm:$0xff] }
 0x3a9   :  { %v13453_v41 = vadd.f32 %v10347_v26, %v13252_v49  ;;  %v10348_v14 = vadd.f32 %v10284_v57, %v13859_v53  ;;  %v13863_v49 = vld [vmem:[#allocation85_spill] sm:$0xff]  ;;  %v6889_v38 = vadd.f32 %v13864_v7, %v12730_v17 }
 0x3aa   :  { %v13456_v3 = vadd.f32 %v10349_v35, %v13255_v63  ;;  %v10350_v25 = vadd.f32 %v10286_v52, %v13860_v50  ;;  %v6848_v63 = vadd.f32 %v13863_v49, %v12730_v17 }
 0x3ab   :  { %v13465_v0 = vadd.f32 %v10348_v14, %v13258_v43  ;;  %v10034_v52 = vmax.f32 %v6889_v38, 0.0  ;;  %v13867_v38 = vld [vmem:[#allocation21_spill] sm:$0xff] }
 0x3ac   :  { %v13468_v6 = vadd.f32 %v10350_v25, %v13261_v16  ;;  %v9469_v21 = vpop.f32.mrf.mxu0  ;;  %v10032_v57 = vmax.f32 %v6848_v63, 0.0 }
 0x3ad   :  { %v9510_v8 = vpop.f32.mrf.mxu1  ;;  %v9470_v4 = vadd.f32 %v9469_v21, %v12730_v17  ;;  %v13866_v21 = vld [vmem:[#allocation20_spill] sm:$0xff] }
 0x3ae   :  { %v9511_v51 = vadd.f32 %v9510_v8, %v12730_v17  ;;  %v9471_v11 = vpop.f32.mrf.mxu0 }
 0x3af   :  { %v9512_v43 = vpop.f32.mrf.mxu1  ;;  %v10159_v26 = vmax.f32 %v9470_v4, 0.0  ;;  %v9472_v16 = vadd.f32 %v9471_v11, %v12730_v17 }
 0x3b0   :  { %v10161_v13 = vmax.f32 %v9511_v51, 0.0  ;;  %v9513_v35 = vadd.f32 %v9512_v43, %v12730_v17  ;;  %v9473_v53 = vpop.f32.mrf.mxu0 }
 0x3b1   :  { %v9514_v14 = vpop.f32.mrf.mxu1  ;;  %v10287_v50 = vadd.f32 %v10159_v26, %v10031_v24  ;;  %v10160_v39 = vmax.f32 %v9472_v16, 0.0  ;;  %v13868_v24 = vld [vmem:[#allocation22_spill] sm:$0xff]  ;;  %v13869_v26 = vld [vmem:[#allocation87_spill] sm:$0xff]  ;;  %v13870_v16 = vld [vmem:[#allocation88_spill] sm:$0xff] }
 0x3b2   :  { %v10289_v25 = vadd.f32 %v10161_v13, %v10033_v58  ;;  %v10162_v45 = vmax.f32 %v9513_v35, 0.0  ;;  %v9474_v49 = vpop.f32.mrf.mxu0  ;;  %v6928_v13 = vadd.f32 %v13869_v26, %v12730_v17  ;;  %v6969_v35 = vadd.f32 %v13870_v16, %v12730_v17 }
 0x3b3   :  { %v9515_v7 = vpop.f32.mrf.mxu1  ;;  %v10351_v47 = vadd.f32 %v10287_v50, %v13865_v60  ;;  %v10288_v4 = vadd.f32 %v10160_v39, %v10032_v57 }
 0x3b4   :  { %v10353_v8 = vadd.f32 %v10289_v25, %v13866_v21  ;;  %v10290_v51 = vadd.f32 %v10162_v45, %v10034_v52  ;;  %v13872_v52 = vld [vmem:[#allocation90_spill] sm:$0xff]  ;;  %v10035_v49 = vmax.f32 %v6928_v13, 0.0  ;;  %v10037_v7 = vmax.f32 %v6969_v35, 0.0  ;;  %v13873_v13 = vld [vmem:[#allocation23_spill] sm:$0xff] }
 0x3b5   :  { %v13481_v11 = vadd.f32 %v10351_v47, %v13276_v61  ;;  %v10352_v43 = vadd.f32 %v10288_v4, %v13867_v38  ;;  %v13871_v61 = vld [vmem:[#allocation89_spill] sm:$0xff]  ;;  %v6971_v14 = vadd.f32 %v13872_v52, %v12730_v17 }
 0x3b6   :  { %v13484_v63 = vadd.f32 %v10353_v8, %v13279_v37  ;;  %v10354_v58 = vadd.f32 %v10290_v51, %v13868_v24  ;;  %v6930_v37 = vadd.f32 %v13871_v61, %v12730_v17 }
 0x3b7   :  { %v13493_v53 = vadd.f32 %v10352_v43, %v13282_v59  ;;  %v10038_v51 = vmax.f32 %v6971_v14, 0.0  ;;  %v13875_v14 = vld [vmem:[#allocation25_spill] sm:$0xff] }
 0x3b8   :  { %v13496_v57 = vadd.f32 %v10354_v58, %v13285_v15  ;;  %v9551_v50 = vpop.f32.mrf.mxu0  ;;  %v10036_v4 = vmax.f32 %v6930_v37, 0.0 }
 0x3b9   :  { %v9592_v25 = vpop.f32.mrf.mxu1  ;;  %v9552_v39 = vadd.f32 %v9551_v50, %v12730_v17  ;;  %v13874_v50 = vld [vmem:[#allocation24_spill] sm:$0xff] }
 0x3ba   :  { %v9593_v45 = vadd.f32 %v9592_v25, %v12730_v17  ;;  %v9553_v60 = vpop.f32.mrf.mxu0 }
 0x3bb   :  { %v9594_v59 = vpop.f32.mrf.mxu1  ;;  %v10163_v47 = vmax.f32 %v9552_v39, 0.0  ;;  %v9554_v15 = vadd.f32 %v9553_v60, %v12730_v17 }
 0x3bc   :  { %v10165_v21 = vmax.f32 %v9593_v45, 0.0  ;;  %v9595_v8 = vadd.f32 %v9594_v59, %v12730_v17  ;;  %v9555_v38 = vpop.f32.mrf.mxu0 }
 0x3bd   :  { %v9596_v43 = vpop.f32.mrf.mxu1  ;;  %v10291_v24 = vadd.f32 %v10163_v47, %v10035_v49  ;;  %v10164_v26 = vmax.f32 %v9554_v15, 0.0  ;;  %v13876_v49 = vld [vmem:[#allocation26_spill] sm:$0xff]  ;;  %v13877_v47 = vld [vmem:[#allocation91_spill] sm:$0xff]  ;;  %v13878_v15 = vld [vmem:[#allocation92_spill] sm:$0xff] }
 0x3be   :  { %v10293_v58 = vadd.f32 %v10165_v21, %v10037_v7  ;;  %v10166_v16 = vmax.f32 %v9595_v8, 0.0  ;;  %v9556_v61 = vpop.f32.mrf.mxu0  ;;  %v7010_v21 = vadd.f32 %v13877_v47, %v12730_v17  ;;  %v7051_v8 = vadd.f32 %v13878_v15, %v12730_v17 }
 0x3bf   :  { %v9597_v52 = vpop.f32.mrf.mxu1  ;;  %v10355_v35 = vadd.f32 %v10291_v24, %v13873_v13  ;;  %v10292_v39 = vadd.f32 %v10164_v26, %v10036_v4 }
 0x3c0   :  { %v10357_v25 = vadd.f32 %v10293_v58, %v13874_v50  ;;  %v10294_v45 = vadd.f32 %v10166_v16, %v10038_v51  ;;  %v13880_v51 = vld [vmem:[#allocation94_spill] sm:$0xff]  ;;  %v10039_v61 = vmax.f32 %v7010_v21, 0.0  ;;  %v10041_v52 = vmax.f32 %v7051_v8, 0.0  ;;  %v13881_v21 = vld [vmem:[#allocation27_spill] sm:$0xff] }
 0x3c1   :  { %v13509_v60 = vadd.f32 %v10355_v35, %v13300_v62  ;;  %v10356_v59 = vadd.f32 %v10292_v39, %v13875_v14  ;;  %v13879_v62 = vld [vmem:[#allocation93_spill] sm:$0xff]  ;;  %v7053_v43 = vadd.f32 %v13880_v51, %v12730_v17 }
 0x3c2   :  { %v13512_v37 = vadd.f32 %v10357_v25, %v13303_v1  ;;  %v10358_v7 = vadd.f32 %v10294_v45, %v13876_v49  ;;  %v7012_v1 = vadd.f32 %v13879_v62, %v12730_v17 }
 0x3c3   :  { %v13521_v38 = vadd.f32 %v10356_v59, %v13306_v28  ;;  %v10042_v45 = vmax.f32 %v7053_v43, 0.0 }
 0x3c4   :  { %v13524_v4 = vadd.f32 %v10358_v7, %v13309_v42  ;;  %v9633_v24 = vpop.f32.mrf.mxu0  ;;  %v10040_v39 = vmax.f32 %v7012_v1, 0.0  ;;  %v13883_v1 = vld [vmem:[#allocation29_spill] sm:$0xff] }
 0x3c5   :  { %v9674_v58 = vpop.f32.mrf.mxu1  ;;  %v9634_v26 = vadd.f32 %v9633_v24, %v12730_v17  ;;  %v13882_v24 = vld [vmem:[#allocation28_spill] sm:$0xff] }
 0x3c6   :  { %v9675_v16 = vadd.f32 %v9674_v58, %v12730_v17  ;;  %v9635_v13 = vpop.f32.mrf.mxu0 }
 0x3c7   :  { %v9676_v28 = vpop.f32.mrf.mxu1  ;;  %v10167_v35 = vmax.f32 %v9634_v26, 0.0  ;;  %v9636_v42 = vadd.f32 %v9635_v13, %v12730_v17 }
 0x3c8   :  { %v10169_v50 = vmax.f32 %v9675_v16, 0.0  ;;  %v9677_v25 = vadd.f32 %v9676_v28, %v12730_v17  ;;  %v9637_v14 = vpop.f32.mrf.mxu0 }
 0x3c9   :  { %v9678_v59 = vpop.f32.mrf.mxu1  ;;  %v10295_v49 = vadd.f32 %v10167_v35, %v10039_v61  ;;  %v10168_v47 = vmax.f32 %v9636_v42, 0.0  ;;  %v13884_v14 = vld [vmem:[#allocation30_spill] sm:$0xff]  ;;  %v13885_v61 = vld [vmem:[#allocation95_spill] sm:$0xff]  ;;  %v13886_v35 = vld [vmem:[#allocation96_spill] sm:$0xff] }
 0x3ca   :  { %v10297_v7 = vadd.f32 %v10169_v50, %v10041_v52  ;;  %v10170_v15 = vmax.f32 %v9677_v25, 0.0  ;;  %v9638_v62 = vpop.f32.mrf.mxu0  ;;  %v7092_v52 = vadd.f32 %v13885_v61, %v12730_v17  ;;  %v7133_v50 = vadd.f32 %v13886_v35, %v12730_v17 }
 0x3cb   :  { %v9679_v51 = vpop.f32.mrf.mxu1  ;;  %v10359_v8 = vadd.f32 %v10295_v49, %v13881_v21  ;;  %v10296_v26 = vadd.f32 %v10168_v47, %v10040_v39  ;;  %v13887_v39 = vld [vmem:[#allocation97_spill] sm:$0xff]  ;;  %v13888_v49 = vld [vmem:[#allocation98_spill] sm:$0xff] }
 0x3cc   :  { %v10361_v58 = vadd.f32 %v10297_v7, %v13882_v24  ;;  %v10298_v16 = vadd.f32 %v10170_v15, %v10042_v45  ;;  %v7094_v45 = vadd.f32 %v13887_v39, %v12730_v17  ;;  %v7135_v7 = vadd.f32 %v13888_v49, %v12730_v17 }
 0x3cd   :  { %v10391_v13 = vadd.f32 %v10359_v8, %v13328_v19  ;;  %v10360_v43 = vadd.f32 %v10296_v26, %v13883_v1  ;;  %v10043_v51 = vmax.f32 %v7092_v52, 0.0 }
 0x3ce   :  { %v10393_v28 = vadd.f32 %v10361_v58, %v13331_v27  ;;  %v10362_v59 = vadd.f32 %v10298_v16, %v13884_v14 }
 0x3cf   :  { %v13545_v42 = vadd.f32 %v10391_v13, %v13425_v32  ;;  %v10392_v19 = vadd.f32 %v10360_v43, %v13333_v44  ;;  %v10044_v13 = vmax.f32 %v7094_v45, 0.0  ;;  %v13889_v45 = vld [vmem:[#allocation31_spill] sm:$0xff] }
 0x3d0   :  { %v13548_v25 = vadd.f32 %v10393_v28, %v13428_v54  ;;  %v10394_v27 = vadd.f32 %v10362_v59, %v13336_v12  ;;  %v9715_v47 = vpop.f32.mrf.mxu0  ;;  %v10045_v12 = vmax.f32 %v7133_v50, 0.0 }
 0x3d1   :  { %v9756_v15 = vpop.f32.mrf.mxu1  ;;  %v13557_v62 = vadd.f32 %v10392_v19, %v13437_v9  ;;  %v9716_v54 = vadd.f32 %v9715_v47, %v12730_v17  ;;  %v10046_v9 = vmax.f32 %v7135_v7, 0.0  ;;  %v13890_v47 = vld [vmem:[#allocation32_spill] sm:$0xff] }
 0x3d2   :  { %v13560_v32 = vadd.f32 %v10394_v27, %v13440_v31  ;;  %v9757_v44 = vadd.f32 %v9756_v15, %v12730_v17  ;;  %v9717_v21 = vpop.f32.mrf.mxu0 }
 0x3d3   :  { %v9758_v8 = vpop.f32.mrf.mxu1  ;;  %v10171_v24 = vmax.f32 %v9716_v54, 0.0  ;;  %v9718_v26 = vadd.f32 %v9717_v21, %v12730_v17  ;;  %v13891_v54 = vld [vmem:[#allocation99_spill] sm:$0xff]  ;;  %v13893_v21 = vld [vmem:[#allocation101_spill] sm:$0xff] }
 0x3d4   :  { %v10173_v58 = vmax.f32 %v9757_v44, 0.0  ;;  %v9759_v16 = vadd.f32 %v9758_v8, %v12730_v17  ;;  %v9719_v28 = vpop.f32.mrf.mxu0  ;;  %v7174_v44 = vadd.f32 %v13891_v54, %v12730_v17  ;;  %v7176_v8 = vadd.f32 %v13893_v21, %v12730_v17 }
 0x3d5   :  { %v9760_v1 = vpop.f32.mrf.mxu1  ;;  %v10299_v31 = vadd.f32 %v10171_v24, %v10043_v51  ;;  %v10172_v14 = vmax.f32 %v9718_v26, 0.0  ;;  %v13892_v51 = vld [vmem:[#allocation100_spill] sm:$0xff]  ;;  %v13894_v24 = vld [vmem:[#allocation102_spill] sm:$0xff] }
 0x3d6   :  { %v10301_v43 = vadd.f32 %v10173_v58, %v10045_v12  ;;  %v10174_v59 = vmax.f32 %v9759_v16, 0.0  ;;  %v9720_v61 = vpop.f32.mrf.mxu0  ;;  %v7215_v12 = vadd.f32 %v13892_v51, %v12730_v17  ;;  %v7217_v58 = vadd.f32 %v13894_v24, %v12730_v17  ;;  %v13896_v24 = vld [vmem:[#allocation104_spill] sm:$0xff] }
 0x3d7   :  { %v9761_v35 = vpop.f32.mrf.mxu1  ;;  %v10363_v52 = vadd.f32 %v10299_v31, %v13155_v48  ;;  %v10300_v19 = vadd.f32 %v10172_v14, %v10044_v13  ;;  %v10048_v61 = vmax.f32 %v7176_v8, 0.0 }
 0x3d8   :  { %v10365_v50 = vadd.f32 %v10301_v43, %v13157_v36  ;;  %v10302_v27 = vadd.f32 %v10174_v59, %v10046_v9  ;;  %v10047_v9 = vmax.f32 %v7174_v44, 0.0 }
 0x3d9   :  { %v10395_v39 = vadd.f32 %v10363_v52, %v13351_v34  ;;  %v10364_v7 = vadd.f32 %v10300_v19, %v13889_v45 }
 0x3da   :  { %v10397_v49 = vadd.f32 %v10365_v50, %v13354_v30  ;;  %v10366_v15 = vadd.f32 %v10302_v27, %v13890_v47 }
 0x3db   :  { %v13577_v48 = vadd.f32 %v10395_v39, %v13453_v41  ;;  %v10396_v34 = vadd.f32 %v10364_v7, %v13357_v40 }
 0x3dc   :  { %v13580_v36 = vadd.f32 %v10397_v49, %v13456_v3  ;;  %v10398_v30 = vadd.f32 %v10366_v15, %v13360_v29  ;;  %v9797_v26 = vpop.f32.mrf.mxu0  ;;  %v10049_v29 = vmax.f32 %v7215_v12, 0.0 }
 0x3dd   :  { %v9838_v16 = vpop.f32.mrf.mxu1  ;;  %v13589_v13 = vadd.f32 %v10396_v34, %v13465_v0  ;;  %v9798_v3 = vadd.f32 %v9797_v26, %v12730_v17  ;;  %v10050_v0 = vmax.f32 %v7217_v58, 0.0 }
 0x3de   :  { %v13592_v41 = vadd.f32 %v10398_v30, %v13468_v6  ;;  %v9839_v40 = vadd.f32 %v9838_v16, %v12730_v17  ;;  %v9799_v28 = vpop.f32.mrf.mxu0 }
 0x3df   :  { %v9840_v1 = vpop.f32.mrf.mxu1  ;;  %v10175_v31 = vmax.f32 %v9798_v3, 0.0  ;;  %v9800_v14 = vadd.f32 %v9799_v28, %v12730_v17 }
 0x3e0   :  { %v10177_v43 = vmax.f32 %v9839_v40, 0.0  ;;  %v9841_v59 = vadd.f32 %v9840_v1, %v12730_v17  ;;  %v9801_v35 = vpop.f32.mrf.mxu0 }
 0x3e1   :  { %v9842_v52 = vpop.f32.mrf.mxu1  ;;  %v10303_v6 = vadd.f32 %v10175_v31, %v10047_v9  ;;  %v10176_v19 = vmax.f32 %v9800_v14, 0.0 }
 0x3e2   :  { %v10305_v50 = vadd.f32 %v10177_v43, %v10049_v29  ;;  %v10178_v27 = vmax.f32 %v9841_v59, 0.0  ;;  %v9802_v39 = vpop.f32.mrf.mxu0 }
 0x3e3   :  { %v9843_v49 = vpop.f32.mrf.mxu1  ;;  %v10367_v45 = vadd.f32 %v10303_v6, %v13185_v55  ;;  %v10304_v47 = vadd.f32 %v10176_v19, %v10048_v61 }
 0x3e4   :  { %v10369_v7 = vadd.f32 %v10305_v50, %v13187_v2  ;;  %v10306_v15 = vadd.f32 %v10178_v27, %v10050_v0  ;;  %v13895_v2 = vld [vmem:[#allocation103_spill] sm:$0xff]  ;;  %v13899_v49 = vld [vmem:[#allocation33_spill] sm:$0xff] }
 0x3e5   :  { %v10399_v54 = vadd.f32 %v10367_v45, %v13375_v22  ;;  %v10368_v51 = vadd.f32 %v10304_v47, %v13189_v33  ;;  %v7256_v8 = vadd.f32 %v13895_v2, %v12730_v17  ;;  %v7297_v22 = vadd.f32 %v13896_v24, %v12730_v17  ;;  %v13898_v33 = vld [vmem:[#allocation106_spill] sm:$0xff] }
 0x3e6   :  { %v10401_v44 = vadd.f32 %v10369_v7, %v13378_v18  ;;  %v10370_v12 = vadd.f32 %v10306_v15, %v13191_v46  ;;  %v13897_v18 = vld [vmem:[#allocation105_spill] sm:$0xff]  ;;  %v7299_v46 = vadd.f32 %v13898_v33, %v12730_v17  ;;  %v13900_v7 = vld [vmem:[#allocation34_spill] sm:$0xff] }
 0x3e7   :  { %v10415_v34 = vadd.f32 %v10399_v54, %v13481_v11  ;;  %v10400_v21 = vadd.f32 %v10368_v51, %v13381_v20  ;;  %v7258_v58 = vadd.f32 %v13897_v18, %v12730_v17  ;;  %v10051_v43 = vmax.f32 %v7256_v8, 0.0  ;;  %v13901_v54 = vld [vmem:[#allocation35_spill] sm:$0xff]  ;;  %v13902_v51 = vld [vmem:[#allocation36_spill] sm:$0xff] }
 0x3e8   :  { %v10417_v30 = vadd.f32 %v10401_v44, %v13484_v63  ;;  %v10402_v55 = vadd.f32 %v10370_v12, %v13384_v10  ;;  %v9879_v26 = vpop.f32.mrf.mxu0  ;;  %v10054_v0 = vmax.f32 %v7299_v46, 0.0 }
 0x3e9   :  { %v9920_v11 = vpop.f32.mrf.mxu1  ;;  %v10423_v63 = vadd.f32 %v10415_v34, %v13545_v42  ;;  %v10416_v10 = vadd.f32 %v10400_v21, %v13493_v53  ;;  %v9880_v3 = vadd.f32 %v9879_v26, %v12730_v17  ;;  %v10052_v61 = vmax.f32 %v7258_v58, 0.0  ;;  %v13903_v34 = vld [vmem:[#allocation37_spill] sm:$0xff] }
 0x3ea   :  { %v10425_v20 = vadd.f32 %v10417_v30, %v13548_v25  ;;  %v10418_v16 = vadd.f32 %v10402_v55, %v13496_v57  ;;  %v9921_v40 = vadd.f32 %v9920_v11, %v12730_v17  ;;  %v9881_v9 = vpop.f32.mrf.mxu0  ;;  %v10053_v25 = vmax.f32 %v7297_v22, 0.0 }
 0x3eb   :  { %v9922_v29 = vpop.f32.mrf.mxu1  ;;  %v10424_v28 = vadd.f32 %v10416_v10, %v13557_v62  ;;  %v9882_v31 = vadd.f32 %v9881_v9, %v12730_v17  ;;  %v10179_v14 = vmax.f32 %v9880_v3, 0.0 }
 0x3ec   :  { %v10426_v1 = vadd.f32 %v10418_v16, %v13560_v32  ;;  %v9923_v42 = vadd.f32 %v9922_v29, %v12730_v17  ;;  %v10181_v53 = vmax.f32 %v9921_v40, 0.0  ;;  %v9883_v59 = vpop.f32.mrf.mxu0 }
 0x3ed   :  { %v9924_v57 = vpop.f32.mrf.mxu1  ;;  %v10180_v35 = vmax.f32 %v9882_v31, 0.0  ;;  %v10307_v6 = vadd.f32 %v10179_v14, %v10051_v43 }
 0x3ee   :  { %v10182_v52 = vmax.f32 %v9923_v42, 0.0  ;;  %v10309_v50 = vadd.f32 %v10181_v53, %v10053_v25  ;;  %v9884_v19 = vpop.f32.mrf.mxu0 }
 0x3ef   :  { %v9925_v62 = vpop.f32.mrf.mxu1  ;;  %v10308_v27 = vadd.f32 %v10180_v35, %v10052_v61  ;;  %v10371_v39 = vadd.f32 %v10307_v6, %v13207_v23 }
 0x3f0   :  { %v10310_v32 = vadd.f32 %v10182_v52, %v10054_v0  ;;  %v10373_v17 = vadd.f32 %v10309_v50, %v13209_v56 }
 0x3f1   :  { %v10372_v45 = vadd.f32 %v10308_v27, %v13899_v49  ;;  %v10403_v15 = vadd.f32 %v10371_v39, %v13399_v5 }
 0x3f2   :  { %v10374_v47 = vadd.f32 %v10310_v32, %v13900_v7  ;;  %v10405_v44 = vadd.f32 %v10373_v17, %v13901_v54 }
 0x3f3   :  { %v10404_v12 = vadd.f32 %v10372_v45, %v13902_v51  ;;  %v10419_v21 = vadd.f32 %v10403_v15, %v13509_v60 }
 0x3f4   :  { %v10406_v30 = vadd.f32 %v10374_v47, %v13903_v34  ;;  %v10421_v55 = vadd.f32 %v10405_v44, %v13512_v37  ;;  %v10438_v37 = vld [vmem:[#allocation7] sm:$0xff] }
 0x3f5   :  { %v10420_v23 = vadd.f32 %v10404_v12, %v13521_v38  ;;  %v10427_v2 = vadd.f32 %v10419_v21, %v13577_v48  ;;  %v10443_v38 = vpop.permute.xlu0 %10442 }
 0x3f6   :  { %v10422_v56 = vadd.f32 %v10406_v30, %v13524_v4  ;;  %v10429_v8 = vadd.f32 %v10421_v55, %v13580_v36 }
 0x3f7   :  { %v10428_v5 = vadd.f32 %v10420_v23, %v13589_v13  ;;  %v10431_v22 = vadd.f32 %v10427_v2, %v10423_v63 }
 0x3f8   :  { %v10430_v24 = vadd.f32 %v10422_v56, %v13592_v41  ;;  %v10433_v18 = vadd.f32 %v10429_v8, %v10425_v20 }
 0x3f9   :  { %v10432_v58 = vadd.f32 %v10428_v5, %v10424_v28 }
 0x3fa   :  { %v10434_v33 = vadd.f32 %v10430_v24, %v10426_v1  ;;  %v10435_v46 = vadd.f32 %v10433_v18, %v10431_v22 }
 0x3fc   :  { %v10436_v60 = vadd.f32 %v10434_v33, %v10432_v58 }
 0x3fe   :  { %v10437_v26 = vadd.f32 %v10436_v60, %v10435_v46 }
 0x400   :  { %11564 = vmatpush3.msra.mxu0 %v10437_v26 }
 0x401   :  { %11566 = vmatmul.mubr.msk.f32.vlgmr.msra.gmra.mxu0 %vm10445_vm3, %v10438_v37 }
 0x4c1   :  { %v10515_v4 = vpop.f32.mrf.mxu0 }
 0x4c2   :  { %v10516_v48 = vadd.f32 %v10515_v4, %v10443_v38 }
 0x4c3   :  { %v11567_v36 = vpop.f32.mrf.mxu0 }
 0x4c4   :  { %10519 = vst [vmem:[#allocation8] sm:$0xff] %v10516_v48 }
 0x4c5   :  { %11911 = shalt.err (!%p11908_p5)
}
 0x4c6   :  { %10529 = dma.vmem_to_hbm [thread:$0]  %s10527_s10, 128, %s13650_s5, [#allocation4]  }
 0x4c7   :  { %11924 = dma.done.wait [#allocation4], 128  }
 0x4c8   :  { %11925 = vsyncadd [#allocation4], 4294967168 }
 0x4c9   :  { %10533 = vsyncpa [#allocation3], 1 }
 0x4ca   :  { %10534 = vsyncpa [#allocation6], 1 }
 0x4cb   :  { %10535 = vsyncpa [#allocation4], 1 }

</bundles_post_ra>
